<compile_context>
chip_gen: v7x
topology: tpu7x:2x2x1
jax: 0.10.0
libtpu: 0.0.40
codegen_flags: <defaults>
</compile_context>

<pallas_src>
import jax
import jax.numpy as jnp
from jax.experimental import pallas as pl
from jax.experimental.pallas import tpu as pltpu


def identity(x: jax.Array) -> jax.Array:
    """nn.Identity: pure pass-through — no kernel, no HBM copy."""
    return x


def _round_up(x: int, m: int) -> int:
    return ((x + m - 1) // m) * m


def _mlp_head_kernel(x_ref, w1_ref, b1_ref, w2_ref, b2_ref, o_ref):
    # First linear: (tm, 2048) @ (2048, 512).  bf16 operands feed the MXU
    # natively; accumulation stays f32 via preferred_element_type.
    x = x_ref[...].astype(jnp.bfloat16)
    h = jnp.dot(x, w1_ref[...], preferred_element_type=jnp.float32)
    # Bias-add + ReLU in f32 on the VPU (free under MXU work; v5e has no bf16 VPU).
    h = jnp.maximum(h + b1_ref[...], 0.0)
    # Second linear: (tm, 512) @ (512, C_pad).
    out = jnp.dot(h.astype(jnp.bfloat16), w2_ref[...],
                  preferred_element_type=jnp.float32)
    o_ref[...] = (out + b2_ref[...]).astype(o_ref.dtype)


def linear_evaluation_head(encoding: jax.Array,
                           w1: jax.Array, b1: jax.Array,
                           w2: jax.Array, b2: jax.Array) -> jax.Array:
    """pred = relu(encoding @ w1 + b1) @ w2 + b2  (fused Pallas TPU kernel)."""
    assert encoding.ndim == 2, encoding.shape
    B, D_in = encoding.shape
    assert w1.shape[0] == D_in, (w1.shape, D_in)
    D_hid = w1.shape[1]
    assert w2.shape[0] == D_hid, (w2.shape, D_hid)
    C = w2.shape[1]
    dtype = encoding.dtype

    # Lane-dense output: pad class dim to a multiple of 128 with zero weights /
    # zero bias (avoids masked vst.msk partial stores); sliced off afterwards.
    C_pad = _round_up(max(C, 128), 128)
    if C_pad != C:
        w2 = jnp.pad(w2, ((0, 0), (0, C_pad - C)))
        b2 = jnp.pad(b2, ((0, C_pad - C),))

    # Weights to bf16 once in the wrapper (halves their HBM/VMEM footprint and
    # puts the MXU on its native path). Biases stay f32 for the f32 epilogue.
    w1 = w1.astype(jnp.bfloat16)
    w2 = w2.astype(jnp.bfloat16)
    b1_2d = b1.astype(jnp.float32).reshape(1, D_hid)
    b2_2d = b2.astype(jnp.float32).reshape(1, C_pad)

    # Batch tile: sublane-aligned, up to 512 rows (≈85% of HBM roofline vs ~29%
    # at 128).  For B >= 16 split into >= 2 tiles so the "parallel" grid axis
    # can shard across both TensorCores on v7x.
    if B >= 16:
        tm = max(8, min(512, _round_up(pl.cdiv(B, 2), 8)))
    else:
        tm = _round_up(max(B, 1), 8)
    num_tiles = pl.cdiv(B, tm)

    def _make_call(single_buffer_weights: bool):
        if single_buffer_weights:
            def const_spec(shape):
                return pl.BlockSpec(shape, lambda i: (0,) * len(shape),
                                    pipeline_mode=pl.Buffered(1))
        else:
            def const_spec(shape):
                return pl.BlockSpec(shape, lambda i: (0,) * len(shape))

        return pl.pallas_call(
            _mlp_head_kernel,
            out_shape=jax.ShapeDtypeStruct((B, C_pad), dtype),
            grid=(num_tiles,),
            in_specs=[
                pl.BlockSpec((tm, D_in), lambda i: (i, 0)),  # activations (tiled, ragged-ok)
                const_spec((D_in, D_hid)),                   # W1 (VMEM-resident, bf16)
                const_spec((1, D_hid)),                      # b1 (f32)
                const_spec((D_hid, C_pad)),                  # W2 (VMEM-resident, bf16)
                const_spec((1, C_pad)),                      # b2 (f32)
            ],
            out_specs=pl.BlockSpec((tm, C_pad), lambda i: (i, 0)),
            compiler_params=pltpu.CompilerParams(
                dimension_semantics=("parallel",),   # shards batch tiles across TCs (v7x)
                vmem_limit_bytes=32 * 1024 * 1024,
            ),
        )

    try:
        out = _make_call(True)(encoding, w1, b1_2d, w2, b2_2d)
    except Exception:
        # Some jax versions reject pipeline_mode=pl.Buffered(1); fall back to
        # default double-buffering (still well inside the VMEM budget).
        out = _make_call(False)(encoding, w1, b1_2d, w2, b2_2d)

    return out[:, :C]


def linear_evaluation_forward(encoding, w1, b1, w2, b2):
    # TODO(synk): the SimCLR backbone (self.simclr) is an external model with no
    # definition in the spec; `encoding` stands in for simclr(x). Its projection
    # head is Identity, handled by identity() below (a no-op).
    encoding = identity(encoding)
    return linear_evaluation_head(encoding, w1, b1, w2, b2)


if __name__ == "__main__":
    key = jax.random.PRNGKey(0)
    k_x, k_w1, k_b1, k_w2, k_b2 = jax.random.split(key, 5)

    batch, feat, hidden, nu_classes = 2, 2048, 512, 10

    # `encoding` is the 2048-d feature the SimCLR backbone would produce.
    encoding = jax.random.normal(k_x, (batch, feat), dtype=jnp.float32)
    w1 = jax.random.normal(k_w1, (feat, hidden), dtype=jnp.float32) * 0.02
    b1 = jax.random.normal(k_b1, (hidden,), dtype=jnp.float32) * 0.02
    w2 = jax.random.normal(k_w2, (hidden, nu_classes), dtype=jnp.float32) * 0.02
    b2 = jax.random.normal(k_b2, (nu_classes,), dtype=jnp.float32) * 0.02

    pred = linear_evaluation_forward(encoding, w1, b1, w2, b2)
    pred = jax.block_until_ready(pred)

    assert pred.shape == (batch, nu_classes), pred.shape
    assert pred.dtype == encoding.dtype, pred.dtype

    # Reference with the same precision path (bf16 matmul inputs, f32 accumulate).
    h_ref = jnp.maximum(
        jnp.dot(encoding.astype(jnp.bfloat16), w1.astype(jnp.bfloat16),
                preferred_element_type=jnp.float32) + b1, 0.0)
    ref_bf16 = jnp.dot(h_ref.astype(jnp.bfloat16), w2.astype(jnp.bfloat16),
                       preferred_element_type=jnp.float32) + b2
    err_bf16 = float(jnp.max(jnp.abs(pred - ref_bf16)))
    assert jnp.allclose(pred, ref_bf16, atol=1e-3, rtol=1e-3), err_bf16

    # Loose sanity check against the pure-f32 PyTorch-equivalent head.
    ref_f32 = jnp.maximum(encoding @ w1 + b1, 0.0) @ w2 + b2
    err_f32 = float(jnp.max(jnp.abs(pred - ref_f32)))
    assert jnp.allclose(pred, ref_f32, atol=5e-2, rtol=5e-2), err_f32

    print("KERNEL_OK")
</pallas_src>

<mosaic_0001>
module attributes {stable_mosaic.version = 11 : i64} {
  func.func @_mlp_head_kernel(%arg0: i32, %arg1: memref<8x2048xf32, #tpu.memory_space<vmem>>, %arg2: memref<2048x512xbf16, #tpu.memory_space<vmem>>, %arg3: memref<1x512xf32, #tpu.memory_space<vmem>>, %arg4: memref<512x128xbf16, #tpu.memory_space<vmem>>, %arg5: memref<1x128xf32, #tpu.memory_space<vmem>>, %arg6: memref<8x128xf32, #tpu.memory_space<vmem>>) attributes {dimension_semantics = [#tpu.dimension_semantics<parallel>], iteration_bounds = array<i64: 1>, scalar_prefetch = 0 : i64, scratch_operands = 0 : i64, tpu.core_type = #tpu.core_type<tc>, window_params = [{transform_indices = @transform_0, window_bounds = array<i64: 8, 2048>}, {pipeline_mode = #tpu.pipeline_mode<synchronous>, transform_indices = @transform_1, window_bounds = array<i64: 2048, 512>}, {pipeline_mode = #tpu.pipeline_mode<synchronous>, transform_indices = @transform_2, window_bounds = array<i64: 1, 512>}, {pipeline_mode = #tpu.pipeline_mode<synchronous>, transform_indices = @transform_3, window_bounds = array<i64: 512, 128>}, {pipeline_mode = #tpu.pipeline_mode<synchronous>, transform_indices = @transform_4, window_bounds = array<i64: 1, 128>}, {transform_indices = @transform_5, window_bounds = array<i64: 8, 128>}]} {
    %c0 = arith.constant 0 : index
    %c0_0 = arith.constant 0 : index
    %0 = vector.load %arg1[%c0, %c0_0] : memref<8x2048xf32, #tpu.memory_space<vmem>>, vector<8x2048xf32>
    %1 = arith.truncf %0 : vector<8x2048xf32> to vector<8x2048xbf16>
    %c0_1 = arith.constant 0 : index
    %c0_2 = arith.constant 0 : index
    %2 = vector.load %arg2[%c0_1, %c0_2] : memref<2048x512xbf16, #tpu.memory_space<vmem>>, vector<2048x512xbf16>
    %cst = arith.constant dense<0.000000e+00> : vector<8x512xf32>
    %3 = tpu.matmul %1, %2, %cst {dimension_numbers = #tpu.dot_dimension_numbers<[1], [0], [0], [1], [0, 0, 1, 1], [], []>} : vector<8x2048xbf16>, vector<2048x512xbf16>, vector<8x512xf32> -> vector<8x512xf32>
    %c0_3 = arith.constant 0 : index
    %c0_4 = arith.constant 0 : index
    %4 = vector.load %arg3[%c0_3, %c0_4] : memref<1x512xf32, #tpu.memory_space<vmem>>, vector<1x512xf32>
    %5 = vector.broadcast %4 : vector<1x512xf32> to vector<8x512xf32>
    %6 = arith.addf %3, %5 : vector<8x512xf32>
    %cst_5 = arith.constant 0.000000e+00 : f32
    %7 = vector.broadcast %cst_5 : f32 to vector<8x512xf32>
    %8 = arith.maximumf %6, %7 : vector<8x512xf32>
    %9 = arith.truncf %8 : vector<8x512xf32> to vector<8x512xbf16>
    %c0_6 = arith.constant 0 : index
    %c0_7 = arith.constant 0 : index
    %10 = vector.load %arg4[%c0_6, %c0_7] : memref<512x128xbf16, #tpu.memory_space<vmem>>, vector<512x128xbf16>
    %cst_8 = arith.constant dense<0.000000e+00> : vector<8x128xf32>
    %11 = tpu.matmul %9, %10, %cst_8 {dimension_numbers = #tpu.dot_dimension_numbers<[1], [0], [0], [1], [0, 0, 1, 1], [], []>} : vector<8x512xbf16>, vector<512x128xbf16>, vector<8x128xf32> -> vector<8x128xf32>
    %c0_9 = arith.constant 0 : index
    %c0_10 = arith.constant 0 : index
    %12 = vector.load %arg5[%c0_9, %c0_10] : memref<1x128xf32, #tpu.memory_space<vmem>>, vector<1x128xf32>
    %13 = vector.broadcast %12 : vector<1x128xf32> to vector<8x128xf32>
    %14 = arith.addf %11, %13 : vector<8x128xf32>
    %c0_11 = arith.constant 0 : index
    %c0_12 = arith.constant 0 : index
    %15 = vector.load %arg6[%c0_11, %c0_12] : memref<8x128xf32, #tpu.memory_space<vmem>>, vector<8x128xf32>
    tpu.vector_store %arg6[%c0_11, %c0_12], %14 {strides = array<i32>} : memref<8x128xf32, #tpu.memory_space<vmem>>, vector<8x128xf32>,
    return
  }
  func.func @transform_0(%arg0: i32) -> (i32, i32) {
    %c0_i32 = arith.constant 0 : i32
    %c0_i32_0 = arith.constant 0 : i32
    return %arg0, %c0_i32 : i32, i32
  }
  func.func @transform_1(%arg0: i32) -> (i32, i32) {
    %c0_i32 = arith.constant 0 : i32
    %c0_i32_0 = arith.constant 0 : i32
    %c0_i32_1 = arith.constant 0 : i32
    return %c0_i32, %c0_i32_0 : i32, i32
  }
  func.func @transform_2(%arg0: i32) -> (i32, i32) {
    %c0_i32 = arith.constant 0 : i32
    %c0_i32_0 = arith.constant 0 : i32
    %c0_i32_1 = arith.constant 0 : i32
    return %c0_i32, %c0_i32_0 : i32, i32
  }
  func.func @transform_3(%arg0: i32) -> (i32, i32) {
    %c0_i32 = arith.constant 0 : i32
    %c0_i32_0 = arith.constant 0 : i32
    %c0_i32_1 = arith.constant 0 : i32
    return %c0_i32, %c0_i32_0 : i32, i32
  }
  func.func @transform_4(%arg0: i32) -> (i32, i32) {
    %c0_i32 = arith.constant 0 : i32
    %c0_i32_0 = arith.constant 0 : i32
    %c0_i32_1 = arith.constant 0 : i32
    return %c0_i32, %c0_i32_0 : i32, i32
  }
  func.func @transform_5(%arg0: i32) -> (i32, i32) {
    %c0_i32 = arith.constant 0 : i32
    %c0_i32_0 = arith.constant 0 : i32
    return %arg0, %c0_i32 : i32, i32
  }
}

module attributes {stable_mosaic.version = 11 : i64} {
  func.func @_mlp_head_kernel(%arg0: i32, %arg1: memref<8x2048xf32, #tpu.memory_space<vmem>>, %arg2: memref<2048x512xbf16, #tpu.memory_space<vmem>>, %arg3: memref<1x512xf32, #tpu.memory_space<vmem>>, %arg4: memref<512x128xbf16, #tpu.memory_space<vmem>>, %arg5: memref<1x128xf32, #tpu.memory_space<vmem>>, %arg6: memref<8x128xf32, #tpu.memory_space<vmem>>) attributes {dimension_semantics = [#tpu.dimension_semantics<parallel>], iteration_bounds = array<i64: 1>, scalar_prefetch = 0 : i64, scratch_operands = 0 : i64, tpu.core_type = #tpu.core_type<tc>, window_params = [{transform_indices = @transform_0, window_bounds = array<i64: 8, 2048>}, {pipeline_mode = #tpu.pipeline_mode<synchronous>, transform_indices = @transform_1, window_bounds = array<i64: 2048, 512>}, {pipeline_mode = #tpu.pipeline_mode<synchronous>, transform_indices = @transform_2, window_bounds = array<i64: 1, 512>}, {pipeline_mode = #tpu.pipeline_mode<synchronous>, transform_indices = @transform_3, window_bounds = array<i64: 512, 128>}, {pipeline_mode = #tpu.pipeline_mode<synchronous>, transform_indices = @transform_4, window_bounds = array<i64: 1, 128>}, {transform_indices = @transform_5, window_bounds = array<i64: 8, 128>}]} {
    %c0 = arith.constant 0 : index
    %c0_0 = arith.constant 0 : index
    %0 = vector.load %arg1[%c0, %c0_0] : memref<8x2048xf32, #tpu.memory_space<vmem>>, vector<8x2048xf32>
    %1 = arith.truncf %0 : vector<8x2048xf32> to vector<8x2048xbf16>
    %c0_1 = arith.constant 0 : index
    %c0_2 = arith.constant 0 : index
    %2 = vector.load %arg2[%c0_1, %c0_2] : memref<2048x512xbf16, #tpu.memory_space<vmem>>, vector<2048x512xbf16>
    %cst = arith.constant dense<0.000000e+00> : vector<8x512xf32>
    %3 = tpu.matmul %1, %2, %cst {dimension_numbers = #tpu.dot_dimension_numbers<[1], [0], [0], [1], [0, 0, 1, 1], [], []>} : vector<8x2048xbf16>, vector<2048x512xbf16>, vector<8x512xf32> -> vector<8x512xf32>
    %c0_3 = arith.constant 0 : index
    %c0_4 = arith.constant 0 : index
    %4 = vector.load %arg3[%c0_3, %c0_4] : memref<1x512xf32, #tpu.memory_space<vmem>>, vector<1x512xf32>
    %5 = vector.broadcast %4 : vector<1x512xf32> to vector<8x512xf32>
    %6 = arith.addf %3, %5 : vector<8x512xf32>
    %cst_5 = arith.constant 0.000000e+00 : f32
    %7 = vector.broadcast %cst_5 : f32 to vector<8x512xf32>
    %8 = arith.maximumf %6, %7 : vector<8x512xf32>
    %9 = arith.truncf %8 : vector<8x512xf32> to vector<8x512xbf16>
    %c0_6 = arith.constant 0 : index
    %c0_7 = arith.constant 0 : index
    %10 = vector.load %arg4[%c0_6, %c0_7] : memref<512x128xbf16, #tpu.memory_space<vmem>>, vector<512x128xbf16>
    %cst_8 = arith.constant dense<0.000000e+00> : vector<8x128xf32>
    %11 = tpu.matmul %9, %10, %cst_8 {dimension_numbers = #tpu.dot_dimension_numbers<[1], [0], [0], [1], [0, 0, 1, 1], [], []>} : vector<8x512xbf16>, vector<512x128xbf16>, vector<8x128xf32> -> vector<8x128xf32>
    %c0_9 = arith.constant 0 : index
    %c0_10 = arith.constant 0 : index
    %12 = vector.load %arg5[%c0_9, %c0_10] : memref<1x128xf32, #tpu.memory_space<vmem>>, vector<1x128xf32>
    %13 = vector.broadcast %12 : vector<1x128xf32> to vector<8x128xf32>
    %14 = arith.addf %11, %13 : vector<8x128xf32>
    %c0_11 = arith.constant 0 : index
    %c0_12 = arith.constant 0 : index
    %15 = vector.load %arg6[%c0_11, %c0_12] : memref<8x128xf32, #tpu.memory_space<vmem>>, vector<8x128xf32>
    tpu.vector_store %arg6[%c0_11, %c0_12], %14 {strides = array<i32>} : memref<8x128xf32, #tpu.memory_space<vmem>>, vector<8x128xf32>,
    return
  }
  func.func @transform_0(%arg0: i32) -> (i32, i32) {
    %c0_i32 = arith.constant 0 : i32
    %c0_i32_0 = arith.constant 0 : i32
    return %arg0, %c0_i32 : i32, i32
  }
  func.func @transform_1(%arg0: i32) -> (i32, i32) {
    %c0_i32 = arith.constant 0 : i32
    %c0_i32_0 = arith.constant 0 : i32
    %c0_i32_1 = arith.constant 0 : i32
    return %c0_i32, %c0_i32_0 : i32, i32
  }
  func.func @transform_2(%arg0: i32) -> (i32, i32) {
    %c0_i32 = arith.constant 0 : i32
    %c0_i32_0 = arith.constant 0 : i32
    %c0_i32_1 = arith.constant 0 : i32
    return %c0_i32, %c0_i32_0 : i32, i32
  }
  func.func @transform_3(%arg0: i32) -> (i32, i32) {
    %c0_i32 = arith.constant 0 : i32
    %c0_i32_0 = arith.constant 0 : i32
    %c0_i32_1 = arith.constant 0 : i32
    return %c0_i32, %c0_i32_0 : i32, i32
  }
  func.func @transform_4(%arg0: i32) -> (i32, i32) {
    %c0_i32 = arith.constant 0 : i32
    %c0_i32_0 = arith.constant 0 : i32
    %c0_i32_1 = arith.constant 0 : i32
    return %c0_i32, %c0_i32_0 : i32, i32
  }
  func.func @transform_5(%arg0: i32) -> (i32, i32) {
    %c0_i32 = arith.constant 0 : i32
    %c0_i32_0 = arith.constant 0 : i32
    return %arg0, %c0_i32 : i32, i32
  }
}

</mosaic_0001>

<bundles_post_ra>
// kernel: tpu_custom_call.1
= control target key start
LH: loop header
LB: loop body
LE: loop exit
PB: predicated region body
PF: predicated region fallthrough
CT: control target
= control target key end

     0   :  { %10 = vsyncpa [#allocation3], 0  ;;  %s6234_s0 = inlined_call_operand.hbm [shape: f32[2,2048], index: 0, kind: input, shape index: {}]   ;;  %s6235_s1 = inlined_call_operand.hbm [shape: bf16[2048,512], index: 1, kind: input, shape index: {}]   ;;  %s6236_s2 = inlined_call_operand.hbm [shape: f32[1,512], index: 2, kind: input, shape index: {}]   ;;  %s6237_s3 = inlined_call_operand.hbm [shape: bf16[512,128], index: 3, kind: input, shape index: {}]   ;;  %s6238_s4 = inlined_call_operand.hbm [shape: f32[1,128], index: 4, kind: input, shape index: {}]   ;;  %s6239_s5 = inlined_call_operand.hbm [shape: f32[2,128], index: 5, kind: output, shape index: {}]  }
   0x1   :  { %11 = vsyncpa [#allocation6], 0 }
   0x2   :  { %12 = vsyncpa [#allocation9], 0 }
   0x3   :  { %13 = vsyncpa [#allocation4], 0 }
   0x4   :  { %18 = vsyncadd [#allocation3], 1536  ;;  %s6018_s18 = smov [#allocation5]   ;;  %s5878_s22 = scalar_lea.hbm %s6235_s1, 65536 }
   0x5   :  { %s31_s19 = sshll.u32 %s6018_s18, 4  ;;  %p5879_p0 = scmp.ne.s32.totalorder %s6235_s1, %s5878_s22  ;;  %s32_s19 = int_to_ptr.vmem [resolvable:$true] %s31_s19 }
   0x6   :  { %p5882_p1 = scmp.lt.u32.totalorder %s5878_s22, %s6235_s1 }
   0x8   :  { %p5884_p2 = pnand %p5882_p1, %p5879_p0 }
   0xa   :  { %5887 = shalt.err (!%p5884_p2)
}
   0xb   :  { %s5888_s27 = scalar_lea.vmem %s32_s19, 65536  ;;  %p5893_p4 = scmp.lt.s32.totalorder %s32_s19, %s32_s19 }
   0xc   :  { %p5889_p3 = scmp.ne.s32.totalorder %s32_s19, %s5888_s27  ;;  %p5894_p5 = scmp.lt.s32.totalorder %s5888_s27, %s5888_s27 }
   0xe   :  { %p5895_p6 = por %p5894_p5, %p5893_p4 }
  0x10   :  { %p5896_p7 = pnand %p5895_p6, %p5889_p3 }
  0x12   :  { %5899 = shalt.err (!%p5896_p7)
}
  0x13   :  { %s6019_s28 = smov 256   ;;  %s6020_s29 = smov 16  }
  0x14   :  { %37 = dma.hbm_to_vmem [thread:$0]  %s6235_s1, 65536, %s32_s19, [#allocation6], %s6019_s28, %s6019_s28, %s6020_s29  }
  0x15   :  { %s6021_s7 = smov [#allocation8]   ;;  %s5900_s11 = scalar_lea.hbm %s6237_s3, 4096 }
  0x16   :  { %s53_s8 = sshll.u32 %s6021_s7, 4  ;;  %p5901_p8 = scmp.ne.s32.totalorder %s6237_s3, %s5900_s11  ;;  %s54_s8 = int_to_ptr.vmem [resolvable:$true] %s53_s8 }
  0x17   :  { %p5904_p9 = scmp.lt.u32.totalorder %s5900_s11, %s6237_s3 }
  0x19   :  { %p5906_p10 = pnand %p5904_p9, %p5901_p8 }
  0x1b   :  { %5909 = shalt.err (!%p5906_p10)
}
  0x1c   :  { %s5910_s16 = scalar_lea.vmem %s54_s8, 4096  ;;  %p5915_p12 = scmp.lt.s32.totalorder %s54_s8, %s54_s8 }
  0x1d   :  { %p5911_p11 = scmp.ne.s32.totalorder %s54_s8, %s5910_s16  ;;  %p5916_p13 = scmp.lt.s32.totalorder %s5910_s16, %s5910_s16 }
  0x1f   :  { %p5917_p0 = por %p5916_p13, %p5915_p12 }
  0x21   :  { %p5918_p1 = pnand %p5917_p0, %p5911_p11 }
  0x23   :  { %5921 = shalt.err (!%p5918_p1)
}
  0x24   :  { %s6022_s1 = smov 64   ;;  %s6023_s17 = smov 4  }
  0x25   :  { %59 = dma.hbm_to_vmem [thread:$0]  %s6237_s3, 4096, %s54_s8, [#allocation9], %s6022_s1, %s6022_s1, %s6023_s17  }
  0x26   :  { %s6024_s20 = smov [#allocation2]   ;;  %s5922_s24 = scalar_lea.hbm %s6234_s0, 512 }
  0x27   :  { %s19_s21 = sshll.u32 %s6024_s20, 4  ;;  %p5923_p2 = scmp.ne.s32.totalorder %s6234_s0, %s5922_s24  ;;  %s20_s21 = int_to_ptr.vmem [resolvable:$true] %s19_s21 }
  0x28   :  { %p5926_p3 = scmp.lt.u32.totalorder %s5922_s24, %s6234_s0 }
  0x2a   :  { %p5928_p4 = pnand %p5926_p3, %p5923_p2 }
  0x2c   :  { %5931 = shalt.err (!%p5928_p4)
}
  0x2d   :  { %s5932_s29 = scalar_lea.vmem %s20_s21, 512  ;;  %s5936_s3 = scalar_lea.vmem %s20_s21, 2048 }
  0x2e   :  { %p5933_p5 = scmp.ne.s32.totalorder %s20_s21, %s5932_s29  ;;  %p5937_p6 = scmp.lt.s32.totalorder %s20_s21, %s20_s21 }
  0x2f   :  { %p5938_p7 = scmp.lt.s32.totalorder %s5936_s3, %s5932_s29 }
  0x31   :  { %p5939_p8 = por %p5938_p7, %p5937_p6 }
  0x33   :  { %p5940_p9 = pnand %p5939_p8, %p5933_p5 }
  0x35   :  { %5943 = shalt.err (!%p5940_p9)
}
  0x36   :  { %s6025_s30 = smov 512   ;;  %s6026_s6 = smov 32  }
  0x37   :  { %25 = dma.hbm_to_vmem [thread:$0]  %s6234_s0, 512, %s20_s21, [#allocation3], %s6025_s30, %s6025_s30, %s6026_s6  }
  0x38   :  { %s6027_s9 = smov [#allocation7]   ;;  %s6028_s11 = smov [#allocation10]  }
  0x39   :  { %s44_s10 = sshll.u32 %s6027_s9, 4  ;;  %s66_s12 = sshll.u32 %s6028_s11, 4  ;;  %s45_s10 = int_to_ptr.vmem [resolvable:$true] %s44_s10  ;;  %s67_s12 = int_to_ptr.vmem [resolvable:$true] %s66_s12 }
  0x3a   :  { %s5944_s15 = scalar_lea.hbm %s6236_s2, 64 }
  0x3b   :  { %p5945_p10 = scmp.ne.s32.totalorder %s6236_s2, %s5944_s15  ;;  %p5948_p11 = scmp.lt.u32.totalorder %s5944_s15, %s6236_s2 }
  0x3d   :  { %p5950_p12 = pnand %p5948_p11, %p5945_p10 }
  0x3f   :  { %5953 = shalt.err (!%p5950_p12)
}
  0x40   :  { %s5954_s0 = scalar_lea.vmem %s45_s10, 64  ;;  %p5959_p0 = scmp.lt.s32.totalorder %s45_s10, %s45_s10 }
  0x41   :  { %p5955_p13 = scmp.ne.s32.totalorder %s45_s10, %s5954_s0  ;;  %p5960_p1 = scmp.lt.s32.totalorder %s5954_s0, %s5954_s0 }
  0x43   :  { %p5961_p2 = por %p5960_p1, %p5959_p0 }
  0x45   :  { %p5962_p3 = pnand %p5961_p2, %p5955_p13 }
  0x47   :  { %5965 = shalt.err (!%p5962_p3)
}
  0x48   :  { %47 = dma.hbm_to_vmem [thread:$0]  %s6236_s2, 64, %s45_s10, [#allocation6]  }
  0x49   :  { %s5966_s23 = scalar_lea.hbm %s6238_s4, 16 }
  0x4a   :  { %p5967_p4 = scmp.ne.s32.totalorder %s6238_s4, %s5966_s23  ;;  %p5970_p5 = scmp.lt.u32.totalorder %s5966_s23, %s6238_s4 }
  0x4c   :  { %p5972_p6 = pnand %p5970_p5, %p5967_p4 }
  0x4e   :  { %5975 = shalt.err (!%p5972_p6)
}
  0x4f   :  { %s5976_s28 = scalar_lea.vmem %s67_s12, 16  ;;  %s5980_s29 = scalar_lea.vmem %s67_s12, 32 }
  0x50   :  { %p5977_p7 = scmp.ne.s32.totalorder %s67_s12, %s5976_s28  ;;  %p5981_p8 = scmp.lt.s32.totalorder %s67_s12, %s67_s12 }
  0x51   :  { %p5982_p9 = scmp.lt.s32.totalorder %s5980_s29, %s5976_s28 }
  0x53   :  { %p5983_p10 = por %p5982_p9, %p5981_p8 }
  0x55   :  { %p5984_p11 = pnand %p5983_p10, %p5977_p7 }
  0x57   :  { %5987 = shalt.err (!%p5984_p11)
}
  0x58   :  { %69 = dma.hbm_to_vmem [thread:$0]  %s6238_s4, 16, %s67_s12, [#allocation9]  }
  0x59   :  { %6010 = dma.done.wait [#allocation3], 2048  }
  0x5a   :  { %6011 = vsyncadd [#allocation3], 4294965248 }
  0x5b   :  { %6012 = dma.done.wait [#allocation6], 65600  }
  0x5c   :  { %6013 = vsyncadd [#allocation6], 4294901696 }
  0x5d   :  { %6014 = dma.done.wait [#allocation9], 4112  }
  0x5e   :  { %6015 = vsyncadd [#allocation9], 4294963184  ;;  %v5078_v0 = vld [vmem:[#allocation5 + $0x4] ss:$16 sps:$4 sm:$0xff]   ;;  %v5080_v1 = vld [vmem:[#allocation5 + $0xc] ss:$16 sps:$4 sm:$0xff]   ;;  %v125_v40 = vlaneseq }
  0x5f   :  { %3388 = vmatprep.subr.bf16.mxu0 %v5078_v0  ;;  %v5082_v2 = vld [vmem:[#allocation5] ss:$16 sps:$4 sm:$0xff]   ;;  %v5083_v3 = vld [vmem:[#allocation5 + $0x8] ss:$16 sps:$4 sm:$0xff]   ;;  %3716 = vmatprep.subr.bf16.mxu1 %v5080_v1  ;;  %v5084_v4 = vld [vmem:[#allocation5 + $0x24] ss:$16 sps:$4 sm:$0xff]  }
  0x60   :  { %3389 = vmatpush1.bf16.msra.mxu0 %v5082_v2  ;;  %3717 = vmatpush1.bf16.msra.mxu1 %v5083_v3  ;;  %v5086_v5 = vld [vmem:[#allocation5 + $0x2c] ss:$16 sps:$4 sm:$0xff]   ;;  %v5088_v6 = vld [vmem:[#allocation5 + $0x20] ss:$16 sps:$4 sm:$0xff]   ;;  %v5089_v7 = vld [vmem:[#allocation5 + $0x28] ss:$16 sps:$4 sm:$0xff]  }
  0x61   :  { %3390 = vmatprep.subr.bf16.mxu0 %v5084_v4  ;;  %3718 = vmatprep.subr.bf16.mxu1 %v5086_v5  ;;  %v5090_v8 = vld [vmem:[#allocation5 + $0x44] ss:$16 sps:$4 sm:$0xff]   ;;  %v5092_v9 = vld [vmem:[#allocation5 + $0x4c] ss:$16 sps:$4 sm:$0xff]   ;;  %v5094_v10 = vld [vmem:[#allocation5 + $0x40] ss:$16 sps:$4 sm:$0xff]  }
  0x62   :  { %v5095_v11 = vld [vmem:[#allocation5 + $0x48] ss:$16 sps:$4 sm:$0xff]   ;;  %v5096_v12 = vld [vmem:[#allocation5 + $0x64] ss:$16 sps:$4 sm:$0xff]   ;;  %v5098_v13 = vld [vmem:[#allocation5 + $0x6c] ss:$16 sps:$4 sm:$0xff]  }
  0x63   :  { %v5100_v14 = vld [vmem:[#allocation5 + $0x60] ss:$16 sps:$4 sm:$0xff]   ;;  %v5101_v15 = vld [vmem:[#allocation5 + $0x68] ss:$16 sps:$4 sm:$0xff]   ;;  %v5102_v16 = vld [vmem:[#allocation5 + $0x84] ss:$16 sps:$4 sm:$0xff]  }
  0x64   :  { %3391 = vmatpush1.bf16.msra.mxu0 %v5088_v6  ;;  %3719 = vmatpush1.bf16.msra.mxu1 %v5089_v7  ;;  %v5104_v17 = vld [vmem:[#allocation5 + $0x8c] ss:$16 sps:$4 sm:$0xff]   ;;  %v5106_v18 = vld [vmem:[#allocation5 + $0x80] ss:$16 sps:$4 sm:$0xff]   ;;  %v5107_v19 = vld [vmem:[#allocation5 + $0x88] ss:$16 sps:$4 sm:$0xff]  }
  0x65   :  { %3392 = vmatprep.subr.bf16.mxu0 %v5090_v8  ;;  %3720 = vmatprep.subr.bf16.mxu1 %v5092_v9  ;;  %v5108_v20 = vld [vmem:[#allocation5 + $0xa4] ss:$16 sps:$4 sm:$0xff]   ;;  %v5110_v21 = vld [vmem:[#allocation5 + $0xac] ss:$16 sps:$4 sm:$0xff]   ;;  %v5112_v22 = vld [vmem:[#allocation5 + $0xa0] ss:$16 sps:$4 sm:$0xff]  }
  0x66   :  { %v5113_v23 = vld [vmem:[#allocation5 + $0xa8] ss:$16 sps:$4 sm:$0xff]   ;;  %v5114_v24 = vld [vmem:[#allocation5 + $0xc4] ss:$16 sps:$4 sm:$0xff]   ;;  %v5116_v25 = vld [vmem:[#allocation5 + $0xcc] ss:$16 sps:$4 sm:$0xff]  }
  0x67   :  { %v5118_v26 = vld [vmem:[#allocation5 + $0xc0] ss:$16 sps:$4 sm:$0xff]   ;;  %v5119_v27 = vld [vmem:[#allocation5 + $0xc8] ss:$16 sps:$4 sm:$0xff]   ;;  %v5120_v28 = vld [vmem:[#allocation5 + $0xe4] ss:$16 sps:$4 sm:$0xff]  }
  0x68   :  { %3393 = vmatpush1.bf16.msra.mxu0 %v5094_v10  ;;  %3721 = vmatpush1.bf16.msra.mxu1 %v5095_v11  ;;  %v5122_v29 = vld [vmem:[#allocation5 + $0xec] ss:$16 sps:$4 sm:$0xff]   ;;  %v5124_v30 = vld [vmem:[#allocation5 + $0xe0] ss:$16 sps:$4 sm:$0xff]   ;;  %v5125_v31 = vld [vmem:[#allocation5 + $0xe8] ss:$16 sps:$4 sm:$0xff]  }
  0x69   :  { %3394 = vmatprep.subr.bf16.mxu0 %v5096_v12  ;;  %3722 = vmatprep.subr.bf16.mxu1 %v5098_v13  ;;  %v5126_v32 = vld [vmem:[#allocation5 + $0x104] ss:$16 sps:$4 sm:$0xff]   ;;  %v5128_v33 = vld [vmem:[#allocation5 + $0x10c] ss:$16 sps:$4 sm:$0xff]   ;;  %v5130_v34 = vld [vmem:[#allocation5 + $0x100] ss:$16 sps:$4 sm:$0xff]  }
  0x6a   :  { %v5131_v35 = vld [vmem:[#allocation5 + $0x108] ss:$16 sps:$4 sm:$0xff]   ;;  %v5132_v36 = vld [vmem:[#allocation5 + $0x124] ss:$16 sps:$4 sm:$0xff]   ;;  %v5134_v37 = vld [vmem:[#allocation5 + $0x12c] ss:$16 sps:$4 sm:$0xff]  }
  0x6b   :  { %v6029_v38 = vmov 1983009808   ;;  %v5136_v41 = vld [vmem:[#allocation5 + $0x120] ss:$16 sps:$4 sm:$0xff]   ;;  %v5137_v42 = vld [vmem:[#allocation5 + $0x128] ss:$16 sps:$4 sm:$0xff]  }
  0x6c   :  { %3395 = vmatpush1.bf16.msra.mxu0 %v5100_v14  ;;  %3723 = vmatpush1.bf16.msra.mxu1 %v5101_v15  ;;  %v123_v39 = vunpack.c.l.s4 %v6029_v38  ;;  %v5138_v43 = vld [vmem:[#allocation5 + $0x144] ss:$16 sps:$4 sm:$0xff]   ;;  %v5140_v44 = vld [vmem:[#allocation5 + $0x14c] ss:$16 sps:$4 sm:$0xff]   ;;  %v6123_v46 = vshrl.u32 %v125_v40, 7 }
  0x6d   :  { %3396 = vmatprep.subr.bf16.mxu0 %v5102_v16  ;;  %3724 = vmatprep.subr.bf16.mxu1 %v5104_v17  ;;  %v5142_v47 = vld [vmem:[#allocation5 + $0x140] ss:$16 sps:$4 sm:$0xff]   ;;  %v5143_v48 = vld [vmem:[#allocation5 + $0x148] ss:$16 sps:$4 sm:$0xff]   ;;  %v5144_v49 = vld [vmem:[#allocation5 + $0x164] ss:$16 sps:$4 sm:$0xff]  }
  0x6e   :  { %v124_v45 = vunpack.c.0.s8 %v123_v39  ;;  %v5146_v50 = vld [vmem:[#allocation5 + $0x16c] ss:$16 sps:$4 sm:$0xff]   ;;  %v5148_v51 = vld [vmem:[#allocation5 + $0x160] ss:$16 sps:$4 sm:$0xff]   ;;  %v5149_v52 = vld [vmem:[#allocation5 + $0x168] ss:$16 sps:$4 sm:$0xff]  }
  0x6f   :  { %v86_v53 = vld [vmem:[#allocation2] sm:$0xff]  ;;  %v5152_v61 = vld [vmem:[#allocation5 + $0x18c] ss:$16 sps:$4 sm:$0xff]   ;;  %v5155_v1 = vld [vmem:[#allocation5 + $0x188] ss:$16 sps:$4 sm:$0xff]  }
  0x70   :  { %3397 = vmatpush1.bf16.msra.mxu0 %v5106_v18  ;;  %3725 = vmatpush1.bf16.msra.mxu1 %v5107_v19  ;;  %v6126_v54 = vsub.s32 %v124_v45, %v6123_v46  ;;  %v90_v55 = vld [vmem:[#allocation2 + $0x20] sm:$0xff]  ;;  %v5158_v4 = vld [vmem:[#allocation5 + $0x1ac] ss:$16 sps:$4 sm:$0xff]   ;;  %v5161_v7 = vld [vmem:[#allocation5 + $0x1a8] ss:$16 sps:$4 sm:$0xff]  }
  0x71   :  { %3398 = vmatprep.subr.bf16.mxu0 %v5108_v20  ;;  %3726 = vmatprep.subr.bf16.mxu1 %v5110_v21  ;;  %v94_v56 = vld [vmem:[#allocation2 + $0x40] sm:$0xff]  ;;  %v118_v59 = vcombine.low %v86_v53, %v90_v55  ;;  %v5164_v9 = vld [vmem:[#allocation5 + $0x1cc] ss:$16 sps:$4 sm:$0xff]   ;;  %v119_v10 = vcombine.high %v86_v53, %v90_v55  ;;  %v5167_v13 = vld [vmem:[#allocation5 + $0x1c8] ss:$16 sps:$4 sm:$0xff]  }
  0x72   :  { %v98_v57 = vld [vmem:[#allocation2 + $0x60] sm:$0xff]  ;;  %v5170_v15 = vld [vmem:[#allocation5 + $0x1ec] ss:$16 sps:$4 sm:$0xff]   ;;  %v5173_v19 = vld [vmem:[#allocation5 + $0x1e8] ss:$16 sps:$4 sm:$0xff]  }
  0x73   :  { %v5150_v58 = vld [vmem:[#allocation5 + $0x184] ss:$16 sps:$4 sm:$0xff]   ;;  %v120_v60 = vcombine.low %v94_v56, %v98_v57  ;;  %v128_v62 = vrot.slane %v118_v59, %v6126_v54  ;;  %v5154_v0 = vld [vmem:[#allocation5 + $0x180] ss:$16 sps:$4 sm:$0xff]   ;;  %v121_v11 = vcombine.high %v94_v56, %v98_v57  ;;  %v6131_v16 = vrot.slane %v119_v10, %v6126_v54  ;;  %v5195_v39 = vld [vmem:[#allocation5 + $0x268] ss:$16 sps:$4 sm:$0xff]  }
  0x74   :  { %3399 = vmatpush1.bf16.msra.mxu0 %v5112_v22  ;;  %3727 = vmatpush1.bf16.msra.mxu1 %v5113_v23  ;;  %v5156_v2 = vld [vmem:[#allocation5 + $0x1a4] ss:$16 sps:$4 sm:$0xff]   ;;  %v5160_v6 = vld [vmem:[#allocation5 + $0x1a0] ss:$16 sps:$4 sm:$0xff]   ;;  %v5179_v22 = vld [vmem:[#allocation5 + $0x20c] ss:$16 sps:$4 sm:$0xff]  }
  0x75   :  { %3400 = vmatprep.subr.bf16.mxu0 %v5114_v24  ;;  %3728 = vmatprep.subr.bf16.mxu1 %v5116_v25  ;;  %v142_v63 = vrot.slane %v120_v60, %v6126_v54  ;;  %v5162_v8 = vld [vmem:[#allocation5 + $0x1c4] ss:$16 sps:$4 sm:$0xff]   ;;  %v5166_v12 = vld [vmem:[#allocation5 + $0x1c0] ss:$16 sps:$4 sm:$0xff]   ;;  %v6134_v17 = vrot.slane %v121_v11, %v6126_v54  ;;  %v5177_v25 = vld [vmem:[#allocation5 + $0x208] ss:$16 sps:$4 sm:$0xff]  }
  0x76   :  { %v5168_v14 = vld [vmem:[#allocation5 + $0x1e4] ss:$16 sps:$4 sm:$0xff]   ;;  %v5172_v18 = vld [vmem:[#allocation5 + $0x1e0] ss:$16 sps:$4 sm:$0xff]   ;;  %v5209_v45 = vld [vmem:[#allocation5 + $0x2ac] ss:$16 sps:$4 sm:$0xff]  }
  0x77   :  { %v151_v3 = vcombine.high %v128_v62, %v142_v63  ;;  %v150_v20 = vcombine.low %v128_v62, %v142_v63  ;;  %v5176_v21 = vld [vmem:[#allocation5 + $0x204] ss:$16 sps:$4 sm:$0xff]   ;;  %v153_v23 = vcombine.high %v6131_v16, %v6134_v17  ;;  %v5174_v24 = vld [vmem:[#allocation5 + $0x200] ss:$16 sps:$4 sm:$0xff]   ;;  %v5221_v55 = vld [vmem:[#allocation5 + $0x2ec] ss:$16 sps:$4 sm:$0xff]  }
  0x78   :  { %3401 = vmatpush1.bf16.msra.mxu0 %v5118_v26  ;;  %3729 = vmatpush1.bf16.msra.mxu1 %v5119_v27  ;;  %v5182_v27 = vld [vmem:[#allocation5 + $0x224] ss:$16 sps:$4 sm:$0xff]   ;;  %v5192_v38 = vld [vmem:[#allocation5 + $0x260] ss:$16 sps:$4 sm:$0xff]   ;;  %v5219_v57 = vld [vmem:[#allocation5 + $0x2e8] ss:$16 sps:$4 sm:$0xff]  }
  0x79   :  { %3402 = vmatprep.subr.bf16.mxu0 %v5120_v28  ;;  %3730 = vmatprep.subr.bf16.mxu1 %v5122_v29  ;;  %v279_v5 = vpack.c.bf16 %v151_v3, %v151_v3  ;;  %v278_v26 = vpack.c.bf16 %v150_v20, %v150_v20  ;;  %v5185_v28 = vld [vmem:[#allocation5 + $0x22c] ss:$16 sps:$4 sm:$0xff]   ;;  %v281_v29 = vpack.c.bf16 %v153_v23, %v153_v23  ;;  %v5200_v40 = vld [vmem:[#allocation5 + $0x284] ss:$16 sps:$4 sm:$0xff]   ;;  %v5216_v56 = vld [vmem:[#allocation5 + $0x2e0] ss:$16 sps:$4 sm:$0xff]  }
  0x7a   :  { %v5218_v53 = vld [vmem:[#allocation5 + $0x2e4] ss:$16 sps:$4 sm:$0xff]   ;;  %v5227_v59 = vld [vmem:[#allocation5 + $0x30c] ss:$16 sps:$4 sm:$0xff]   ;;  %v5222_v60 = vld [vmem:[#allocation5 + $0x300] ss:$16 sps:$4 sm:$0xff]  }
  0x7b   :  { %3420 = vmatprep.mubr.bf16.mxu0 %v279_v5  ;;  %3748 = vmatprep.mubr.bf16.mxu1 %v279_v5  ;;  %v5230_v62 = vld [vmem:[#allocation5 + $0x324] ss:$16 sps:$4 sm:$0xff]   ;;  %v5233_v63 = vld [vmem:[#allocation5 + $0x32c] ss:$16 sps:$4 sm:$0xff]   ;;  %v5237_v5 = vld [vmem:[#allocation5 + $0x348] ss:$16 sps:$4 sm:$0xff]  }
  0x7c   :  { %3403 = vmatpush1.bf16.msra.mxu0 %v5124_v30  ;;  %3731 = vmatpush1.bf16.msra.mxu1 %v5125_v31  ;;  %v5180_v30 = vld [vmem:[#allocation5 + $0x220] ss:$16 sps:$4 sm:$0xff]   ;;  %v5183_v31 = vld [vmem:[#allocation5 + $0x228] ss:$16 sps:$4 sm:$0xff]   ;;  %v5239_v3 = vld [vmem:[#allocation5 + $0x34c] ss:$16 sps:$4 sm:$0xff]  }
  0x7d   :  { %3404 = vmatprep.subr.bf16.mxu0 %v5126_v32  ;;  %3732 = vmatprep.subr.bf16.mxu1 %v5128_v33  ;;  %v5188_v32 = vld [vmem:[#allocation5 + $0x244] ss:$16 sps:$4 sm:$0xff]   ;;  %v5191_v33 = vld [vmem:[#allocation5 + $0x24c] ss:$16 sps:$4 sm:$0xff]   ;;  %v5261_v23 = vld [vmem:[#allocation5 + $0x3c8] ss:$16 sps:$4 sm:$0xff]  }
  0x7e   :  { %v5248_v10 = vld [vmem:[#allocation5 + $0x384] ss:$16 sps:$4 sm:$0xff]   ;;  %v5251_v11 = vld [vmem:[#allocation5 + $0x38c] ss:$16 sps:$4 sm:$0xff]  }
  0x7f   :  { %v5260_v20 = vld [vmem:[#allocation5 + $0x3c4] ss:$16 sps:$4 sm:$0xff]  }
  0x80   :  { %3405 = vmatpush1.bf16.msra.mxu0 %v5130_v34  ;;  %3733 = vmatpush1.bf16.msra.mxu1 %v5131_v35  ;;  %v5186_v34 = vld [vmem:[#allocation5 + $0x240] ss:$16 sps:$4 sm:$0xff]   ;;  %v5189_v35 = vld [vmem:[#allocation5 + $0x248] ss:$16 sps:$4 sm:$0xff]  }
  0x81   :  { %3406 = vmatprep.subr.bf16.mxu0 %v5132_v36  ;;  %3734 = vmatprep.subr.bf16.mxu1 %v5134_v37  ;;  %v5194_v36 = vld [vmem:[#allocation5 + $0x264] ss:$16 sps:$4 sm:$0xff]   ;;  %v5197_v37 = vld [vmem:[#allocation5 + $0x26c] ss:$16 sps:$4 sm:$0xff]  }
  0x84   :  { %3407 = vmatpush1.bf16.msra.mxu0 %v5136_v41  ;;  %3735 = vmatpush1.bf16.msra.mxu1 %v5137_v42  ;;  %v5203_v41 = vld [vmem:[#allocation5 + $0x28c] ss:$16 sps:$4 sm:$0xff]   ;;  %v5198_v42 = vld [vmem:[#allocation5 + $0x280] ss:$16 sps:$4 sm:$0xff]  }
  0x85   :  { %3408 = vmatprep.subr.bf16.mxu0 %v5138_v43  ;;  %3736 = vmatprep.subr.bf16.mxu1 %v5140_v44  ;;  %v5201_v43 = vld [vmem:[#allocation5 + $0x288] ss:$16 sps:$4 sm:$0xff]   ;;  %v5206_v44 = vld [vmem:[#allocation5 + $0x2a4] ss:$16 sps:$4 sm:$0xff]  }
  0x88   :  { %3409 = vmatpush1.bf16.msra.mxu0 %v5142_v47  ;;  %3737 = vmatpush1.bf16.msra.mxu1 %v5143_v48  ;;  %v5204_v47 = vld [vmem:[#allocation5 + $0x2a0] ss:$16 sps:$4 sm:$0xff]   ;;  %v5207_v48 = vld [vmem:[#allocation5 + $0x2a8] ss:$16 sps:$4 sm:$0xff]  }
  0x89   :  { %3410 = vmatprep.subr.bf16.mxu0 %v5144_v49  ;;  %3738 = vmatprep.subr.bf16.mxu1 %v5146_v50  ;;  %v5212_v49 = vld [vmem:[#allocation5 + $0x2c4] ss:$16 sps:$4 sm:$0xff]   ;;  %v5215_v50 = vld [vmem:[#allocation5 + $0x2cc] ss:$16 sps:$4 sm:$0xff]  }
  0x8c   :  { %3411 = vmatpush1.bf16.msra.mxu0 %v5148_v51  ;;  %3739 = vmatpush1.bf16.msra.mxu1 %v5149_v52  ;;  %v5210_v51 = vld [vmem:[#allocation5 + $0x2c0] ss:$16 sps:$4 sm:$0xff]   ;;  %v5213_v52 = vld [vmem:[#allocation5 + $0x2c8] ss:$16 sps:$4 sm:$0xff]  }
  0x8d   :  { %3412 = vmatprep.subr.bf16.mxu0 %v5150_v58  ;;  %3740 = vmatprep.subr.bf16.mxu1 %v5152_v61  ;;  %v5224_v58 = vld [vmem:[#allocation5 + $0x304] ss:$16 sps:$4 sm:$0xff]   ;;  %v5225_v61 = vld [vmem:[#allocation5 + $0x308] ss:$16 sps:$4 sm:$0xff]  }
  0x90   :  { %3413 = vmatpush1.bf16.msra.mxu0 %v5154_v0  ;;  %3741 = vmatpush1.bf16.msra.mxu1 %v5155_v1  ;;  %v5228_v0 = vld [vmem:[#allocation5 + $0x320] ss:$16 sps:$4 sm:$0xff]   ;;  %v5231_v1 = vld [vmem:[#allocation5 + $0x328] ss:$16 sps:$4 sm:$0xff]  }
  0x91   :  { %3414 = vmatprep.subr.bf16.mxu0 %v5156_v2  ;;  %3742 = vmatprep.subr.bf16.mxu1 %v5158_v4  ;;  %v5236_v2 = vld [vmem:[#allocation5 + $0x344] ss:$16 sps:$4 sm:$0xff]   ;;  %v5234_v4 = vld [vmem:[#allocation5 + $0x340] ss:$16 sps:$4 sm:$0xff]  }
  0x94   :  { %3415 = vmatpush1.bf16.msra.mxu0 %v5160_v6  ;;  %3743 = vmatpush1.bf16.msra.mxu1 %v5161_v7  ;;  %v5242_v6 = vld [vmem:[#allocation5 + $0x364] ss:$16 sps:$4 sm:$0xff]   ;;  %v5245_v7 = vld [vmem:[#allocation5 + $0x36c] ss:$16 sps:$4 sm:$0xff]  }
  0x95   :  { %3416 = vmatprep.subr.bf16.mxu0 %v5162_v8  ;;  %3744 = vmatprep.subr.bf16.mxu1 %v5164_v9  ;;  %v5240_v8 = vld [vmem:[#allocation5 + $0x360] ss:$16 sps:$4 sm:$0xff]   ;;  %v5243_v9 = vld [vmem:[#allocation5 + $0x368] ss:$16 sps:$4 sm:$0xff]  }
  0x98   :  { %3417 = vmatpush1.bf16.msra.mxu0 %v5166_v12  ;;  %3745 = vmatpush1.bf16.msra.mxu1 %v5167_v13  ;;  %v5246_v12 = vld [vmem:[#allocation5 + $0x380] ss:$16 sps:$4 sm:$0xff]   ;;  %v5249_v13 = vld [vmem:[#allocation5 + $0x388] ss:$16 sps:$4 sm:$0xff]  }
  0x99   :  { %3418 = vmatprep.subr.bf16.mxu0 %v5168_v14  ;;  %3746 = vmatprep.subr.bf16.mxu1 %v5170_v15  ;;  %v5254_v14 = vld [vmem:[#allocation5 + $0x3a4] ss:$16 sps:$4 sm:$0xff]   ;;  %v5257_v15 = vld [vmem:[#allocation5 + $0x3ac] ss:$16 sps:$4 sm:$0xff]  }
  0x9c   :  { %3419 = vmatpush1.bf16.msra.mxu0 %v5172_v18  ;;  %3747 = vmatpush1.bf16.msra.mxu1 %v5173_v19  ;;  %v5252_v18 = vld [vmem:[#allocation5 + $0x3a0] ss:$16 sps:$4 sm:$0xff]   ;;  %v5255_v19 = vld [vmem:[#allocation5 + $0x3a8] ss:$16 sps:$4 sm:$0xff]  }
  0x9d   :  { %3429 = vmatprep.subr.bf16.mxu0 %v5176_v21  ;;  %3757 = vmatprep.subr.bf16.mxu1 %v5179_v22  ;;  %v5263_v21 = vld [vmem:[#allocation5 + $0x3cc] ss:$16 sps:$4 sm:$0xff]   ;;  %v5258_v22 = vld [vmem:[#allocation5 + $0x3c0] ss:$16 sps:$4 sm:$0xff]  }
  0x9f   :  { %3421 = vmatmul.mubr.bf16.vlgmr.msra.gmra.mrb[0].mxu0 %v278_v26  ;;  %3749 = vmatmul.mubr.bf16.vlgmr.msra.gmra.mrb[0].mxu1 %v278_v26  ;;  %v5264_v26 = vld [vmem:[#allocation5 + $0x3e0] ss:$16 sps:$4 sm:$0xff]  }
  0xa0   :  { %3430 = vmatpush1.bf16.msra.mxu0 %v5174_v24  ;;  %3758 = vmatpush1.bf16.msra.mxu1 %v5177_v25  ;;  %v5266_v24 = vld [vmem:[#allocation5 + $0x3e4] ss:$16 sps:$4 sm:$0xff]   ;;  %v5269_v25 = vld [vmem:[#allocation5 + $0x3ec] ss:$16 sps:$4 sm:$0xff]  }
  0xa1   :  { %3431 = vmatprep.subr.bf16.mxu0 %v5182_v27  ;;  %3759 = vmatprep.subr.bf16.mxu1 %v5185_v28  ;;  %v5267_v27 = vld [vmem:[#allocation5 + $0x3e8] ss:$16 sps:$4 sm:$0xff]   ;;  %v152_v28 = vcombine.low %v6131_v16, %v6134_v17 }
  0xa2   :  { %3461 = vmatprep.mubr.bf16.mxu0 %v281_v29  ;;  %3789 = vmatprep.mubr.bf16.mxu1 %v281_v29  ;;  %v5272_v29 = vld [vmem:[#allocation5 + $0x404] ss:$16 sps:$4 sm:$0xff]   ;;  %v6144_v16 = vld [vmem:[#allocation2 + $0x48] sm:$0xff] }
  0xa3   :  { %v6146_v17 = vld [vmem:[#allocation2 + $0x68] sm:$0xff] }
  0xa4   :  { %3432 = vmatpush1.bf16.msra.mxu0 %v5180_v30  ;;  %3760 = vmatpush1.bf16.msra.mxu1 %v5183_v31  ;;  %v5275_v30 = vld [vmem:[#allocation5 + $0x40c] ss:$16 sps:$4 sm:$0xff]   ;;  %v5270_v31 = vld [vmem:[#allocation5 + $0x400] ss:$16 sps:$4 sm:$0xff]  }
  0xa5   :  { %3433 = vmatprep.subr.bf16.mxu0 %v5188_v32  ;;  %3761 = vmatprep.subr.bf16.mxu1 %v5191_v33  ;;  %v5273_v32 = vld [vmem:[#allocation5 + $0x408] ss:$16 sps:$4 sm:$0xff]   ;;  %v280_v33 = vpack.c.bf16 %v152_v28, %v152_v28  ;;  %v5342_v28 = vld [vmem:[#allocation5 + $0x580] ss:$16 sps:$4 sm:$0xff]  }
  0xa8   :  { %3434 = vmatpush1.bf16.msra.mxu0 %v5186_v34  ;;  %3762 = vmatpush1.bf16.msra.mxu1 %v5189_v35  ;;  %v5278_v34 = vld [vmem:[#allocation5 + $0x424] ss:$16 sps:$4 sm:$0xff]   ;;  %v5281_v35 = vld [vmem:[#allocation5 + $0x42c] ss:$16 sps:$4 sm:$0xff]  }
  0xa9   :  { %3435 = vmatprep.subr.bf16.mxu0 %v5194_v36  ;;  %3763 = vmatprep.subr.bf16.mxu1 %v5197_v37  ;;  %v6140_v36 = vld [vmem:[#allocation2 + $0x8] sm:$0xff] }
  0xaa   :  { %v6142_v37 = vld [vmem:[#allocation2 + $0x28] sm:$0xff] }
  0xac   :  { %3436 = vmatpush1.bf16.msra.mxu0 %v5192_v38  ;;  %3764 = vmatpush1.bf16.msra.mxu1 %v5195_v39  ;;  %v154_v38 = vcombine.low %v6140_v36, %v6142_v37  ;;  %v5276_v39 = vld [vmem:[#allocation5 + $0x420] ss:$16 sps:$4 sm:$0xff]  }
  0xad   :  { %3437 = vmatprep.subr.bf16.mxu0 %v5200_v40  ;;  %3765 = vmatprep.subr.bf16.mxu1 %v5203_v41  ;;  %v5279_v40 = vld [vmem:[#allocation5 + $0x428] ss:$16 sps:$4 sm:$0xff]   ;;  %v156_v41 = vcombine.low %v6144_v16, %v6146_v17 }
  0xb0   :  { %3438 = vmatpush1.bf16.msra.mxu0 %v5198_v42  ;;  %3766 = vmatpush1.bf16.msra.mxu1 %v5201_v43  ;;  %v5284_v42 = vld [vmem:[#allocation5 + $0x444] ss:$16 sps:$4 sm:$0xff]   ;;  %v6153_v43 = vrot.slane %v154_v38, %v6126_v54  ;;  %v155_v38 = vcombine.high %v6140_v36, %v6142_v37 }
  0xb1   :  { %3439 = vmatprep.subr.bf16.mxu0 %v5206_v44  ;;  %3767 = vmatprep.subr.bf16.mxu1 %v5209_v45  ;;  %v5287_v44 = vld [vmem:[#allocation5 + $0x44c] ss:$16 sps:$4 sm:$0xff]   ;;  %v6156_v45 = vrot.slane %v156_v41, %v6126_v54  ;;  %v5357_v41 = vld [vmem:[#allocation5 + $0x5c8] ss:$16 sps:$4 sm:$0xff]   ;;  %v5368_v37 = vld [vmem:[#allocation5 + $0x604] ss:$16 sps:$4 sm:$0xff]  }
  0xb3   :  { %v186_v36 = vcombine.low %v6153_v43, %v6156_v45 }
  0xb4   :  { %3440 = vmatpush1.bf16.msra.mxu0 %v5204_v47  ;;  %3768 = vmatpush1.bf16.msra.mxu1 %v5207_v48  ;;  %v5282_v47 = vld [vmem:[#allocation5 + $0x440] ss:$16 sps:$4 sm:$0xff]   ;;  %v5285_v48 = vld [vmem:[#allocation5 + $0x448] ss:$16 sps:$4 sm:$0xff]  }
  0xb5   :  { %3441 = vmatprep.subr.bf16.mxu0 %v5212_v49  ;;  %3769 = vmatprep.subr.bf16.mxu1 %v5215_v50  ;;  %v187_v49 = vcombine.high %v6153_v43, %v6156_v45  ;;  %v5290_v50 = vld [vmem:[#allocation5 + $0x464] ss:$16 sps:$4 sm:$0xff]   ;;  %v5372_v43 = vld [vmem:[#allocation5 + $0x620] ss:$16 sps:$4 sm:$0xff]   ;;  %v5375_v45 = vld [vmem:[#allocation5 + $0x628] ss:$16 sps:$4 sm:$0xff]  }
  0xb8   :  { %3442 = vmatpush1.bf16.msra.mxu0 %v5210_v51  ;;  %3770 = vmatpush1.bf16.msra.mxu1 %v5213_v52  ;;  %v5293_v51 = vld [vmem:[#allocation5 + $0x46c] ss:$16 sps:$4 sm:$0xff]   ;;  %v283_v52 = vpack.c.bf16 %v187_v49, %v187_v49  ;;  %v5360_v49 = vld [vmem:[#allocation5 + $0x5e0] ss:$16 sps:$4 sm:$0xff]  }
  0xb9   :  { %3443 = vmatprep.subr.bf16.mxu0 %v5218_v53  ;;  %3771 = vmatprep.subr.bf16.mxu1 %v5221_v55  ;;  %v5288_v53 = vld [vmem:[#allocation5 + $0x460] ss:$16 sps:$4 sm:$0xff]   ;;  %v5291_v55 = vld [vmem:[#allocation5 + $0x468] ss:$16 sps:$4 sm:$0xff]  }
  0xbc   :  { %3444 = vmatpush1.bf16.msra.mxu0 %v5216_v56  ;;  %3772 = vmatpush1.bf16.msra.mxu1 %v5219_v57  ;;  %v5296_v56 = vld [vmem:[#allocation5 + $0x484] ss:$16 sps:$4 sm:$0xff]   ;;  %v5299_v57 = vld [vmem:[#allocation5 + $0x48c] ss:$16 sps:$4 sm:$0xff]  }
  0xbd   :  { %3445 = vmatprep.subr.bf16.mxu0 %v5224_v58  ;;  %3773 = vmatprep.subr.bf16.mxu1 %v5227_v59  ;;  %v5294_v58 = vld [vmem:[#allocation5 + $0x480] ss:$16 sps:$4 sm:$0xff]   ;;  %v5297_v59 = vld [vmem:[#allocation5 + $0x488] ss:$16 sps:$4 sm:$0xff]  }
  0xc0   :  { %3446 = vmatpush1.bf16.msra.mxu0 %v5222_v60  ;;  %3774 = vmatpush1.bf16.msra.mxu1 %v5225_v61  ;;  %v5302_v60 = vld [vmem:[#allocation5 + $0x4a4] ss:$16 sps:$4 sm:$0xff]   ;;  %v5305_v61 = vld [vmem:[#allocation5 + $0x4ac] ss:$16 sps:$4 sm:$0xff]  }
  0xc1   :  { %3447 = vmatprep.subr.bf16.mxu0 %v5230_v62  ;;  %3775 = vmatprep.subr.bf16.mxu1 %v5233_v63  ;;  %v5300_v62 = vld [vmem:[#allocation5 + $0x4a0] ss:$16 sps:$4 sm:$0xff]   ;;  %v5303_v63 = vld [vmem:[#allocation5 + $0x4a8] ss:$16 sps:$4 sm:$0xff]  }
  0xc4   :  { %3448 = vmatpush1.bf16.msra.mxu0 %v5228_v0  ;;  %3776 = vmatpush1.bf16.msra.mxu1 %v5231_v1  ;;  %v5308_v0 = vld [vmem:[#allocation5 + $0x4c4] ss:$16 sps:$4 sm:$0xff]   ;;  %v5311_v1 = vld [vmem:[#allocation5 + $0x4cc] ss:$16 sps:$4 sm:$0xff]  }
  0xc5   :  { %3449 = vmatprep.subr.bf16.mxu0 %v5236_v2  ;;  %3777 = vmatprep.subr.bf16.mxu1 %v5239_v3  ;;  %v5306_v2 = vld [vmem:[#allocation5 + $0x4c0] ss:$16 sps:$4 sm:$0xff]   ;;  %v5309_v3 = vld [vmem:[#allocation5 + $0x4c8] ss:$16 sps:$4 sm:$0xff]  }
  0xc8   :  { %3450 = vmatpush1.bf16.msra.mxu0 %v5234_v4  ;;  %3778 = vmatpush1.bf16.msra.mxu1 %v5237_v5  ;;  %v5314_v4 = vld [vmem:[#allocation5 + $0x4e4] ss:$16 sps:$4 sm:$0xff]   ;;  %v5317_v5 = vld [vmem:[#allocation5 + $0x4ec] ss:$16 sps:$4 sm:$0xff]  }
  0xc9   :  { %3451 = vmatprep.subr.bf16.mxu0 %v5242_v6  ;;  %3779 = vmatprep.subr.bf16.mxu1 %v5245_v7  ;;  %v5312_v6 = vld [vmem:[#allocation5 + $0x4e0] ss:$16 sps:$4 sm:$0xff]   ;;  %v5315_v7 = vld [vmem:[#allocation5 + $0x4e8] ss:$16 sps:$4 sm:$0xff]  }
  0xcc   :  { %3452 = vmatpush1.bf16.msra.mxu0 %v5240_v8  ;;  %3780 = vmatpush1.bf16.msra.mxu1 %v5243_v9  ;;  %v5320_v8 = vld [vmem:[#allocation5 + $0x504] ss:$16 sps:$4 sm:$0xff]   ;;  %v5323_v9 = vld [vmem:[#allocation5 + $0x50c] ss:$16 sps:$4 sm:$0xff]  }
  0xcd   :  { %3453 = vmatprep.subr.bf16.mxu0 %v5248_v10  ;;  %3781 = vmatprep.subr.bf16.mxu1 %v5251_v11  ;;  %v5318_v10 = vld [vmem:[#allocation5 + $0x500] ss:$16 sps:$4 sm:$0xff]   ;;  %v5321_v11 = vld [vmem:[#allocation5 + $0x508] ss:$16 sps:$4 sm:$0xff]  }
  0xd0   :  { %3454 = vmatpush1.bf16.msra.mxu0 %v5246_v12  ;;  %3782 = vmatpush1.bf16.msra.mxu1 %v5249_v13  ;;  %v5326_v12 = vld [vmem:[#allocation5 + $0x524] ss:$16 sps:$4 sm:$0xff]   ;;  %v5329_v13 = vld [vmem:[#allocation5 + $0x52c] ss:$16 sps:$4 sm:$0xff]  }
  0xd1   :  { %3455 = vmatprep.subr.bf16.mxu0 %v5254_v14  ;;  %3783 = vmatprep.subr.bf16.mxu1 %v5257_v15  ;;  %v5324_v14 = vld [vmem:[#allocation5 + $0x520] ss:$16 sps:$4 sm:$0xff]   ;;  %v5327_v15 = vld [vmem:[#allocation5 + $0x528] ss:$16 sps:$4 sm:$0xff]  }
  0xd4   :  { %3456 = vmatpush1.bf16.msra.mxu0 %v5252_v18  ;;  %3784 = vmatpush1.bf16.msra.mxu1 %v5255_v19  ;;  %v5332_v18 = vld [vmem:[#allocation5 + $0x544] ss:$16 sps:$4 sm:$0xff]   ;;  %v5335_v19 = vld [vmem:[#allocation5 + $0x54c] ss:$16 sps:$4 sm:$0xff]  }
  0xd5   :  { %3457 = vmatprep.subr.bf16.mxu0 %v5260_v20  ;;  %3785 = vmatprep.subr.bf16.mxu1 %v5263_v21  ;;  %v5330_v20 = vld [vmem:[#allocation5 + $0x540] ss:$16 sps:$4 sm:$0xff]   ;;  %v5333_v21 = vld [vmem:[#allocation5 + $0x548] ss:$16 sps:$4 sm:$0xff]  }
  0xd8   :  { %3458 = vmatpush1.bf16.msra.mxu0 %v5258_v22  ;;  %3786 = vmatpush1.bf16.msra.mxu1 %v5261_v23  ;;  %v5338_v22 = vld [vmem:[#allocation5 + $0x564] ss:$16 sps:$4 sm:$0xff]   ;;  %v5341_v23 = vld [vmem:[#allocation5 + $0x56c] ss:$16 sps:$4 sm:$0xff]  }
  0xd9   :  { %3459 = vmatprep.subr.bf16.mxu0 %v5266_v24  ;;  %3787 = vmatprep.subr.bf16.mxu1 %v5269_v25  ;;  %v5336_v24 = vld [vmem:[#allocation5 + $0x560] ss:$16 sps:$4 sm:$0xff]   ;;  %v5339_v25 = vld [vmem:[#allocation5 + $0x568] ss:$16 sps:$4 sm:$0xff]  }
  0xdc   :  { %3460 = vmatpush1.bf16.msra.mxu0 %v5264_v26  ;;  %3788 = vmatpush1.bf16.msra.mxu1 %v5267_v27  ;;  %v5344_v26 = vld [vmem:[#allocation5 + $0x584] ss:$16 sps:$4 sm:$0xff]   ;;  %v5347_v27 = vld [vmem:[#allocation5 + $0x58c] ss:$16 sps:$4 sm:$0xff]  }
  0xdd   :  { %3470 = vmatprep.subr.bf16.mxu0 %v5272_v29  ;;  %3798 = vmatprep.subr.bf16.mxu1 %v5275_v30  ;;  %v5345_v29 = vld [vmem:[#allocation5 + $0x588] ss:$16 sps:$4 sm:$0xff]   ;;  %v5350_v30 = vld [vmem:[#allocation5 + $0x5a4] ss:$16 sps:$4 sm:$0xff]  }
  0xdf   :  { %3462 = vmatmul.mubr.bf16.vlgmr.msra.gmra.mrb[0].mxu0 %v280_v33  ;;  %3790 = vmatmul.mubr.bf16.vlgmr.msra.gmra.mrb[0].mxu1 %v280_v33  ;;  %v5351_v33 = vld [vmem:[#allocation5 + $0x5a8] ss:$16 sps:$4 sm:$0xff]  }
  0xe0   :  { %3471 = vmatpush1.bf16.msra.mxu0 %v5270_v31  ;;  %3799 = vmatpush1.bf16.msra.mxu1 %v5273_v32  ;;  %v5353_v31 = vld [vmem:[#allocation5 + $0x5ac] ss:$16 sps:$4 sm:$0xff]   ;;  %v5348_v32 = vld [vmem:[#allocation5 + $0x5a0] ss:$16 sps:$4 sm:$0xff]  }
  0xe1   :  { %3472 = vmatprep.subr.bf16.mxu0 %v5278_v34  ;;  %3800 = vmatprep.subr.bf16.mxu1 %v5281_v35  ;;  %v5356_v34 = vld [vmem:[#allocation5 + $0x5c4] ss:$16 sps:$4 sm:$0xff]   ;;  %v5359_v35 = vld [vmem:[#allocation5 + $0x5cc] ss:$16 sps:$4 sm:$0xff]  }
  0xe2   :  { %3502 = vmatprep.mubr.bf16.mxu0 %v283_v52  ;;  %3830 = vmatprep.mubr.bf16.mxu1 %v283_v52  ;;  %v5369_v52 = vld [vmem:[#allocation5 + $0x608] ss:$16 sps:$4 sm:$0xff]  }
  0xe4   :  { %3473 = vmatpush1.bf16.msra.mxu0 %v5276_v39  ;;  %3801 = vmatpush1.bf16.msra.mxu1 %v5279_v40  ;;  %v157_v39 = vcombine.high %v6144_v16, %v6146_v17  ;;  %v5354_v40 = vld [vmem:[#allocation5 + $0x5c0] ss:$16 sps:$4 sm:$0xff]   ;;  %v5371_v16 = vld [vmem:[#allocation5 + $0x60c] ss:$16 sps:$4 sm:$0xff]  }
  0xe5   :  { %3474 = vmatprep.subr.bf16.mxu0 %v5284_v42  ;;  %3802 = vmatprep.subr.bf16.mxu1 %v5287_v44  ;;  %v5362_v42 = vld [vmem:[#allocation5 + $0x5e4] ss:$16 sps:$4 sm:$0xff]   ;;  %v5365_v44 = vld [vmem:[#allocation5 + $0x5ec] ss:$16 sps:$4 sm:$0xff]  }
  0xe8   :  { %3475 = vmatpush1.bf16.msra.mxu0 %v5282_v47  ;;  %3803 = vmatpush1.bf16.msra.mxu1 %v5285_v48  ;;  %v6165_v47 = vrot.slane %v155_v38, %v6126_v54  ;;  %v6168_v48 = vrot.slane %v157_v39, %v6126_v54  ;;  %v5440_v38 = vld [vmem:[#allocation5 + $0x784] ss:$16 sps:$4 sm:$0xff]   ;;  %v5443_v39 = vld [vmem:[#allocation5 + $0x78c] ss:$16 sps:$4 sm:$0xff]  }
  0xe9   :  { %3476 = vmatprep.subr.bf16.mxu0 %v5290_v50  ;;  %3804 = vmatprep.subr.bf16.mxu1 %v5293_v51  ;;  %v5363_v50 = vld [vmem:[#allocation5 + $0x5e8] ss:$16 sps:$4 sm:$0xff]   ;;  %v5366_v51 = vld [vmem:[#allocation5 + $0x600] ss:$16 sps:$4 sm:$0xff]  }
  0xea   :  { %v189_v17 = vcombine.high %v6165_v47, %v6168_v48 }
  0xec   :  { %3477 = vmatpush1.bf16.msra.mxu0 %v5288_v53  ;;  %3805 = vmatpush1.bf16.msra.mxu1 %v5291_v55  ;;  %v282_v53 = vpack.c.bf16 %v186_v36, %v186_v36  ;;  %v5374_v55 = vld [vmem:[#allocation5 + $0x624] ss:$16 sps:$4 sm:$0xff]  }
  0xed   :  { %3478 = vmatprep.subr.bf16.mxu0 %v5296_v56  ;;  %3806 = vmatprep.subr.bf16.mxu1 %v5299_v57  ;;  %v5377_v56 = vld [vmem:[#allocation5 + $0x62c] ss:$16 sps:$4 sm:$0xff]   ;;  %v285_v57 = vpack.c.bf16 %v189_v17, %v189_v17  ;;  %v88_v36 = vld [vmem:[#allocation2 + $0x10] sm:$0xff] }
  0xee   :  { %v100_v17 = vld [vmem:[#allocation2 + $0x70] sm:$0xff] }
  0xf0   :  { %3479 = vmatpush1.bf16.msra.mxu0 %v5294_v58  ;;  %3807 = vmatpush1.bf16.msra.mxu1 %v5297_v59  ;;  %v5380_v58 = vld [vmem:[#allocation5 + $0x644] ss:$16 sps:$4 sm:$0xff]   ;;  %v5383_v59 = vld [vmem:[#allocation5 + $0x64c] ss:$16 sps:$4 sm:$0xff]  }
  0xf1   :  { %3480 = vmatprep.subr.bf16.mxu0 %v5302_v60  ;;  %3808 = vmatprep.subr.bf16.mxu1 %v5305_v61  ;;  %v5378_v60 = vld [vmem:[#allocation5 + $0x640] ss:$16 sps:$4 sm:$0xff]   ;;  %v5381_v61 = vld [vmem:[#allocation5 + $0x648] ss:$16 sps:$4 sm:$0xff]  }
  0xf4   :  { %3481 = vmatpush1.bf16.msra.mxu0 %v5300_v62  ;;  %3809 = vmatpush1.bf16.msra.mxu1 %v5303_v63  ;;  %v5386_v62 = vld [vmem:[#allocation5 + $0x664] ss:$16 sps:$4 sm:$0xff]   ;;  %v5389_v63 = vld [vmem:[#allocation5 + $0x66c] ss:$16 sps:$4 sm:$0xff]  }
  0xf5   :  { %3482 = vmatprep.subr.bf16.mxu0 %v5308_v0  ;;  %3810 = vmatprep.subr.bf16.mxu1 %v5311_v1  ;;  %v5384_v0 = vld [vmem:[#allocation5 + $0x660] ss:$16 sps:$4 sm:$0xff]   ;;  %v5387_v1 = vld [vmem:[#allocation5 + $0x668] ss:$16 sps:$4 sm:$0xff]  }
  0xf8   :  { %3483 = vmatpush1.bf16.msra.mxu0 %v5306_v2  ;;  %3811 = vmatpush1.bf16.msra.mxu1 %v5309_v3  ;;  %v5392_v2 = vld [vmem:[#allocation5 + $0x684] ss:$16 sps:$4 sm:$0xff]   ;;  %v5395_v3 = vld [vmem:[#allocation5 + $0x68c] ss:$16 sps:$4 sm:$0xff]  }
  0xf9   :  { %3484 = vmatprep.subr.bf16.mxu0 %v5314_v4  ;;  %3812 = vmatprep.subr.bf16.mxu1 %v5317_v5  ;;  %v5390_v4 = vld [vmem:[#allocation5 + $0x680] ss:$16 sps:$4 sm:$0xff]   ;;  %v5393_v5 = vld [vmem:[#allocation5 + $0x688] ss:$16 sps:$4 sm:$0xff]  }
  0xfc   :  { %3485 = vmatpush1.bf16.msra.mxu0 %v5312_v6  ;;  %3813 = vmatpush1.bf16.msra.mxu1 %v5315_v7  ;;  %v5398_v6 = vld [vmem:[#allocation5 + $0x6a4] ss:$16 sps:$4 sm:$0xff]   ;;  %v5401_v7 = vld [vmem:[#allocation5 + $0x6ac] ss:$16 sps:$4 sm:$0xff]  }
  0xfd   :  { %3486 = vmatprep.subr.bf16.mxu0 %v5320_v8  ;;  %3814 = vmatprep.subr.bf16.mxu1 %v5323_v9  ;;  %v5396_v8 = vld [vmem:[#allocation5 + $0x6a0] ss:$16 sps:$4 sm:$0xff]   ;;  %v5399_v9 = vld [vmem:[#allocation5 + $0x6a8] ss:$16 sps:$4 sm:$0xff]  }
 0x100   :  { %3487 = vmatpush1.bf16.msra.mxu0 %v5318_v10  ;;  %3815 = vmatpush1.bf16.msra.mxu1 %v5321_v11  ;;  %v5404_v10 = vld [vmem:[#allocation5 + $0x6c4] ss:$16 sps:$4 sm:$0xff]   ;;  %v5407_v11 = vld [vmem:[#allocation5 + $0x6cc] ss:$16 sps:$4 sm:$0xff]  }
 0x101   :  { %3488 = vmatprep.subr.bf16.mxu0 %v5326_v12  ;;  %3816 = vmatprep.subr.bf16.mxu1 %v5329_v13  ;;  %v5402_v12 = vld [vmem:[#allocation5 + $0x6c0] ss:$16 sps:$4 sm:$0xff]   ;;  %v5405_v13 = vld [vmem:[#allocation5 + $0x6c8] ss:$16 sps:$4 sm:$0xff]  }
 0x104   :  { %3489 = vmatpush1.bf16.msra.mxu0 %v5324_v14  ;;  %3817 = vmatpush1.bf16.msra.mxu1 %v5327_v15  ;;  %v5410_v14 = vld [vmem:[#allocation5 + $0x6e4] ss:$16 sps:$4 sm:$0xff]   ;;  %v5413_v15 = vld [vmem:[#allocation5 + $0x6ec] ss:$16 sps:$4 sm:$0xff]  }
 0x105   :  { %3490 = vmatprep.subr.bf16.mxu0 %v5332_v18  ;;  %3818 = vmatprep.subr.bf16.mxu1 %v5335_v19  ;;  %v5408_v18 = vld [vmem:[#allocation5 + $0x6e0] ss:$16 sps:$4 sm:$0xff]   ;;  %v5411_v19 = vld [vmem:[#allocation5 + $0x6e8] ss:$16 sps:$4 sm:$0xff]  }
 0x108   :  { %3491 = vmatpush1.bf16.msra.mxu0 %v5330_v20  ;;  %3819 = vmatpush1.bf16.msra.mxu1 %v5333_v21  ;;  %v5416_v20 = vld [vmem:[#allocation5 + $0x704] ss:$16 sps:$4 sm:$0xff]   ;;  %v5419_v21 = vld [vmem:[#allocation5 + $0x70c] ss:$16 sps:$4 sm:$0xff]  }
 0x109   :  { %3492 = vmatprep.subr.bf16.mxu0 %v5338_v22  ;;  %3820 = vmatprep.subr.bf16.mxu1 %v5341_v23  ;;  %v5414_v22 = vld [vmem:[#allocation5 + $0x700] ss:$16 sps:$4 sm:$0xff]   ;;  %v5417_v23 = vld [vmem:[#allocation5 + $0x708] ss:$16 sps:$4 sm:$0xff]  }
 0x10c   :  { %3493 = vmatpush1.bf16.msra.mxu0 %v5336_v24  ;;  %3821 = vmatpush1.bf16.msra.mxu1 %v5339_v25  ;;  %v5422_v24 = vld [vmem:[#allocation5 + $0x724] ss:$16 sps:$4 sm:$0xff]   ;;  %v5425_v25 = vld [vmem:[#allocation5 + $0x72c] ss:$16 sps:$4 sm:$0xff]  }
 0x10d   :  { %3494 = vmatprep.subr.bf16.mxu0 %v5344_v26  ;;  %3822 = vmatprep.subr.bf16.mxu1 %v5347_v27  ;;  %v5420_v26 = vld [vmem:[#allocation5 + $0x720] ss:$16 sps:$4 sm:$0xff]   ;;  %v5423_v27 = vld [vmem:[#allocation5 + $0x728] ss:$16 sps:$4 sm:$0xff]  }
 0x110   :  { %3495 = vmatpush1.bf16.msra.mxu0 %v5342_v28  ;;  %3823 = vmatpush1.bf16.msra.mxu1 %v5345_v29  ;;  %v5428_v28 = vld [vmem:[#allocation5 + $0x744] ss:$16 sps:$4 sm:$0xff]   ;;  %v5431_v29 = vld [vmem:[#allocation5 + $0x74c] ss:$16 sps:$4 sm:$0xff]  }
 0x111   :  { %3496 = vmatprep.subr.bf16.mxu0 %v5350_v30  ;;  %3824 = vmatprep.subr.bf16.mxu1 %v5353_v31  ;;  %v5426_v30 = vld [vmem:[#allocation5 + $0x740] ss:$16 sps:$4 sm:$0xff]   ;;  %v5429_v31 = vld [vmem:[#allocation5 + $0x748] ss:$16 sps:$4 sm:$0xff]  }
 0x114   :  { %3497 = vmatpush1.bf16.msra.mxu0 %v5348_v32  ;;  %3825 = vmatpush1.bf16.msra.mxu1 %v5351_v33  ;;  %v5434_v32 = vld [vmem:[#allocation5 + $0x764] ss:$16 sps:$4 sm:$0xff]   ;;  %v5437_v33 = vld [vmem:[#allocation5 + $0x76c] ss:$16 sps:$4 sm:$0xff]  }
 0x115   :  { %3498 = vmatprep.subr.bf16.mxu0 %v5356_v34  ;;  %3826 = vmatprep.subr.bf16.mxu1 %v5359_v35  ;;  %v5432_v34 = vld [vmem:[#allocation5 + $0x760] ss:$16 sps:$4 sm:$0xff]   ;;  %v5435_v35 = vld [vmem:[#allocation5 + $0x768] ss:$16 sps:$4 sm:$0xff]  }
 0x118   :  { %3499 = vmatpush1.bf16.msra.mxu0 %v5354_v40  ;;  %3827 = vmatpush1.bf16.msra.mxu1 %v5357_v41  ;;  %v5438_v40 = vld [vmem:[#allocation5 + $0x780] ss:$16 sps:$4 sm:$0xff]   ;;  %v5441_v41 = vld [vmem:[#allocation5 + $0x788] ss:$16 sps:$4 sm:$0xff]  }
 0x119   :  { %3500 = vmatprep.subr.bf16.mxu0 %v5362_v42  ;;  %3828 = vmatprep.subr.bf16.mxu1 %v5365_v44  ;;  %v5446_v42 = vld [vmem:[#allocation5 + $0x7a4] ss:$16 sps:$4 sm:$0xff]   ;;  %v5449_v44 = vld [vmem:[#allocation5 + $0x7ac] ss:$16 sps:$4 sm:$0xff]  }
 0x11c   :  { %3501 = vmatpush1.bf16.msra.mxu0 %v5360_v49  ;;  %3829 = vmatpush1.bf16.msra.mxu1 %v5363_v50  ;;  %v5444_v49 = vld [vmem:[#allocation5 + $0x7a0] ss:$16 sps:$4 sm:$0xff]   ;;  %v5447_v50 = vld [vmem:[#allocation5 + $0x7a8] ss:$16 sps:$4 sm:$0xff]  }
 0x11d   :  { %3511 = vmatprep.subr.bf16.mxu0 %v5368_v37  ;;  %3839 = vmatprep.subr.bf16.mxu1 %v5371_v16  ;;  %v92_v37 = vld [vmem:[#allocation2 + $0x30] sm:$0xff] }
 0x11e   :  { %v96_v16 = vld [vmem:[#allocation2 + $0x50] sm:$0xff] }
 0x11f   :  { %3503 = vmatmul.mubr.bf16.vlgmr.msra.gmra.mrb[0].mxu0 %v282_v53  ;;  %3831 = vmatmul.mubr.bf16.vlgmr.msra.gmra.mrb[0].mxu1 %v282_v53  ;;  %v190_v53 = vcombine.low %v88_v36, %v92_v37 }
 0x120   :  { %3512 = vmatpush1.bf16.msra.mxu0 %v5366_v51  ;;  %3840 = vmatpush1.bf16.msra.mxu1 %v5369_v52  ;;  %v5452_v51 = vld [vmem:[#allocation5 + $0x7c4] ss:$16 sps:$4 sm:$0xff]   ;;  %v5455_v52 = vld [vmem:[#allocation5 + $0x7cc] ss:$16 sps:$4 sm:$0xff]  }
 0x121   :  { %3513 = vmatprep.subr.bf16.mxu0 %v5374_v55  ;;  %3841 = vmatprep.subr.bf16.mxu1 %v5377_v56  ;;  %v192_v55 = vcombine.low %v96_v16, %v100_v17  ;;  %v5450_v56 = vld [vmem:[#allocation5 + $0x7c0] ss:$16 sps:$4 sm:$0xff]  }
 0x122   :  { %3543 = vmatprep.mubr.bf16.mxu0 %v285_v57  ;;  %3871 = vmatprep.mubr.bf16.mxu1 %v285_v57  ;;  %v5453_v57 = vld [vmem:[#allocation5 + $0x7c8] ss:$16 sps:$4 sm:$0xff]  }
 0x124   :  { %3514 = vmatpush1.bf16.msra.mxu0 %v5372_v43  ;;  %3842 = vmatpush1.bf16.msra.mxu1 %v5375_v45  ;;  %v5458_v43 = vld [vmem:[#allocation5 + $0x7e4] ss:$16 sps:$4 sm:$0xff]   ;;  %v5461_v45 = vld [vmem:[#allocation5 + $0x7ec] ss:$16 sps:$4 sm:$0xff]  }
 0x125   :  { %3515 = vmatprep.subr.bf16.mxu0 %v5380_v58  ;;  %3843 = vmatprep.subr.bf16.mxu1 %v5383_v59  ;;  %v6175_v58 = vrot.slane %v190_v53, %v6126_v54  ;;  %v6178_v59 = vrot.slane %v192_v55, %v6126_v54  ;;  %v5522_v53 = vld [vmem:[#allocation5 + $0x940] ss:$16 sps:$4 sm:$0xff]   ;;  %v5525_v55 = vld [vmem:[#allocation5 + $0x948] ss:$16 sps:$4 sm:$0xff]  }
 0x128   :  { %3516 = vmatpush1.bf16.msra.mxu0 %v5378_v60  ;;  %3844 = vmatpush1.bf16.msra.mxu1 %v5381_v61  ;;  %v5456_v60 = vld [vmem:[#allocation5 + $0x7e0] ss:$16 sps:$4 sm:$0xff]   ;;  %v5459_v61 = vld [vmem:[#allocation5 + $0x7e8] ss:$16 sps:$4 sm:$0xff]  }
 0x129   :  { %3517 = vmatprep.subr.bf16.mxu0 %v5386_v62  ;;  %3845 = vmatprep.subr.bf16.mxu1 %v5389_v63  ;;  %v188_v62 = vcombine.low %v6165_v47, %v6168_v48  ;;  %v191_v63 = vcombine.high %v88_v36, %v92_v37  ;;  %v5470_v47 = vld [vmem:[#allocation5 + $0x824] ss:$16 sps:$4 sm:$0xff]   ;;  %v5521_v37 = vld [vmem:[#allocation5 + $0x92c] ss:$16 sps:$4 sm:$0xff]  }
 0x12a   :  { %v5518_v36 = vld [vmem:[#allocation5 + $0x924] ss:$16 sps:$4 sm:$0xff]  }
 0x12c   :  { %3518 = vmatpush1.bf16.msra.mxu0 %v5384_v0  ;;  %3846 = vmatpush1.bf16.msra.mxu1 %v5387_v1  ;;  %v193_v0 = vcombine.high %v96_v16, %v100_v17  ;;  %v5464_v1 = vld [vmem:[#allocation5 + $0x804] ss:$16 sps:$4 sm:$0xff]   ;;  %v5516_v16 = vld [vmem:[#allocation5 + $0x920] ss:$16 sps:$4 sm:$0xff]   ;;  %v5519_v17 = vld [vmem:[#allocation5 + $0x928] ss:$16 sps:$4 sm:$0xff]  }
 0x12d   :  { %3519 = vmatprep.subr.bf16.mxu0 %v5392_v2  ;;  %3847 = vmatprep.subr.bf16.mxu1 %v5395_v3  ;;  %v5467_v2 = vld [vmem:[#allocation5 + $0x80c] ss:$16 sps:$4 sm:$0xff]   ;;  %v207_v3 = vrot.slane %v191_v63, %v6126_v54  ;;  %v5537_v63 = vld [vmem:[#allocation5 + $0x988] ss:$16 sps:$4 sm:$0xff]  }
 0x130   :  { %3520 = vmatpush1.bf16.msra.mxu0 %v5390_v4  ;;  %3848 = vmatpush1.bf16.msra.mxu1 %v5393_v5  ;;  %v221_v4 = vrot.slane %v193_v0, %v6126_v54  ;;  %v223_v5 = vcombine.high %v6175_v58, %v6178_v59  ;;  %v5542_v0 = vld [vmem:[#allocation5 + $0x9a4] ss:$16 sps:$4 sm:$0xff]  }
 0x131   :  { %3521 = vmatprep.subr.bf16.mxu0 %v5398_v6  ;;  %3849 = vmatprep.subr.bf16.mxu1 %v5401_v7  ;;  %v5462_v6 = vld [vmem:[#allocation5 + $0x800] ss:$16 sps:$4 sm:$0xff]   ;;  %v5465_v7 = vld [vmem:[#allocation5 + $0x808] ss:$16 sps:$4 sm:$0xff]  }
 0x132   :  { %v6188_v48 = vcombine.low %v207_v3, %v221_v4 }
 0x134   :  { %3522 = vmatpush1.bf16.msra.mxu0 %v5396_v8  ;;  %3850 = vmatpush1.bf16.msra.mxu1 %v5399_v9  ;;  %v284_v8 = vpack.c.bf16 %v188_v62, %v188_v62  ;;  %v6186_v9 = vcombine.high %v207_v3, %v221_v4  ;;  %v5534_v62 = vld [vmem:[#allocation5 + $0x980] ss:$16 sps:$4 sm:$0xff]   ;;  %v5543_v3 = vld [vmem:[#allocation5 + $0x9a8] ss:$16 sps:$4 sm:$0xff]   ;;  %v5548_v4 = vld [vmem:[#allocation5 + $0x9c4] ss:$16 sps:$4 sm:$0xff]  }
 0x135   :  { %3523 = vmatprep.subr.bf16.mxu0 %v5404_v10  ;;  %3851 = vmatprep.subr.bf16.mxu1 %v5407_v11  ;;  %v5473_v10 = vld [vmem:[#allocation5 + $0x82c] ss:$16 sps:$4 sm:$0xff]   ;;  %v287_v11 = vpack.c.bf16 %v223_v5, %v223_v5 }
 0x136   :  { %v5551_v5 = vld [vmem:[#allocation5 + $0x9cc] ss:$16 sps:$4 sm:$0xff]  }
 0x138   :  { %3524 = vmatpush1.bf16.msra.mxu0 %v5402_v12  ;;  %3852 = vmatpush1.bf16.msra.mxu1 %v5405_v13  ;;  %v5468_v12 = vld [vmem:[#allocation5 + $0x820] ss:$16 sps:$4 sm:$0xff]   ;;  %v5471_v13 = vld [vmem:[#allocation5 + $0x828] ss:$16 sps:$4 sm:$0xff]  }
 0x139   :  { %3525 = vmatprep.subr.bf16.mxu0 %v5410_v14  ;;  %3853 = vmatprep.subr.bf16.mxu1 %v5413_v15  ;;  %v5476_v14 = vld [vmem:[#allocation5 + $0x844] ss:$16 sps:$4 sm:$0xff]   ;;  %v5479_v15 = vld [vmem:[#allocation5 + $0x84c] ss:$16 sps:$4 sm:$0xff]  }
 0x13c   :  { %3526 = vmatpush1.bf16.msra.mxu0 %v5408_v18  ;;  %3854 = vmatpush1.bf16.msra.mxu1 %v5411_v19  ;;  %v5474_v18 = vld [vmem:[#allocation5 + $0x840] ss:$16 sps:$4 sm:$0xff]   ;;  %v5477_v19 = vld [vmem:[#allocation5 + $0x848] ss:$16 sps:$4 sm:$0xff]  }
 0x13d   :  { %3527 = vmatprep.subr.bf16.mxu0 %v5416_v20  ;;  %3855 = vmatprep.subr.bf16.mxu1 %v5419_v21  ;;  %v5482_v20 = vld [vmem:[#allocation5 + $0x864] ss:$16 sps:$4 sm:$0xff]   ;;  %v5485_v21 = vld [vmem:[#allocation5 + $0x86c] ss:$16 sps:$4 sm:$0xff]  }
 0x140   :  { %3528 = vmatpush1.bf16.msra.mxu0 %v5414_v22  ;;  %3856 = vmatpush1.bf16.msra.mxu1 %v5417_v23  ;;  %v5480_v22 = vld [vmem:[#allocation5 + $0x860] ss:$16 sps:$4 sm:$0xff]   ;;  %v5483_v23 = vld [vmem:[#allocation5 + $0x868] ss:$16 sps:$4 sm:$0xff]  }
 0x141   :  { %3529 = vmatprep.subr.bf16.mxu0 %v5422_v24  ;;  %3857 = vmatprep.subr.bf16.mxu1 %v5425_v25  ;;  %v5488_v24 = vld [vmem:[#allocation5 + $0x884] ss:$16 sps:$4 sm:$0xff]   ;;  %v5491_v25 = vld [vmem:[#allocation5 + $0x88c] ss:$16 sps:$4 sm:$0xff]  }
 0x144   :  { %3530 = vmatpush1.bf16.msra.mxu0 %v5420_v26  ;;  %3858 = vmatpush1.bf16.msra.mxu1 %v5423_v27  ;;  %v5486_v26 = vld [vmem:[#allocation5 + $0x880] ss:$16 sps:$4 sm:$0xff]   ;;  %v5489_v27 = vld [vmem:[#allocation5 + $0x888] ss:$16 sps:$4 sm:$0xff]  }
 0x145   :  { %3531 = vmatprep.subr.bf16.mxu0 %v5428_v28  ;;  %3859 = vmatprep.subr.bf16.mxu1 %v5431_v29  ;;  %v5494_v28 = vld [vmem:[#allocation5 + $0x8a4] ss:$16 sps:$4 sm:$0xff]   ;;  %v5497_v29 = vld [vmem:[#allocation5 + $0x8ac] ss:$16 sps:$4 sm:$0xff]  }
 0x148   :  { %3532 = vmatpush1.bf16.msra.mxu0 %v5426_v30  ;;  %3860 = vmatpush1.bf16.msra.mxu1 %v5429_v31  ;;  %v5492_v30 = vld [vmem:[#allocation5 + $0x8a0] ss:$16 sps:$4 sm:$0xff]   ;;  %v5495_v31 = vld [vmem:[#allocation5 + $0x8a8] ss:$16 sps:$4 sm:$0xff]  }
 0x149   :  { %3533 = vmatprep.subr.bf16.mxu0 %v5434_v32  ;;  %3861 = vmatprep.subr.bf16.mxu1 %v5437_v33  ;;  %v5500_v32 = vld [vmem:[#allocation5 + $0x8c4] ss:$16 sps:$4 sm:$0xff]   ;;  %v5503_v33 = vld [vmem:[#allocation5 + $0x8cc] ss:$16 sps:$4 sm:$0xff]  }
 0x14c   :  { %3534 = vmatpush1.bf16.msra.mxu0 %v5432_v34  ;;  %3862 = vmatpush1.bf16.msra.mxu1 %v5435_v35  ;;  %v5498_v34 = vld [vmem:[#allocation5 + $0x8c0] ss:$16 sps:$4 sm:$0xff]   ;;  %v5501_v35 = vld [vmem:[#allocation5 + $0x8c8] ss:$16 sps:$4 sm:$0xff]  }
 0x14d   :  { %3535 = vmatprep.subr.bf16.mxu0 %v5440_v38  ;;  %3863 = vmatprep.subr.bf16.mxu1 %v5443_v39  ;;  %v5506_v38 = vld [vmem:[#allocation5 + $0x8e4] ss:$16 sps:$4 sm:$0xff]   ;;  %v5509_v39 = vld [vmem:[#allocation5 + $0x8ec] ss:$16 sps:$4 sm:$0xff]  }
 0x150   :  { %3536 = vmatpush1.bf16.msra.mxu0 %v5438_v40  ;;  %3864 = vmatpush1.bf16.msra.mxu1 %v5441_v41  ;;  %v5504_v40 = vld [vmem:[#allocation5 + $0x8e0] ss:$16 sps:$4 sm:$0xff]   ;;  %v5507_v41 = vld [vmem:[#allocation5 + $0x8e8] ss:$16 sps:$4 sm:$0xff]  }
 0x151   :  { %3537 = vmatprep.subr.bf16.mxu0 %v5446_v42  ;;  %3865 = vmatprep.subr.bf16.mxu1 %v5449_v44  ;;  %v5512_v42 = vld [vmem:[#allocation5 + $0x904] ss:$16 sps:$4 sm:$0xff]   ;;  %v5515_v44 = vld [vmem:[#allocation5 + $0x90c] ss:$16 sps:$4 sm:$0xff]  }
 0x154   :  { %3538 = vmatpush1.bf16.msra.mxu0 %v5444_v49  ;;  %3866 = vmatpush1.bf16.msra.mxu1 %v5447_v50  ;;  %v5510_v49 = vld [vmem:[#allocation5 + $0x900] ss:$16 sps:$4 sm:$0xff]   ;;  %v5513_v50 = vld [vmem:[#allocation5 + $0x908] ss:$16 sps:$4 sm:$0xff]  }
 0x155   :  { %3539 = vmatprep.subr.bf16.mxu0 %v5452_v51  ;;  %3867 = vmatprep.subr.bf16.mxu1 %v5455_v52  ;;  %v5524_v51 = vld [vmem:[#allocation5 + $0x944] ss:$16 sps:$4 sm:$0xff]   ;;  %v5527_v52 = vld [vmem:[#allocation5 + $0x94c] ss:$16 sps:$4 sm:$0xff]  }
 0x158   :  { %3540 = vmatpush1.bf16.msra.mxu0 %v5450_v56  ;;  %3868 = vmatpush1.bf16.msra.mxu1 %v5453_v57  ;;  %v5530_v56 = vld [vmem:[#allocation5 + $0x964] ss:$16 sps:$4 sm:$0xff]   ;;  %v5533_v57 = vld [vmem:[#allocation5 + $0x96c] ss:$16 sps:$4 sm:$0xff]  }
 0x159   :  { %3541 = vmatprep.subr.bf16.mxu0 %v5458_v43  ;;  %3869 = vmatprep.subr.bf16.mxu1 %v5461_v45  ;;  %v5528_v43 = vld [vmem:[#allocation5 + $0x960] ss:$16 sps:$4 sm:$0xff]   ;;  %v5531_v45 = vld [vmem:[#allocation5 + $0x968] ss:$16 sps:$4 sm:$0xff]  }
 0x15c   :  { %3542 = vmatpush1.bf16.msra.mxu0 %v5456_v60  ;;  %3870 = vmatpush1.bf16.msra.mxu1 %v5459_v61  ;;  %v5536_v60 = vld [vmem:[#allocation5 + $0x984] ss:$16 sps:$4 sm:$0xff]   ;;  %v5539_v61 = vld [vmem:[#allocation5 + $0x98c] ss:$16 sps:$4 sm:$0xff]  }
 0x15d   :  { %3552 = vmatprep.subr.bf16.mxu0 %v5464_v1  ;;  %3880 = vmatprep.subr.bf16.mxu1 %v5467_v2  ;;  %v5545_v1 = vld [vmem:[#allocation5 + $0x9ac] ss:$16 sps:$4 sm:$0xff]   ;;  %v5540_v2 = vld [vmem:[#allocation5 + $0x9a0] ss:$16 sps:$4 sm:$0xff]  }
 0x15f   :  { %3544 = vmatmul.mubr.bf16.vlgmr.msra.gmra.mrb[0].mxu0 %v284_v8  ;;  %3872 = vmatmul.mubr.bf16.vlgmr.msra.gmra.mrb[0].mxu1 %v284_v8  ;;  %v5554_v8 = vld [vmem:[#allocation5 + $0x9e4] ss:$16 sps:$4 sm:$0xff]  }
 0x160   :  { %3553 = vmatpush1.bf16.msra.mxu0 %v5462_v6  ;;  %3881 = vmatpush1.bf16.msra.mxu1 %v5465_v7  ;;  %v5546_v6 = vld [vmem:[#allocation5 + $0x9c0] ss:$16 sps:$4 sm:$0xff]   ;;  %v5549_v7 = vld [vmem:[#allocation5 + $0x9c8] ss:$16 sps:$4 sm:$0xff]  }
 0x161   :  { %3554 = vmatprep.subr.bf16.mxu0 %v5470_v47  ;;  %3882 = vmatprep.subr.bf16.mxu1 %v5473_v10  ;;  %v5557_v47 = vld [vmem:[#allocation5 + $0x9ec] ss:$16 sps:$4 sm:$0xff]   ;;  %v222_v10 = vcombine.low %v6175_v58, %v6178_v59  ;;  %v289_v58 = vpack.c.bf16 %v6186_v9, %v6186_v9  ;;  %v5564_v59 = vld [vmem:[#allocation5 + $0xa20] ss:$16 sps:$4 sm:$0xff]  }
 0x162   :  { %3584 = vmatprep.mubr.bf16.mxu0 %v287_v11  ;;  %3912 = vmatprep.mubr.bf16.mxu1 %v287_v11  ;;  %v5552_v11 = vld [vmem:[#allocation5 + $0x9e0] ss:$16 sps:$4 sm:$0xff]   ;;  %v5581_v9 = vld [vmem:[#allocation5 + $0xa6c] ss:$16 sps:$4 sm:$0xff]  }
 0x164   :  { %3555 = vmatpush1.bf16.msra.mxu0 %v5468_v12  ;;  %3883 = vmatpush1.bf16.msra.mxu1 %v5471_v13  ;;  %v5555_v12 = vld [vmem:[#allocation5 + $0x9e8] ss:$16 sps:$4 sm:$0xff]   ;;  %v5560_v13 = vld [vmem:[#allocation5 + $0xa04] ss:$16 sps:$4 sm:$0xff]  }
 0x165   :  { %3556 = vmatprep.subr.bf16.mxu0 %v5476_v14  ;;  %3884 = vmatprep.subr.bf16.mxu1 %v5479_v15  ;;  %v5563_v14 = vld [vmem:[#allocation5 + $0xa0c] ss:$16 sps:$4 sm:$0xff]   ;;  %v286_v15 = vpack.c.bf16 %v222_v10, %v222_v10 }
 0x166   :  { %v97_v10 = vld [vmem:[#allocation2 + $0x58] sm:$0xff] }
 0x168   :  { %3557 = vmatpush1.bf16.msra.mxu0 %v5474_v18  ;;  %3885 = vmatpush1.bf16.msra.mxu1 %v5477_v19  ;;  %v5558_v18 = vld [vmem:[#allocation5 + $0xa00] ss:$16 sps:$4 sm:$0xff]   ;;  %v5561_v19 = vld [vmem:[#allocation5 + $0xa08] ss:$16 sps:$4 sm:$0xff]  }
 0x169   :  { %3558 = vmatprep.subr.bf16.mxu0 %v5482_v20  ;;  %3886 = vmatprep.subr.bf16.mxu1 %v5485_v21  ;;  %v5566_v20 = vld [vmem:[#allocation5 + $0xa24] ss:$16 sps:$4 sm:$0xff]   ;;  %v5569_v21 = vld [vmem:[#allocation5 + $0xa2c] ss:$16 sps:$4 sm:$0xff]  }
 0x16c   :  { %3559 = vmatpush1.bf16.msra.mxu0 %v5480_v22  ;;  %3887 = vmatpush1.bf16.msra.mxu1 %v5483_v23  ;;  %v5567_v22 = vld [vmem:[#allocation5 + $0xa28] ss:$16 sps:$4 sm:$0xff]   ;;  %v5572_v23 = vld [vmem:[#allocation5 + $0xa44] ss:$16 sps:$4 sm:$0xff]  }
 0x16d   :  { %3560 = vmatprep.subr.bf16.mxu0 %v5488_v24  ;;  %3888 = vmatprep.subr.bf16.mxu1 %v5491_v25  ;;  %v5575_v24 = vld [vmem:[#allocation5 + $0xa4c] ss:$16 sps:$4 sm:$0xff]   ;;  %v5570_v25 = vld [vmem:[#allocation5 + $0xa40] ss:$16 sps:$4 sm:$0xff]  }
 0x170   :  { %3561 = vmatpush1.bf16.msra.mxu0 %v5486_v26  ;;  %3889 = vmatpush1.bf16.msra.mxu1 %v5489_v27  ;;  %v5573_v26 = vld [vmem:[#allocation5 + $0xa48] ss:$16 sps:$4 sm:$0xff]   ;;  %v5578_v27 = vld [vmem:[#allocation5 + $0xa64] ss:$16 sps:$4 sm:$0xff]  }
 0x171   :  { %3562 = vmatprep.subr.bf16.mxu0 %v5494_v28  ;;  %3890 = vmatprep.subr.bf16.mxu1 %v5497_v29  ;;  %v5576_v28 = vld [vmem:[#allocation5 + $0xa60] ss:$16 sps:$4 sm:$0xff]   ;;  %v5579_v29 = vld [vmem:[#allocation5 + $0xa68] ss:$16 sps:$4 sm:$0xff]  }
 0x174   :  { %3563 = vmatpush1.bf16.msra.mxu0 %v5492_v30  ;;  %3891 = vmatpush1.bf16.msra.mxu1 %v5495_v31  ;;  %v5584_v30 = vld [vmem:[#allocation5 + $0xa84] ss:$16 sps:$4 sm:$0xff]   ;;  %v5587_v31 = vld [vmem:[#allocation5 + $0xa8c] ss:$16 sps:$4 sm:$0xff]  }
 0x175   :  { %3564 = vmatprep.subr.bf16.mxu0 %v5500_v32  ;;  %3892 = vmatprep.subr.bf16.mxu1 %v5503_v33  ;;  %v5582_v32 = vld [vmem:[#allocation5 + $0xa80] ss:$16 sps:$4 sm:$0xff]   ;;  %v5585_v33 = vld [vmem:[#allocation5 + $0xa88] ss:$16 sps:$4 sm:$0xff]  }
 0x178   :  { %3565 = vmatpush1.bf16.msra.mxu0 %v5498_v34  ;;  %3893 = vmatpush1.bf16.msra.mxu1 %v5501_v35  ;;  %v5590_v34 = vld [vmem:[#allocation5 + $0xaa4] ss:$16 sps:$4 sm:$0xff]   ;;  %v5593_v35 = vld [vmem:[#allocation5 + $0xaac] ss:$16 sps:$4 sm:$0xff]  }
 0x179   :  { %3566 = vmatprep.subr.bf16.mxu0 %v5506_v38  ;;  %3894 = vmatprep.subr.bf16.mxu1 %v5509_v39  ;;  %v5588_v38 = vld [vmem:[#allocation5 + $0xaa0] ss:$16 sps:$4 sm:$0xff]   ;;  %v5591_v39 = vld [vmem:[#allocation5 + $0xaa8] ss:$16 sps:$4 sm:$0xff]  }
 0x17c   :  { %3567 = vmatpush1.bf16.msra.mxu0 %v5504_v40  ;;  %3895 = vmatpush1.bf16.msra.mxu1 %v5507_v41  ;;  %v5596_v40 = vld [vmem:[#allocation5 + $0xac4] ss:$16 sps:$4 sm:$0xff]   ;;  %v5599_v41 = vld [vmem:[#allocation5 + $0xacc] ss:$16 sps:$4 sm:$0xff]  }
 0x17d   :  { %3568 = vmatprep.subr.bf16.mxu0 %v5512_v42  ;;  %3896 = vmatprep.subr.bf16.mxu1 %v5515_v44  ;;  %v5594_v42 = vld [vmem:[#allocation5 + $0xac0] ss:$16 sps:$4 sm:$0xff]   ;;  %v5597_v44 = vld [vmem:[#allocation5 + $0xac8] ss:$16 sps:$4 sm:$0xff]  }
 0x180   :  { %3569 = vmatpush1.bf16.msra.mxu0 %v5510_v49  ;;  %3897 = vmatpush1.bf16.msra.mxu1 %v5513_v50  ;;  %v5602_v49 = vld [vmem:[#allocation5 + $0xae4] ss:$16 sps:$4 sm:$0xff]   ;;  %v5605_v50 = vld [vmem:[#allocation5 + $0xaec] ss:$16 sps:$4 sm:$0xff]  }
 0x181   :  { %3570 = vmatprep.subr.bf16.mxu0 %v5518_v36  ;;  %3898 = vmatprep.subr.bf16.mxu1 %v5521_v37  ;;  %v5600_v36 = vld [vmem:[#allocation5 + $0xae0] ss:$16 sps:$4 sm:$0xff]   ;;  %v5603_v37 = vld [vmem:[#allocation5 + $0xae8] ss:$16 sps:$4 sm:$0xff]  }
 0x184   :  { %3571 = vmatpush1.bf16.msra.mxu0 %v5516_v16  ;;  %3899 = vmatpush1.bf16.msra.mxu1 %v5519_v17  ;;  %v5608_v16 = vld [vmem:[#allocation5 + $0xb04] ss:$16 sps:$4 sm:$0xff]   ;;  %v5611_v17 = vld [vmem:[#allocation5 + $0xb0c] ss:$16 sps:$4 sm:$0xff]  }
 0x185   :  { %3572 = vmatprep.subr.bf16.mxu0 %v5524_v51  ;;  %3900 = vmatprep.subr.bf16.mxu1 %v5527_v52  ;;  %v5606_v51 = vld [vmem:[#allocation5 + $0xb00] ss:$16 sps:$4 sm:$0xff]   ;;  %v5609_v52 = vld [vmem:[#allocation5 + $0xb08] ss:$16 sps:$4 sm:$0xff]  }
 0x188   :  { %3573 = vmatpush1.bf16.msra.mxu0 %v5522_v53  ;;  %3901 = vmatpush1.bf16.msra.mxu1 %v5525_v55  ;;  %v5614_v53 = vld [vmem:[#allocation5 + $0xb24] ss:$16 sps:$4 sm:$0xff]   ;;  %v5617_v55 = vld [vmem:[#allocation5 + $0xb2c] ss:$16 sps:$4 sm:$0xff]  }
 0x189   :  { %3574 = vmatprep.subr.bf16.mxu0 %v5530_v56  ;;  %3902 = vmatprep.subr.bf16.mxu1 %v5533_v57  ;;  %v5612_v56 = vld [vmem:[#allocation5 + $0xb20] ss:$16 sps:$4 sm:$0xff]   ;;  %v5615_v57 = vld [vmem:[#allocation5 + $0xb28] ss:$16 sps:$4 sm:$0xff]  }
 0x18c   :  { %3575 = vmatpush1.bf16.msra.mxu0 %v5528_v43  ;;  %3903 = vmatpush1.bf16.msra.mxu1 %v5531_v45  ;;  %v5620_v43 = vld [vmem:[#allocation5 + $0xb44] ss:$16 sps:$4 sm:$0xff]   ;;  %v5623_v45 = vld [vmem:[#allocation5 + $0xb4c] ss:$16 sps:$4 sm:$0xff]  }
 0x18d   :  { %3576 = vmatprep.subr.bf16.mxu0 %v5536_v60  ;;  %3904 = vmatprep.subr.bf16.mxu1 %v5539_v61  ;;  %v5618_v60 = vld [vmem:[#allocation5 + $0xb40] ss:$16 sps:$4 sm:$0xff]   ;;  %v5621_v61 = vld [vmem:[#allocation5 + $0xb48] ss:$16 sps:$4 sm:$0xff]  }
 0x190   :  { %3577 = vmatpush1.bf16.msra.mxu0 %v5534_v62  ;;  %3905 = vmatpush1.bf16.msra.mxu1 %v5537_v63  ;;  %v5626_v62 = vld [vmem:[#allocation5 + $0xb64] ss:$16 sps:$4 sm:$0xff]   ;;  %v5629_v63 = vld [vmem:[#allocation5 + $0xb6c] ss:$16 sps:$4 sm:$0xff]  }
 0x191   :  { %3578 = vmatprep.subr.bf16.mxu0 %v5542_v0  ;;  %3906 = vmatprep.subr.bf16.mxu1 %v5545_v1  ;;  %v5624_v0 = vld [vmem:[#allocation5 + $0xb60] ss:$16 sps:$4 sm:$0xff]   ;;  %v5627_v1 = vld [vmem:[#allocation5 + $0xb68] ss:$16 sps:$4 sm:$0xff]  }
 0x194   :  { %3579 = vmatpush1.bf16.msra.mxu0 %v5540_v2  ;;  %3907 = vmatpush1.bf16.msra.mxu1 %v5543_v3  ;;  %v5632_v2 = vld [vmem:[#allocation5 + $0xb84] ss:$16 sps:$4 sm:$0xff]   ;;  %v5635_v3 = vld [vmem:[#allocation5 + $0xb8c] ss:$16 sps:$4 sm:$0xff]  }
 0x195   :  { %3580 = vmatprep.subr.bf16.mxu0 %v5548_v4  ;;  %3908 = vmatprep.subr.bf16.mxu1 %v5551_v5  ;;  %v5630_v4 = vld [vmem:[#allocation5 + $0xb80] ss:$16 sps:$4 sm:$0xff]   ;;  %v5633_v5 = vld [vmem:[#allocation5 + $0xb88] ss:$16 sps:$4 sm:$0xff]  }
 0x198   :  { %3581 = vmatpush1.bf16.msra.mxu0 %v5546_v6  ;;  %3909 = vmatpush1.bf16.msra.mxu1 %v5549_v7  ;;  %v5638_v6 = vld [vmem:[#allocation5 + $0xba4] ss:$16 sps:$4 sm:$0xff]   ;;  %v5641_v7 = vld [vmem:[#allocation5 + $0xbac] ss:$16 sps:$4 sm:$0xff]  }
 0x199   :  { %3582 = vmatprep.subr.bf16.mxu0 %v5554_v8  ;;  %3910 = vmatprep.subr.bf16.mxu1 %v5557_v47  ;;  %v89_v8 = vld [vmem:[#allocation2 + $0x18] sm:$0xff] }
 0x19a   :  { %v93_v47 = vld [vmem:[#allocation2 + $0x38] sm:$0xff] }
 0x19c   :  { %3583 = vmatpush1.bf16.msra.mxu0 %v5552_v11  ;;  %3911 = vmatpush1.bf16.msra.mxu1 %v5555_v12  ;;  %v101_v11 = vld [vmem:[#allocation2 + $0x78] sm:$0xff]  ;;  %v5636_v12 = vld [vmem:[#allocation5 + $0xba0] ss:$16 sps:$4 sm:$0xff]  }
 0x19d   :  { %3593 = vmatprep.subr.bf16.mxu0 %v5560_v13  ;;  %3921 = vmatprep.subr.bf16.mxu1 %v5563_v14  ;;  %v5639_v13 = vld [vmem:[#allocation5 + $0xba8] ss:$16 sps:$4 sm:$0xff]   ;;  %v5644_v14 = vld [vmem:[#allocation5 + $0xbc4] ss:$16 sps:$4 sm:$0xff]  }
 0x19f   :  { %3585 = vmatmul.mubr.bf16.vlgmr.msra.gmra.mrb[0].mxu0 %v286_v15  ;;  %3913 = vmatmul.mubr.bf16.vlgmr.msra.gmra.mrb[0].mxu1 %v286_v15  ;;  %v5647_v15 = vld [vmem:[#allocation5 + $0xbcc] ss:$16 sps:$4 sm:$0xff]  }
 0x1a0   :  { %3594 = vmatpush1.bf16.msra.mxu0 %v5558_v18  ;;  %3922 = vmatpush1.bf16.msra.mxu1 %v5561_v19  ;;  %v226_v18 = vcombine.low %v89_v8, %v93_v47  ;;  %v228_v19 = vcombine.low %v97_v10, %v101_v11 }
 0x1a1   :  { %3595 = vmatprep.subr.bf16.mxu0 %v5566_v20  ;;  %3923 = vmatprep.subr.bf16.mxu1 %v5569_v21  ;;  %v5642_v20 = vld [vmem:[#allocation5 + $0xbc0] ss:$16 sps:$4 sm:$0xff]   ;;  %v5645_v21 = vld [vmem:[#allocation5 + $0xbc8] ss:$16 sps:$4 sm:$0xff]  }
 0x1a2   :  { %3625 = vmatprep.mubr.bf16.mxu0 %v289_v58  ;;  %3953 = vmatprep.mubr.bf16.mxu1 %v289_v58  ;;  %v5650_v58 = vld [vmem:[#allocation5 + $0xbe4] ss:$16 sps:$4 sm:$0xff]  }
 0x1a4   :  { %3596 = vmatpush1.bf16.msra.mxu0 %v5564_v59  ;;  %3924 = vmatpush1.bf16.msra.mxu1 %v5567_v22  ;;  %v5653_v59 = vld [vmem:[#allocation5 + $0xbec] ss:$16 sps:$4 sm:$0xff]   ;;  %v6195_v22 = vrot.slane %v226_v18, %v6126_v54  ;;  %v5722_v18 = vld [vmem:[#allocation5 + $0xd64] ss:$16 sps:$4 sm:$0xff]  }
 0x1a5   :  { %3597 = vmatprep.subr.bf16.mxu0 %v5572_v23  ;;  %3925 = vmatprep.subr.bf16.mxu1 %v5575_v24  ;;  %v6198_v23 = vrot.slane %v228_v19, %v6126_v54  ;;  %v227_v24 = vcombine.high %v89_v8, %v93_v47  ;;  %v5710_v8 = vld [vmem:[#allocation5 + $0xd24] ss:$16 sps:$4 sm:$0xff]   ;;  %v5713_v47 = vld [vmem:[#allocation5 + $0xd2c] ss:$16 sps:$4 sm:$0xff]  }
 0x1a6   :  { %v5725_v19 = vld [vmem:[#allocation5 + $0xd6c] ss:$16 sps:$4 sm:$0xff]  }
 0x1a8   :  { %3598 = vmatpush1.bf16.msra.mxu0 %v5570_v25  ;;  %3926 = vmatpush1.bf16.msra.mxu1 %v5573_v26  ;;  %v229_v25 = vcombine.high %v97_v10, %v101_v11  ;;  %v5648_v26 = vld [vmem:[#allocation5 + $0xbe0] ss:$16 sps:$4 sm:$0xff]   ;;  %v5711_v11 = vld [vmem:[#allocation5 + $0xd28] ss:$16 sps:$4 sm:$0xff]  }
 0x1a9   :  { %3599 = vmatprep.subr.bf16.mxu0 %v5578_v27  ;;  %3927 = vmatprep.subr.bf16.mxu1 %v5581_v9  ;;  %v5651_v27 = vld [vmem:[#allocation5 + $0xbe8] ss:$16 sps:$4 sm:$0xff]   ;;  %v243_v9 = vrot.slane %v227_v24, %v6126_v54  ;;  %v5708_v10 = vld [vmem:[#allocation5 + $0xd20] ss:$16 sps:$4 sm:$0xff]  }
 0x1aa   :  { %v5726_v24 = vld [vmem:[#allocation5 + $0xd80] ss:$16 sps:$4 sm:$0xff]  }
 0x1ac   :  { %3600 = vmatpush1.bf16.msra.mxu0 %v5576_v28  ;;  %3928 = vmatpush1.bf16.msra.mxu1 %v5579_v29  ;;  %v257_v28 = vrot.slane %v229_v25, %v6126_v54  ;;  %v5656_v29 = vld [vmem:[#allocation5 + $0xc04] ss:$16 sps:$4 sm:$0xff]   ;;  %v5729_v25 = vld [vmem:[#allocation5 + $0xd88] ss:$16 sps:$4 sm:$0xff]  }
 0x1ad   :  { %3601 = vmatprep.subr.bf16.mxu0 %v5584_v30  ;;  %3929 = vmatprep.subr.bf16.mxu1 %v5587_v31  ;;  %v5659_v30 = vld [vmem:[#allocation5 + $0xc0c] ss:$16 sps:$4 sm:$0xff]   ;;  %v259_v31 = vcombine.high %v6195_v22, %v6198_v23  ;;  %v5662_v54 = vld [vmem:[#allocation5 + $0xc24] ss:$16 sps:$4 sm:$0xff]  }
 0x1b0   :  { %3602 = vmatpush1.bf16.msra.mxu0 %v5582_v32  ;;  %3930 = vmatpush1.bf16.msra.mxu1 %v5585_v33  ;;  %v6204_v32 = vcombine.high %v243_v9, %v257_v28  ;;  %v288_v33 = vpack.c.bf16 %v6188_v48, %v6188_v48  ;;  %v5668_v48 = vld [vmem:[#allocation5 + $0xc44] ss:$16 sps:$4 sm:$0xff]  }
 0x1b1   :  { %3603 = vmatprep.subr.bf16.mxu0 %v5590_v34  ;;  %3931 = vmatprep.subr.bf16.mxu1 %v5593_v35  ;;  %v6208_v34 = vcombine.low %v243_v9, %v257_v28  ;;  %v5654_v35 = vld [vmem:[#allocation5 + $0xc00] ss:$16 sps:$4 sm:$0xff]   ;;  %v5735_v28 = vld [vmem:[#allocation5 + $0xda8] ss:$16 sps:$4 sm:$0xff]  }
 0x1b2   :  { %v5732_v9 = vld [vmem:[#allocation5 + $0xda0] ss:$16 sps:$4 sm:$0xff]  }
 0x1b4   :  { %3604 = vmatpush1.bf16.msra.mxu0 %v5588_v38  ;;  %3932 = vmatpush1.bf16.msra.mxu1 %v5591_v39  ;;  %v5657_v38 = vld [vmem:[#allocation5 + $0xc08] ss:$16 sps:$4 sm:$0xff]   ;;  %v5665_v39 = vld [vmem:[#allocation5 + $0xc2c] ss:$16 sps:$4 sm:$0xff]  }
 0x1b5   :  { %3605 = vmatprep.subr.bf16.mxu0 %v5596_v40  ;;  %3933 = vmatprep.subr.bf16.mxu1 %v5599_v41  ;;  %v291_v40 = vpack.c.bf16 %v259_v31, %v259_v31  ;;  %v5660_v41 = vld [vmem:[#allocation5 + $0xc20] ss:$16 sps:$4 sm:$0xff]  }
 0x1b6   :  { %v5738_v31 = vld [vmem:[#allocation5 + $0xdc0] ss:$16 sps:$4 sm:$0xff]  }
 0x1b8   :  { %3606 = vmatpush1.bf16.msra.mxu0 %v5594_v42  ;;  %3934 = vmatpush1.bf16.msra.mxu1 %v5597_v44  ;;  %v5663_v42 = vld [vmem:[#allocation5 + $0xc28] ss:$16 sps:$4 sm:$0xff]   ;;  %v5671_v44 = vld [vmem:[#allocation5 + $0xc4c] ss:$16 sps:$4 sm:$0xff]  }
 0x1b9   :  { %3607 = vmatprep.subr.bf16.mxu0 %v5602_v49  ;;  %3935 = vmatprep.subr.bf16.mxu1 %v5605_v50  ;;  %v5666_v49 = vld [vmem:[#allocation5 + $0xc40] ss:$16 sps:$4 sm:$0xff]   ;;  %v5669_v50 = vld [vmem:[#allocation5 + $0xc48] ss:$16 sps:$4 sm:$0xff]  }
 0x1bc   :  { %3608 = vmatpush1.bf16.msra.mxu0 %v5600_v36  ;;  %3936 = vmatpush1.bf16.msra.mxu1 %v5603_v37  ;;  %v5674_v36 = vld [vmem:[#allocation5 + $0xc64] ss:$16 sps:$4 sm:$0xff]   ;;  %v5677_v37 = vld [vmem:[#allocation5 + $0xc6c] ss:$16 sps:$4 sm:$0xff]  }
 0x1bd   :  { %3609 = vmatprep.subr.bf16.mxu0 %v5608_v16  ;;  %3937 = vmatprep.subr.bf16.mxu1 %v5611_v17  ;;  %v5672_v16 = vld [vmem:[#allocation5 + $0xc60] ss:$16 sps:$4 sm:$0xff]   ;;  %v5675_v17 = vld [vmem:[#allocation5 + $0xc68] ss:$16 sps:$4 sm:$0xff]  }
 0x1c0   :  { %3610 = vmatpush1.bf16.msra.mxu0 %v5606_v51  ;;  %3938 = vmatpush1.bf16.msra.mxu1 %v5609_v52  ;;  %v5680_v51 = vld [vmem:[#allocation5 + $0xc84] ss:$16 sps:$4 sm:$0xff]   ;;  %v5683_v52 = vld [vmem:[#allocation5 + $0xc8c] ss:$16 sps:$4 sm:$0xff]  }
 0x1c1   :  { %3611 = vmatprep.subr.bf16.mxu0 %v5614_v53  ;;  %3939 = vmatprep.subr.bf16.mxu1 %v5617_v55  ;;  %v5678_v53 = vld [vmem:[#allocation5 + $0xc80] ss:$16 sps:$4 sm:$0xff]   ;;  %v5681_v55 = vld [vmem:[#allocation5 + $0xc88] ss:$16 sps:$4 sm:$0xff]  }
 0x1c4   :  { %3612 = vmatpush1.bf16.msra.mxu0 %v5612_v56  ;;  %3940 = vmatpush1.bf16.msra.mxu1 %v5615_v57  ;;  %v5686_v56 = vld [vmem:[#allocation5 + $0xca4] ss:$16 sps:$4 sm:$0xff]   ;;  %v5689_v57 = vld [vmem:[#allocation5 + $0xcac] ss:$16 sps:$4 sm:$0xff]  }
 0x1c5   :  { %3613 = vmatprep.subr.bf16.mxu0 %v5620_v43  ;;  %3941 = vmatprep.subr.bf16.mxu1 %v5623_v45  ;;  %v5684_v43 = vld [vmem:[#allocation5 + $0xca0] ss:$16 sps:$4 sm:$0xff]   ;;  %v5687_v45 = vld [vmem:[#allocation5 + $0xca8] ss:$16 sps:$4 sm:$0xff]  }
 0x1c8   :  { %3614 = vmatpush1.bf16.msra.mxu0 %v5618_v60  ;;  %3942 = vmatpush1.bf16.msra.mxu1 %v5621_v61  ;;  %v5692_v60 = vld [vmem:[#allocation5 + $0xcc4] ss:$16 sps:$4 sm:$0xff]   ;;  %v5695_v61 = vld [vmem:[#allocation5 + $0xccc] ss:$16 sps:$4 sm:$0xff]  }
 0x1c9   :  { %3615 = vmatprep.subr.bf16.mxu0 %v5626_v62  ;;  %3943 = vmatprep.subr.bf16.mxu1 %v5629_v63  ;;  %v5690_v62 = vld [vmem:[#allocation5 + $0xcc0] ss:$16 sps:$4 sm:$0xff]   ;;  %v5693_v63 = vld [vmem:[#allocation5 + $0xcc8] ss:$16 sps:$4 sm:$0xff]  }
 0x1cc   :  { %3616 = vmatpush1.bf16.msra.mxu0 %v5624_v0  ;;  %3944 = vmatpush1.bf16.msra.mxu1 %v5627_v1  ;;  %v5698_v0 = vld [vmem:[#allocation5 + $0xce4] ss:$16 sps:$4 sm:$0xff]   ;;  %v5701_v1 = vld [vmem:[#allocation5 + $0xcec] ss:$16 sps:$4 sm:$0xff]  }
 0x1cd   :  { %3617 = vmatprep.subr.bf16.mxu0 %v5632_v2  ;;  %3945 = vmatprep.subr.bf16.mxu1 %v5635_v3  ;;  %v5696_v2 = vld [vmem:[#allocation5 + $0xce0] ss:$16 sps:$4 sm:$0xff]   ;;  %v5699_v3 = vld [vmem:[#allocation5 + $0xce8] ss:$16 sps:$4 sm:$0xff]  }
 0x1d0   :  { %3618 = vmatpush1.bf16.msra.mxu0 %v5630_v4  ;;  %3946 = vmatpush1.bf16.msra.mxu1 %v5633_v5  ;;  %v5704_v4 = vld [vmem:[#allocation5 + $0xd04] ss:$16 sps:$4 sm:$0xff]   ;;  %v5707_v5 = vld [vmem:[#allocation5 + $0xd0c] ss:$16 sps:$4 sm:$0xff]  }
 0x1d1   :  { %3619 = vmatprep.subr.bf16.mxu0 %v5638_v6  ;;  %3947 = vmatprep.subr.bf16.mxu1 %v5641_v7  ;;  %v5702_v6 = vld [vmem:[#allocation5 + $0xd00] ss:$16 sps:$4 sm:$0xff]   ;;  %v5705_v7 = vld [vmem:[#allocation5 + $0xd08] ss:$16 sps:$4 sm:$0xff]  }
 0x1d4   :  { %3620 = vmatpush1.bf16.msra.mxu0 %v5636_v12  ;;  %3948 = vmatpush1.bf16.msra.mxu1 %v5639_v13  ;;  %v5716_v12 = vld [vmem:[#allocation5 + $0xd44] ss:$16 sps:$4 sm:$0xff]   ;;  %v5719_v13 = vld [vmem:[#allocation5 + $0xd4c] ss:$16 sps:$4 sm:$0xff]  }
 0x1d5   :  { %3621 = vmatprep.subr.bf16.mxu0 %v5644_v14  ;;  %3949 = vmatprep.subr.bf16.mxu1 %v5647_v15  ;;  %v5714_v14 = vld [vmem:[#allocation5 + $0xd40] ss:$16 sps:$4 sm:$0xff]   ;;  %v5717_v15 = vld [vmem:[#allocation5 + $0xd48] ss:$16 sps:$4 sm:$0xff]  }
 0x1d8   :  { %3622 = vmatpush1.bf16.msra.mxu0 %v5642_v20  ;;  %3950 = vmatpush1.bf16.msra.mxu1 %v5645_v21  ;;  %v5720_v20 = vld [vmem:[#allocation5 + $0xd60] ss:$16 sps:$4 sm:$0xff]   ;;  %v5723_v21 = vld [vmem:[#allocation5 + $0xd68] ss:$16 sps:$4 sm:$0xff]  }
 0x1d9   :  { %3623 = vmatprep.subr.bf16.mxu0 %v5650_v58  ;;  %3951 = vmatprep.subr.bf16.mxu1 %v5653_v59  ;;  %v5728_v58 = vld [vmem:[#allocation5 + $0xd84] ss:$16 sps:$4 sm:$0xff]   ;;  %v5731_v59 = vld [vmem:[#allocation5 + $0xd8c] ss:$16 sps:$4 sm:$0xff]  }
 0x1dc   :  { %3624 = vmatpush1.bf16.msra.mxu0 %v5648_v26  ;;  %3952 = vmatpush1.bf16.msra.mxu1 %v5651_v27  ;;  %v5734_v26 = vld [vmem:[#allocation5 + $0xda4] ss:$16 sps:$4 sm:$0xff]   ;;  %v5737_v27 = vld [vmem:[#allocation5 + $0xdac] ss:$16 sps:$4 sm:$0xff]  }
 0x1dd   :  { %3634 = vmatprep.subr.bf16.mxu0 %v5656_v29  ;;  %3962 = vmatprep.subr.bf16.mxu1 %v5659_v30  ;;  %v5740_v29 = vld [vmem:[#allocation5 + $0xdc4] ss:$16 sps:$4 sm:$0xff]   ;;  %v5743_v30 = vld [vmem:[#allocation5 + $0xdcc] ss:$16 sps:$4 sm:$0xff]  }
 0x1df   :  { %3626 = vmatmul.mubr.bf16.vlgmr.msra.gmra.mrb[0].mxu0 %v288_v33  ;;  %3954 = vmatmul.mubr.bf16.vlgmr.msra.gmra.mrb[0].mxu1 %v288_v33  ;;  %v5741_v33 = vld [vmem:[#allocation5 + $0xdc8] ss:$16 sps:$4 sm:$0xff]  }
 0x1e0   :  { %3635 = vmatpush1.bf16.msra.mxu0 %v5654_v35  ;;  %3963 = vmatpush1.bf16.msra.mxu1 %v5657_v38  ;;  %v5746_v35 = vld [vmem:[#allocation5 + $0xde4] ss:$16 sps:$4 sm:$0xff]   ;;  %v5749_v38 = vld [vmem:[#allocation5 + $0xdec] ss:$16 sps:$4 sm:$0xff]  }
 0x1e1   :  { %3636 = vmatprep.subr.bf16.mxu0 %v5662_v54  ;;  %3964 = vmatprep.subr.bf16.mxu1 %v5665_v39  ;;  %v258_v54 = vcombine.low %v6195_v22, %v6198_v23  ;;  %v5744_v39 = vld [vmem:[#allocation5 + $0xde0] ss:$16 sps:$4 sm:$0xff]   ;;  %v293_v22 = vpack.c.bf16 %v6204_v32, %v6204_v32  ;;  %v5773_v32 = vld [vmem:[#allocation5 + $0xe6c] ss:$16 sps:$4 sm:$0xff]  }
 0x1e2   :  { %3666 = vmatprep.mubr.bf16.mxu0 %v291_v40  ;;  %3994 = vmatprep.mubr.bf16.mxu1 %v291_v40  ;;  %v5747_v40 = vld [vmem:[#allocation5 + $0xde8] ss:$16 sps:$4 sm:$0xff]   ;;  %v5756_v23 = vld [vmem:[#allocation5 + $0xe20] ss:$16 sps:$4 sm:$0xff]  }
 0x1e4   :  { %3637 = vmatpush1.bf16.msra.mxu0 %v5660_v41  ;;  %3965 = vmatpush1.bf16.msra.mxu1 %v5663_v42  ;;  %v5752_v41 = vld [vmem:[#allocation5 + $0xe04] ss:$16 sps:$4 sm:$0xff]   ;;  %v5755_v42 = vld [vmem:[#allocation5 + $0xe0c] ss:$16 sps:$4 sm:$0xff]  }
 0x1e5   :  { %3638 = vmatprep.subr.bf16.mxu0 %v5668_v48  ;;  %3966 = vmatprep.subr.bf16.mxu1 %v5671_v44  ;;  %v290_v48 = vpack.c.bf16 %v258_v54, %v258_v54  ;;  %v5750_v44 = vld [vmem:[#allocation5 + $0xe00] ss:$16 sps:$4 sm:$0xff]   ;;  %v5839_v54 = vld [vmem:[#allocation5 + $0xfcc] ss:$16 sps:$4 sm:$0xff]  }
 0x1e8   :  { %3639 = vmatpush1.bf16.msra.mxu0 %v5666_v49  ;;  %3967 = vmatpush1.bf16.msra.mxu1 %v5669_v50  ;;  %v5753_v49 = vld [vmem:[#allocation5 + $0xe08] ss:$16 sps:$4 sm:$0xff]   ;;  %v5758_v50 = vld [vmem:[#allocation5 + $0xe24] ss:$16 sps:$4 sm:$0xff]  }
 0x1e9   :  { %3640 = vmatprep.subr.bf16.mxu0 %v5674_v36  ;;  %3968 = vmatprep.subr.bf16.mxu1 %v5677_v37  ;;  %v5761_v36 = vld [vmem:[#allocation5 + $0xe2c] ss:$16 sps:$4 sm:$0xff]   ;;  %v5759_v37 = vld [vmem:[#allocation5 + $0xe28] ss:$16 sps:$4 sm:$0xff]  }
 0x1ec   :  { %3641 = vmatpush1.bf16.msra.mxu0 %v5672_v16  ;;  %3969 = vmatpush1.bf16.msra.mxu1 %v5675_v17  ;;  %v5764_v16 = vld [vmem:[#allocation5 + $0xe44] ss:$16 sps:$4 sm:$0xff]   ;;  %v5767_v17 = vld [vmem:[#allocation5 + $0xe4c] ss:$16 sps:$4 sm:$0xff]  }
 0x1ed   :  { %3642 = vmatprep.subr.bf16.mxu0 %v5680_v51  ;;  %3970 = vmatprep.subr.bf16.mxu1 %v5683_v52  ;;  %v5762_v51 = vld [vmem:[#allocation5 + $0xe40] ss:$16 sps:$4 sm:$0xff]   ;;  %v5765_v52 = vld [vmem:[#allocation5 + $0xe48] ss:$16 sps:$4 sm:$0xff]  }
 0x1f0   :  { %3643 = vmatpush1.bf16.msra.mxu0 %v5678_v53  ;;  %3971 = vmatpush1.bf16.msra.mxu1 %v5681_v55  ;;  %v5770_v53 = vld [vmem:[#allocation5 + $0xe64] ss:$16 sps:$4 sm:$0xff]   ;;  %v5768_v55 = vld [vmem:[#allocation5 + $0xe60] ss:$16 sps:$4 sm:$0xff]  }
 0x1f1   :  { %3644 = vmatprep.subr.bf16.mxu0 %v5686_v56  ;;  %3972 = vmatprep.subr.bf16.mxu1 %v5689_v57  ;;  %v5771_v56 = vld [vmem:[#allocation5 + $0xe68] ss:$16 sps:$4 sm:$0xff]   ;;  %v5776_v57 = vld [vmem:[#allocation5 + $0xe84] ss:$16 sps:$4 sm:$0xff]  }
 0x1f4   :  { %3645 = vmatpush1.bf16.msra.mxu0 %v5684_v43  ;;  %3973 = vmatpush1.bf16.msra.mxu1 %v5687_v45  ;;  %v5779_v43 = vld [vmem:[#allocation5 + $0xe8c] ss:$16 sps:$4 sm:$0xff]   ;;  %v5774_v45 = vld [vmem:[#allocation5 + $0xe80] ss:$16 sps:$4 sm:$0xff]  }
 0x1f5   :  { %3646 = vmatprep.subr.bf16.mxu0 %v5692_v60  ;;  %3974 = vmatprep.subr.bf16.mxu1 %v5695_v61  ;;  %v5777_v60 = vld [vmem:[#allocation5 + $0xe88] ss:$16 sps:$4 sm:$0xff]   ;;  %v5782_v61 = vld [vmem:[#allocation5 + $0xea4] ss:$16 sps:$4 sm:$0xff]  }
 0x1f8   :  { %3647 = vmatpush1.bf16.msra.mxu0 %v5690_v62  ;;  %3975 = vmatpush1.bf16.msra.mxu1 %v5693_v63  ;;  %v5785_v62 = vld [vmem:[#allocation5 + $0xeac] ss:$16 sps:$4 sm:$0xff]   ;;  %v5780_v63 = vld [vmem:[#allocation5 + $0xea0] ss:$16 sps:$4 sm:$0xff]  }
 0x1f9   :  { %3648 = vmatprep.subr.bf16.mxu0 %v5698_v0  ;;  %3976 = vmatprep.subr.bf16.mxu1 %v5701_v1  ;;  %v5783_v0 = vld [vmem:[#allocation5 + $0xea8] ss:$16 sps:$4 sm:$0xff]   ;;  %v5788_v1 = vld [vmem:[#allocation5 + $0xec4] ss:$16 sps:$4 sm:$0xff]  }
 0x1fc   :  { %3649 = vmatpush1.bf16.msra.mxu0 %v5696_v2  ;;  %3977 = vmatpush1.bf16.msra.mxu1 %v5699_v3  ;;  %v5791_v2 = vld [vmem:[#allocation5 + $0xecc] ss:$16 sps:$4 sm:$0xff]   ;;  %v5786_v3 = vld [vmem:[#allocation5 + $0xec0] ss:$16 sps:$4 sm:$0xff]  }
 0x1fd   :  { %3650 = vmatprep.subr.bf16.mxu0 %v5704_v4  ;;  %3978 = vmatprep.subr.bf16.mxu1 %v5707_v5  ;;  %v5789_v4 = vld [vmem:[#allocation5 + $0xec8] ss:$16 sps:$4 sm:$0xff]   ;;  %v5794_v5 = vld [vmem:[#allocation5 + $0xee4] ss:$16 sps:$4 sm:$0xff]  }
 0x200   :  { %3651 = vmatpush1.bf16.msra.mxu0 %v5702_v6  ;;  %3979 = vmatpush1.bf16.msra.mxu1 %v5705_v7  ;;  %v5797_v6 = vld [vmem:[#allocation5 + $0xeec] ss:$16 sps:$4 sm:$0xff]   ;;  %v5792_v7 = vld [vmem:[#allocation5 + $0xee0] ss:$16 sps:$4 sm:$0xff]  }
 0x201   :  { %3652 = vmatprep.subr.bf16.mxu0 %v5710_v8  ;;  %3980 = vmatprep.subr.bf16.mxu1 %v5713_v47  ;;  %v5795_v8 = vld [vmem:[#allocation5 + $0xee8] ss:$16 sps:$4 sm:$0xff]   ;;  %v5800_v47 = vld [vmem:[#allocation5 + $0xf04] ss:$16 sps:$4 sm:$0xff]  }
 0x204   :  { %3653 = vmatpush1.bf16.msra.mxu0 %v5708_v10  ;;  %3981 = vmatpush1.bf16.msra.mxu1 %v5711_v11  ;;  %v5803_v10 = vld [vmem:[#allocation5 + $0xf0c] ss:$16 sps:$4 sm:$0xff]   ;;  %v5798_v11 = vld [vmem:[#allocation5 + $0xf00] ss:$16 sps:$4 sm:$0xff]  }
 0x205   :  { %3654 = vmatprep.subr.bf16.mxu0 %v5716_v12  ;;  %3982 = vmatprep.subr.bf16.mxu1 %v5719_v13  ;;  %v5801_v12 = vld [vmem:[#allocation5 + $0xf08] ss:$16 sps:$4 sm:$0xff]   ;;  %v5806_v13 = vld [vmem:[#allocation5 + $0xf24] ss:$16 sps:$4 sm:$0xff]  }
 0x208   :  { %3655 = vmatpush1.bf16.msra.mxu0 %v5714_v14  ;;  %3983 = vmatpush1.bf16.msra.mxu1 %v5717_v15  ;;  %v5809_v14 = vld [vmem:[#allocation5 + $0xf2c] ss:$16 sps:$4 sm:$0xff]   ;;  %v5804_v15 = vld [vmem:[#allocation5 + $0xf20] ss:$16 sps:$4 sm:$0xff]  }
 0x209   :  { %3656 = vmatprep.subr.bf16.mxu0 %v5722_v18  ;;  %3984 = vmatprep.subr.bf16.mxu1 %v5725_v19  ;;  %v5807_v18 = vld [vmem:[#allocation5 + $0xf28] ss:$16 sps:$4 sm:$0xff]   ;;  %v5812_v19 = vld [vmem:[#allocation5 + $0xf44] ss:$16 sps:$4 sm:$0xff]  }
 0x20c   :  { %3657 = vmatpush1.bf16.msra.mxu0 %v5720_v20  ;;  %3985 = vmatpush1.bf16.msra.mxu1 %v5723_v21  ;;  %v5815_v20 = vld [vmem:[#allocation5 + $0xf4c] ss:$16 sps:$4 sm:$0xff]   ;;  %v5810_v21 = vld [vmem:[#allocation5 + $0xf40] ss:$16 sps:$4 sm:$0xff]  }
 0x20d   :  { %3658 = vmatprep.subr.bf16.mxu0 %v5728_v58  ;;  %3986 = vmatprep.subr.bf16.mxu1 %v5731_v59  ;;  %v5813_v58 = vld [vmem:[#allocation5 + $0xf48] ss:$16 sps:$4 sm:$0xff]   ;;  %v5818_v59 = vld [vmem:[#allocation5 + $0xf64] ss:$16 sps:$4 sm:$0xff]  }
 0x210   :  { %3659 = vmatpush1.bf16.msra.mxu0 %v5726_v24  ;;  %3987 = vmatpush1.bf16.msra.mxu1 %v5729_v25  ;;  %v5821_v24 = vld [vmem:[#allocation5 + $0xf6c] ss:$16 sps:$4 sm:$0xff]   ;;  %v5816_v25 = vld [vmem:[#allocation5 + $0xf60] ss:$16 sps:$4 sm:$0xff]  }
 0x211   :  { %3660 = vmatprep.subr.bf16.mxu0 %v5734_v26  ;;  %3988 = vmatprep.subr.bf16.mxu1 %v5737_v27  ;;  %v5819_v26 = vld [vmem:[#allocation5 + $0xf68] ss:$16 sps:$4 sm:$0xff]   ;;  %v5824_v27 = vld [vmem:[#allocation5 + $0xf84] ss:$16 sps:$4 sm:$0xff]  }
 0x214   :  { %3661 = vmatpush1.bf16.msra.mxu0 %v5732_v9  ;;  %3989 = vmatpush1.bf16.msra.mxu1 %v5735_v28  ;;  %v5827_v9 = vld [vmem:[#allocation5 + $0xf8c] ss:$16 sps:$4 sm:$0xff]   ;;  %v5822_v28 = vld [vmem:[#allocation5 + $0xf80] ss:$16 sps:$4 sm:$0xff]  }
 0x215   :  { %3662 = vmatprep.subr.bf16.mxu0 %v5740_v29  ;;  %3990 = vmatprep.subr.bf16.mxu1 %v5743_v30  ;;  %v5825_v29 = vld [vmem:[#allocation5 + $0xf88] ss:$16 sps:$4 sm:$0xff]   ;;  %v5830_v30 = vld [vmem:[#allocation5 + $0xfa4] ss:$16 sps:$4 sm:$0xff]  }
 0x218   :  { %3663 = vmatpush1.bf16.msra.mxu0 %v5738_v31  ;;  %3991 = vmatpush1.bf16.msra.mxu1 %v5741_v33  ;;  %v5833_v31 = vld [vmem:[#allocation5 + $0xfac] ss:$16 sps:$4 sm:$0xff]   ;;  %v5828_v33 = vld [vmem:[#allocation5 + $0xfa0] ss:$16 sps:$4 sm:$0xff]  }
 0x219   :  { %3664 = vmatprep.subr.bf16.mxu0 %v5746_v35  ;;  %3992 = vmatprep.subr.bf16.mxu1 %v5749_v38  ;;  %v5831_v35 = vld [vmem:[#allocation5 + $0xfa8] ss:$16 sps:$4 sm:$0xff]   ;;  %v5836_v38 = vld [vmem:[#allocation5 + $0xfc4] ss:$16 sps:$4 sm:$0xff]  }
 0x21c   :  { %3665 = vmatpush1.bf16.msra.mxu0 %v5744_v39  ;;  %3993 = vmatpush1.bf16.msra.mxu1 %v5747_v40  ;;  %v5834_v39 = vld [vmem:[#allocation5 + $0xfc0] ss:$16 sps:$4 sm:$0xff]   ;;  %v5837_v40 = vld [vmem:[#allocation5 + $0xfc8] ss:$16 sps:$4 sm:$0xff]  }
 0x21d   :  { %3675 = vmatprep.subr.bf16.mxu0 %v5752_v41  ;;  %4003 = vmatprep.subr.bf16.mxu1 %v5755_v42  ;;  %v5842_v41 = vld [vmem:[#allocation5 + $0xfe4] ss:$16 sps:$4 sm:$0xff]   ;;  %v5845_v42 = vld [vmem:[#allocation5 + $0xfec] ss:$16 sps:$4 sm:$0xff]  }
 0x21f   :  { %3667 = vmatmul.mubr.bf16.vlgmr.msra.gmra.mrb[0].mxu0 %v290_v48  ;;  %3995 = vmatmul.mubr.bf16.vlgmr.msra.gmra.mrb[0].mxu1 %v290_v48  ;;  %v5840_v48 = vld [vmem:[#allocation5 + $0xfe0] ss:$16 sps:$4 sm:$0xff]  }
 0x220   :  { %3676 = vmatpush1.bf16.msra.mxu0 %v5750_v44  ;;  %4004 = vmatpush1.bf16.msra.mxu1 %v5753_v49  ;;  %v5843_v44 = vld [vmem:[#allocation5 + $0xfe8] ss:$16 sps:$4 sm:$0xff]  }
 0x221   :  { %3677 = vmatprep.subr.bf16.mxu0 %v5758_v50  ;;  %4005 = vmatprep.subr.bf16.mxu1 %v5761_v36  ;;  %v5846_v49 = vld [vmem:[#allocation8 + $0x40] sm:$0xff]   ;;  %v292_v36 = vpack.c.bf16 %v6208_v34, %v6208_v34  ;;  %v5856_v34 = vld [vmem:[#allocation8 + $0x10] sm:$0xff]  }
 0x222   :  { %3707 = vmatprep.mubr.bf16.mxu0 %v293_v22  ;;  %4035 = vmatprep.mubr.bf16.mxu1 %v293_v22  ;;  %v5847_v50 = vld [vmem:[#allocation8 + $0xc0] sm:$0xff]  }
 0x223   :  { %v5848_v22 = vld [vmem:[#allocation8] sm:$0xff]  }
 0x224   :  { %3678 = vmatpush1.bf16.msra.mxu0 %v5756_v23  ;;  %4006 = vmatpush1.bf16.msra.mxu1 %v5759_v37  ;;  %v5849_v23 = vld [vmem:[#allocation8 + $0x80] sm:$0xff]   ;;  %v5850_v37 = vld [vmem:[#allocation8 + $0x48] sm:$0xff]  }
 0x225   :  { %3679 = vmatprep.subr.bf16.mxu0 %v5764_v16  ;;  %4007 = vmatprep.subr.bf16.mxu1 %v5767_v17  ;;  %v5851_v16 = vld [vmem:[#allocation8 + $0xc8] sm:$0xff]  }
 0x226   :  { %v5852_v17 = vld [vmem:[#allocation8 + $0x8] sm:$0xff]  }
 0x228   :  { %3680 = vmatpush1.bf16.msra.mxu0 %v5762_v51  ;;  %4008 = vmatpush1.bf16.msra.mxu1 %v5765_v52  ;;  %v5853_v51 = vld [vmem:[#allocation8 + $0x88] sm:$0xff]   ;;  %v5854_v52 = vld [vmem:[#allocation8 + $0x50] sm:$0xff]  }
 0x229   :  { %3681 = vmatprep.subr.bf16.mxu0 %v5770_v53  ;;  %4009 = vmatprep.subr.bf16.mxu1 %v5773_v32  ;;  %v5855_v53 = vld [vmem:[#allocation8 + $0xd0] sm:$0xff]  }
 0x22a   :  { %v5857_v32 = vld [vmem:[#allocation8 + $0x90] sm:$0xff]  }
 0x22c   :  { %3682 = vmatpush1.bf16.msra.mxu0 %v5768_v55  ;;  %4010 = vmatpush1.bf16.msra.mxu1 %v5771_v56  ;;  %v5858_v55 = vld [vmem:[#allocation8 + $0x58] sm:$0xff]  }
 0x22d   :  { %3683 = vmatprep.subr.bf16.mxu0 %v5776_v57  ;;  %4011 = vmatprep.subr.bf16.mxu1 %v5779_v43  ;;  %v5859_v56 = vld [vmem:[#allocation8 + $0xd8] sm:$0xff]  }
 0x22e   :  { %v5860_v57 = vld [vmem:[#allocation8 + $0x18] sm:$0xff]  }
 0x22f   :  { %v5861_v43 = vld [vmem:[#allocation8 + $0x98] sm:$0xff]  }
 0x230   :  { %3684 = vmatpush1.bf16.msra.mxu0 %v5774_v45  ;;  %4012 = vmatpush1.bf16.msra.mxu1 %v5777_v60  ;;  %v5862_v45 = vld [vmem:[#allocation8 + $0x60] sm:$0xff]  }
 0x231   :  { %3685 = vmatprep.subr.bf16.mxu0 %v5782_v61  ;;  %4013 = vmatprep.subr.bf16.mxu1 %v5785_v62  ;;  %v5863_v60 = vld [vmem:[#allocation8 + $0xe0] sm:$0xff]  }
 0x232   :  { %v5864_v61 = vld [vmem:[#allocation8 + $0x20] sm:$0xff]  }
 0x233   :  { %v5865_v62 = vld [vmem:[#allocation8 + $0xa0] sm:$0xff]  }
 0x234   :  { %3686 = vmatpush1.bf16.msra.mxu0 %v5780_v63  ;;  %4014 = vmatpush1.bf16.msra.mxu1 %v5783_v0  ;;  %v5866_v63 = vld [vmem:[#allocation8 + $0x68] sm:$0xff]  }
 0x235   :  { %3687 = vmatprep.subr.bf16.mxu0 %v5788_v1  ;;  %4015 = vmatprep.subr.bf16.mxu1 %v5791_v2  ;;  %v5867_v0 = vld [vmem:[#allocation8 + $0xe8] sm:$0xff]  }
 0x236   :  { %v5868_v1 = vld [vmem:[#allocation8 + $0x28] sm:$0xff]  }
 0x237   :  { %v5869_v2 = vld [vmem:[#allocation8 + $0xa8] sm:$0xff]  }
 0x238   :  { %3688 = vmatpush1.bf16.msra.mxu0 %v5786_v3  ;;  %4016 = vmatpush1.bf16.msra.mxu1 %v5789_v4  ;;  %v5870_v3 = vld [vmem:[#allocation8 + $0x70] sm:$0xff]  }
 0x239   :  { %3689 = vmatprep.subr.bf16.mxu0 %v5794_v5  ;;  %4017 = vmatprep.subr.bf16.mxu1 %v5797_v6  ;;  %v5871_v4 = vld [vmem:[#allocation8 + $0xf0] sm:$0xff]  }
 0x23a   :  { %v5872_v5 = vld [vmem:[#allocation8 + $0x30] sm:$0xff]  }
 0x23b   :  { %v5873_v6 = vld [vmem:[#allocation8 + $0xb0] sm:$0xff]  }
 0x23c   :  { %3690 = vmatpush1.bf16.msra.mxu0 %v5792_v7  ;;  %4018 = vmatpush1.bf16.msra.mxu1 %v5795_v8  ;;  %v5874_v7 = vld [vmem:[#allocation8 + $0x78] sm:$0xff]  }
 0x23d   :  { %3691 = vmatprep.subr.bf16.mxu0 %v5800_v47  ;;  %4019 = vmatprep.subr.bf16.mxu1 %v5803_v10  ;;  %v5875_v8 = vld [vmem:[#allocation8 + $0xf8] sm:$0xff]  }
 0x23e   :  { %v5876_v47 = vld [vmem:[#allocation8 + $0x38] sm:$0xff]  }
 0x23f   :  { %v5877_v10 = vld [vmem:[#allocation8 + $0xb8] sm:$0xff]  }
 0x240   :  { %3692 = vmatpush1.bf16.msra.mxu0 %v5798_v11  ;;  %4020 = vmatpush1.bf16.msra.mxu1 %v5801_v12  ;;  %v810_v11 = vsub.s32 0, %v6123_v46  ;;  %v818_v12 = vsub.s32 2, %v6123_v46 }
 0x241   :  { %3693 = vmatprep.subr.bf16.mxu0 %v5806_v13  ;;  %4021 = vmatprep.subr.bf16.mxu1 %v5809_v14  ;;  %v806_v13 = vld [vmem:[#allocation7] sm:$0xf]  ;;  %v814_v14 = vsub.s32 1, %v6123_v46 }
 0x244   :  { %3694 = vmatpush1.bf16.msra.mxu0 %v5804_v15  ;;  %4022 = vmatpush1.bf16.msra.mxu1 %v5807_v18  ;;  %v822_v15 = vsub.s32 3, %v6123_v46  ;;  %v811_v18 = vrot.slane %v806_v13, %v810_v11 }
 0x245   :  { %3695 = vmatprep.subr.bf16.mxu0 %v5812_v19  ;;  %4023 = vmatprep.subr.bf16.mxu1 %v5815_v20  ;;  %v819_v19 = vrot.slane %v806_v13, %v818_v12  ;;  %v815_v20 = vrot.slane %v806_v13, %v814_v14 }
 0x248   :  { %3696 = vmatpush1.bf16.msra.mxu0 %v5810_v21  ;;  %4024 = vmatpush1.bf16.msra.mxu1 %v5813_v58  ;;  %v823_v21 = vrot.slane %v806_v13, %v822_v15 }
 0x249   :  { %3697 = vmatprep.subr.bf16.mxu0 %v5818_v59  ;;  %4025 = vmatprep.subr.bf16.mxu1 %v5821_v24 }
 0x24c   :  { %3698 = vmatpush1.bf16.msra.mxu0 %v5816_v25  ;;  %4026 = vmatpush1.bf16.msra.mxu1 %v5819_v26 }
 0x24d   :  { %3699 = vmatprep.subr.bf16.mxu0 %v5824_v27  ;;  %4027 = vmatprep.subr.bf16.mxu1 %v5827_v9 }
 0x250   :  { %3700 = vmatpush1.bf16.msra.mxu0 %v5822_v28  ;;  %4028 = vmatpush1.bf16.msra.mxu1 %v5825_v29 }
 0x251   :  { %3701 = vmatprep.subr.bf16.mxu0 %v5830_v30  ;;  %4029 = vmatprep.subr.bf16.mxu1 %v5833_v31 }
 0x254   :  { %3702 = vmatpush1.bf16.msra.mxu0 %v5828_v33  ;;  %4030 = vmatpush1.bf16.msra.mxu1 %v5831_v35 }
 0x255   :  { %3703 = vmatprep.subr.bf16.mxu0 %v5836_v38  ;;  %4031 = vmatprep.subr.bf16.mxu1 %v5839_v54 }
 0x258   :  { %3704 = vmatpush1.bf16.msra.mxu0 %v5834_v39  ;;  %4032 = vmatpush1.bf16.msra.mxu1 %v5837_v40 }
 0x259   :  { %3705 = vmatprep.subr.bf16.mxu0 %v5842_v41  ;;  %4033 = vmatprep.subr.bf16.mxu1 %v5845_v42 }
 0x25c   :  { %3706 = vmatpush1.bf16.msra.mxu0 %v5840_v48  ;;  %4034 = vmatpush1.bf16.msra.mxu1 %v5843_v44 }
 0x25d   :  { %4960 = vmatprep.subr.bf16.mxu0 %v5846_v49  ;;  %4982 = vmatprep.subr.bf16.mxu1 %v5847_v50  ;;  %v4927_v49 = vld [vmem:[#allocation10] ss:$0 sm:$0xff] }
 0x25f   :  { %3708 = vmatmul.mubr.bf16.vlgmr.msra.gmra.mrb[0].mxu0 %v292_v36  ;;  %4036 = vmatmul.mubr.bf16.vlgmr.msra.gmra.mrb[0].mxu1 %v292_v36 }
 0x260   :  { %4961 = vmatpush3.bf16.msra.mxu0 %v5848_v22  ;;  %4983 = vmatpush3.bf16.msra.mxu1 %v5849_v23 }
 0x261   :  { %4962 = vmatprep.subr.bf16.mxu0 %v5850_v37  ;;  %4984 = vmatprep.subr.bf16.mxu1 %v5851_v16 }
 0x264   :  { %4963 = vmatpush3.bf16.msra.mxu0 %v5852_v17  ;;  %4985 = vmatpush3.bf16.msra.mxu1 %v5853_v51 }
 0x265   :  { %4964 = vmatprep.subr.bf16.mxu0 %v5854_v52  ;;  %4986 = vmatprep.subr.bf16.mxu1 %v5855_v53 }
 0x268   :  { %4965 = vmatpush3.bf16.msra.mxu0 %v5856_v34  ;;  %4987 = vmatpush3.bf16.msra.mxu1 %v5857_v32 }
 0x269   :  { %4966 = vmatprep.subr.bf16.mxu0 %v5858_v55  ;;  %4988 = vmatprep.subr.bf16.mxu1 %v5859_v56 }
 0x26c   :  { %4967 = vmatpush3.bf16.msra.mxu0 %v5860_v57  ;;  %4989 = vmatpush3.bf16.msra.mxu1 %v5861_v43 }
 0x26d   :  { %4968 = vmatprep.subr.bf16.mxu0 %v5862_v45  ;;  %4990 = vmatprep.subr.bf16.mxu1 %v5863_v60 }
 0x270   :  { %4969 = vmatpush3.bf16.msra.mxu0 %v5864_v61  ;;  %4991 = vmatpush3.bf16.msra.mxu1 %v5865_v62 }
 0x271   :  { %4970 = vmatprep.subr.bf16.mxu0 %v5866_v63  ;;  %4992 = vmatprep.subr.bf16.mxu1 %v5867_v0 }
 0x274   :  { %4971 = vmatpush3.bf16.msra.mxu0 %v5868_v1  ;;  %4993 = vmatpush3.bf16.msra.mxu1 %v5869_v2 }
 0x275   :  { %4972 = vmatprep.subr.bf16.mxu0 %v5870_v3  ;;  %4994 = vmatprep.subr.bf16.mxu1 %v5871_v4 }
 0x278   :  { %4973 = vmatpush3.bf16.msra.mxu0 %v5872_v5  ;;  %4995 = vmatpush3.bf16.msra.mxu1 %v5873_v6 }
 0x279   :  { %4974 = vmatprep.subr.bf16.mxu0 %v5874_v7  ;;  %4996 = vmatprep.subr.bf16.mxu1 %v5875_v8 }
 0x27c   :  { %4975 = vmatpush3.bf16.msra.mxu0 %v5876_v47  ;;  %4997 = vmatpush3.bf16.msra.mxu1 %v5877_v10 }
 0x332   :  { %v3709_v58 = vpop.f32.mrb[0].mxu0  ;;  %v4037_v59 = vpop.f32.mrb[0].mxu1 }
 0x333   :  { %v5004_v24 = vadd.f32 %v3709_v58, %v811_v18  ;;  %v5006_v25 = vadd.f32 %v4037_v59, %v819_v19  ;;  %v3711_v26 = vpop.f32.mrb[1].mxu0  ;;  %v4039_v27 = vpop.f32.mrb[1].mxu1 }
 0x334   :  { %v5005_v9 = vadd.f32 %v3711_v26, %v815_v20  ;;  %v5007_v28 = vadd.f32 %v4039_v27, %v823_v21  ;;  %v3713_v29 = vpop.f32.mrb[2].mxu0  ;;  %v4041_v30 = vpop.f32.mrb[2].mxu1 }
 0x335   :  { %v4044_v31 = vmax.f32 %v5004_v24, 0.0  ;;  %v4046_v33 = vmax.f32 %v5006_v25, 0.0  ;;  %v3714_v35 = vpop.f32.mrb[3].mxu0  ;;  %v4042_v38 = vpop.f32.mrb[3].mxu1 }
 0x336   :  { %v4045_v54 = vmax.f32 %v5005_v9, 0.0  ;;  %v4047_v46 = vmax.f32 %v5007_v28, 0.0 }
 0x337   :  { %v4048_v41 = vpack.c.bf16 %v4044_v31, %v4044_v31  ;;  %v4050_v42 = vpack.c.bf16 %v4046_v33, %v4046_v33 }
 0x338   :  { %v4049_v39 = vpack.c.bf16 %v4045_v54, %v4045_v54  ;;  %v4051_v40 = vpack.c.bf16 %v4047_v46, %v4047_v46 }
 0x33a   :  { %4347 = vmatprep.mubr.bf16.mxu0 %v4049_v39  ;;  %4387 = vmatprep.mubr.bf16.mxu1 %v4051_v40 }
 0x33b   :  { %4348 = vmatmul.mubr.bf16.vlgmr.msra.gmra.mrb[4].mxu0 %v4048_v41  ;;  %4388 = vmatmul.mubr.bf16.vlgmr.msra.gmra.mrb[4].mxu1 %v4050_v42 }
 0x40e   :  { %v4976_v48 = vpop.f32.mrb[4].mxu0  ;;  %v4998_v44 = vpop.f32.mrb[4].mxu1 }
 0x40f   :  { %v4977_v50 = vpop.f32.mrb[5].mxu0  ;;  %v4999_v36 = vpop.f32.mrb[5].mxu1 }
 0x410   :  { %v4978_v22 = vadd.f32 %v4977_v50, %v4976_v48  ;;  %v5000_v23 = vadd.f32 %v4999_v36, %v4998_v44  ;;  %v4979_v37 = vpop.f32.mrb[6].mxu0  ;;  %v5001_v16 = vpop.f32.mrb[6].mxu1 }
 0x411   :  { %v4980_v17 = vpop.f32.mrb[7].mxu0  ;;  %v5002_v51 = vpop.f32.mrb[7].mxu1 }
 0x412   :  { %v4350_v52 = vadd.f32 %v4978_v22, %v4927_v49 }
 0x414   :  { %v4390_v53 = vadd.f32 %v5000_v23, %v4350_v52 }
 0x416   :  { %4395 = vst [vmem:[#allocation11] sm:$0xff] %v4390_v53 }
 0x417   :  { %4400 = vsyncadd [#allocation4], 96  ;;  %s6030_s4 = smov [#allocation11]  }
 0x418   :  { %s4401_s30 = sshll.u32 %s6030_s4, 4  ;;  %s4402_s30 = int_to_ptr.vmem [resolvable:$true] %s4401_s30 }
 0x419   :  { %s5988_s7 = scalar_lea.vmem %s4402_s30, 32  ;;  %s5992_s8 = scalar_lea.vmem %s4402_s30, 128 }
 0x41a   :  { %p5989_p12 = scmp.ne.s32.totalorder %s4402_s30, %s5988_s7  ;;  %p5993_p13 = scmp.lt.s32.totalorder %s4402_s30, %s4402_s30 }
 0x41b   :  { %p5994_p0 = scmp.lt.s32.totalorder %s5992_s8, %s5988_s7 }
 0x41d   :  { %p5995_p1 = por %p5994_p0, %p5993_p13 }
 0x41f   :  { %p5996_p2 = pnand %p5995_p1, %p5989_p12 }
 0x421   :  { %5999 = shalt.err (!%p5996_p2)
}
 0x422   :  { %s6000_s11 = scalar_lea.hbm %s6239_s5, 32 }
 0x423   :  { %p6001_p3 = scmp.ne.s32.totalorder %s6239_s5, %s6000_s11  ;;  %p6004_p4 = scmp.lt.u32.totalorder %s6000_s11, %s6239_s5 }
 0x425   :  { %p6006_p5 = pnand %p6004_p4, %p6001_p3 }
 0x427   :  { %6009 = shalt.err (!%p6006_p5)
}
 0x428   :  { %s6031_s16 = smov 2  }
 0x429   :  { %4407 = dma.vmem_to_hbm [thread:$0]  %s4402_s30, 32, %s6239_s5, [#allocation4], %s6026_s6, %s6026_s6, %s6031_s16  }
 0x42a   :  { %6016 = dma.done.wait [#allocation4], 128  }
 0x42b   :  { %6017 = vsyncadd [#allocation4], 4294967168 }
 0x42c   :  { %4411 = vsyncpa [#allocation3], 1 }
 0x42d   :  { %4412 = vsyncpa [#allocation6], 1 }
 0x42e   :  { %4413 = vsyncpa [#allocation9], 1 }
 0x42f   :  { %4414 = vsyncpa [#allocation4], 1 }

// kernel: tpu_custom_call.1
= control target key start
LH: loop header
LB: loop body
LE: loop exit
PB: predicated region body
PF: predicated region fallthrough
CT: control target
= control target key end

     0   :  { %10 = vsyncpa [#allocation3], 0  ;;  %s6234_s0 = inlined_call_operand.hbm [shape: f32[2,2048], index: 0, kind: input, shape index: {}]   ;;  %s6235_s1 = inlined_call_operand.hbm [shape: bf16[2048,512], index: 1, kind: input, shape index: {}]   ;;  %s6236_s2 = inlined_call_operand.hbm [shape: f32[1,512], index: 2, kind: input, shape index: {}]   ;;  %s6237_s3 = inlined_call_operand.hbm [shape: bf16[512,128], index: 3, kind: input, shape index: {}]   ;;  %s6238_s4 = inlined_call_operand.hbm [shape: f32[1,128], index: 4, kind: input, shape index: {}]   ;;  %s6239_s5 = inlined_call_operand.hbm [shape: f32[2,128], index: 5, kind: output, shape index: {}]  }
   0x1   :  { %11 = vsyncpa [#allocation6], 0 }
   0x2   :  { %12 = vsyncpa [#allocation9], 0 }
   0x3   :  { %13 = vsyncpa [#allocation4], 0 }
   0x4   :  { %18 = vsyncadd [#allocation3], 1536  ;;  %s6018_s18 = smov [#allocation5]   ;;  %s5878_s22 = scalar_lea.hbm %s6235_s1, 65536 }
   0x5   :  { %s31_s19 = sshll.u32 %s6018_s18, 4  ;;  %p5879_p0 = scmp.ne.s32.totalorder %s6235_s1, %s5878_s22  ;;  %s32_s19 = int_to_ptr.vmem [resolvable:$true] %s31_s19 }
   0x6   :  { %p5882_p1 = scmp.lt.u32.totalorder %s5878_s22, %s6235_s1 }
   0x8   :  { %p5884_p2 = pnand %p5882_p1, %p5879_p0 }
   0xa   :  { %5887 = shalt.err (!%p5884_p2)
}
   0xb   :  { %s5888_s27 = scalar_lea.vmem %s32_s19, 65536  ;;  %p5893_p4 = scmp.lt.s32.totalorder %s32_s19, %s32_s19 }
   0xc   :  { %p5889_p3 = scmp.ne.s32.totalorder %s32_s19, %s5888_s27  ;;  %p5894_p5 = scmp.lt.s32.totalorder %s5888_s27, %s5888_s27 }
   0xe   :  { %p5895_p6 = por %p5894_p5, %p5893_p4 }
  0x10   :  { %p5896_p7 = pnand %p5895_p6, %p5889_p3 }
  0x12   :  { %5899 = shalt.err (!%p5896_p7)
}
  0x13   :  { %s6019_s28 = smov 256   ;;  %s6020_s29 = smov 16  }
  0x14   :  { %37 = dma.hbm_to_vmem [thread:$0]  %s6235_s1, 65536, %s32_s19, [#allocation6], %s6019_s28, %s6019_s28, %s6020_s29  }
  0x15   :  { %s6021_s7 = smov [#allocation8]   ;;  %s5900_s11 = scalar_lea.hbm %s6237_s3, 4096 }
  0x16   :  { %s53_s8 = sshll.u32 %s6021_s7, 4  ;;  %p5901_p8 = scmp.ne.s32.totalorder %s6237_s3, %s5900_s11  ;;  %s54_s8 = int_to_ptr.vmem [resolvable:$true] %s53_s8 }
  0x17   :  { %p5904_p9 = scmp.lt.u32.totalorder %s5900_s11, %s6237_s3 }
  0x19   :  { %p5906_p10 = pnand %p5904_p9, %p5901_p8 }
  0x1b   :  { %5909 = shalt.err (!%p5906_p10)
}
  0x1c   :  { %s5910_s16 = scalar_lea.vmem %s54_s8, 4096  ;;  %p5915_p12 = scmp.lt.s32.totalorder %s54_s8, %s54_s8 }
  0x1d   :  { %p5911_p11 = scmp.ne.s32.totalorder %s54_s8, %s5910_s16  ;;  %p5916_p13 = scmp.lt.s32.totalorder %s5910_s16, %s5910_s16 }
  0x1f   :  { %p5917_p0 = por %p5916_p13, %p5915_p12 }
  0x21   :  { %p5918_p1 = pnand %p5917_p0, %p5911_p11 }
  0x23   :  { %5921 = shalt.err (!%p5918_p1)
}
  0x24   :  { %s6022_s1 = smov 64   ;;  %s6023_s17 = smov 4  }
  0x25   :  { %59 = dma.hbm_to_vmem [thread:$0]  %s6237_s3, 4096, %s54_s8, [#allocation9], %s6022_s1, %s6022_s1, %s6023_s17  }
  0x26   :  { %s6024_s20 = smov [#allocation2]   ;;  %s5922_s24 = scalar_lea.hbm %s6234_s0, 512 }
  0x27   :  { %s19_s21 = sshll.u32 %s6024_s20, 4  ;;  %p5923_p2 = scmp.ne.s32.totalorder %s6234_s0, %s5922_s24  ;;  %s20_s21 = int_to_ptr.vmem [resolvable:$true] %s19_s21 }
  0x28   :  { %p5926_p3 = scmp.lt.u32.totalorder %s5922_s24, %s6234_s0 }
  0x2a   :  { %p5928_p4 = pnand %p5926_p3, %p5923_p2 }
  0x2c   :  { %5931 = shalt.err (!%p5928_p4)
}
  0x2d   :  { %s5932_s29 = scalar_lea.vmem %s20_s21, 512  ;;  %s5936_s3 = scalar_lea.vmem %s20_s21, 2048 }
  0x2e   :  { %p5933_p5 = scmp.ne.s32.totalorder %s20_s21, %s5932_s29  ;;  %p5937_p6 = scmp.lt.s32.totalorder %s20_s21, %s20_s21 }
  0x2f   :  { %p5938_p7 = scmp.lt.s32.totalorder %s5936_s3, %s5932_s29 }
  0x31   :  { %p5939_p8 = por %p5938_p7, %p5937_p6 }
  0x33   :  { %p5940_p9 = pnand %p5939_p8, %p5933_p5 }
  0x35   :  { %5943 = shalt.err (!%p5940_p9)
}
  0x36   :  { %s6025_s30 = smov 512   ;;  %s6026_s6 = smov 32  }
  0x37   :  { %25 = dma.hbm_to_vmem [thread:$0]  %s6234_s0, 512, %s20_s21, [#allocation3], %s6025_s30, %s6025_s30, %s6026_s6  }
  0x38   :  { %s6027_s9 = smov [#allocation7]   ;;  %s6028_s11 = smov [#allocation10]  }
  0x39   :  { %s44_s10 = sshll.u32 %s6027_s9, 4  ;;  %s66_s12 = sshll.u32 %s6028_s11, 4  ;;  %s45_s10 = int_to_ptr.vmem [resolvable:$true] %s44_s10  ;;  %s67_s12 = int_to_ptr.vmem [resolvable:$true] %s66_s12 }
  0x3a   :  { %s5944_s15 = scalar_lea.hbm %s6236_s2, 64 }
  0x3b   :  { %p5945_p10 = scmp.ne.s32.totalorder %s6236_s2, %s5944_s15  ;;  %p5948_p11 = scmp.lt.u32.totalorder %s5944_s15, %s6236_s2 }
  0x3d   :  { %p5950_p12 = pnand %p5948_p11, %p5945_p10 }
  0x3f   :  { %5953 = shalt.err (!%p5950_p12)
}
  0x40   :  { %s5954_s0 = scalar_lea.vmem %s45_s10, 64  ;;  %p5959_p0 = scmp.lt.s32.totalorder %s45_s10, %s45_s10 }
  0x41   :  { %p5955_p13 = scmp.ne.s32.totalorder %s45_s10, %s5954_s0  ;;  %p5960_p1 = scmp.lt.s32.totalorder %s5954_s0, %s5954_s0 }
  0x43   :  { %p5961_p2 = por %p5960_p1, %p5959_p0 }
  0x45   :  { %p5962_p3 = pnand %p5961_p2, %p5955_p13 }
  0x47   :  { %5965 = shalt.err (!%p5962_p3)
}
  0x48   :  { %47 = dma.hbm_to_vmem [thread:$0]  %s6236_s2, 64, %s45_s10, [#allocation6]  }
  0x49   :  { %s5966_s23 = scalar_lea.hbm %s6238_s4, 16 }
  0x4a   :  { %p5967_p4 = scmp.ne.s32.totalorder %s6238_s4, %s5966_s23  ;;  %p5970_p5 = scmp.lt.u32.totalorder %s5966_s23, %s6238_s4 }
  0x4c   :  { %p5972_p6 = pnand %p5970_p5, %p5967_p4 }
  0x4e   :  { %5975 = shalt.err (!%p5972_p6)
}
  0x4f   :  { %s5976_s28 = scalar_lea.vmem %s67_s12, 16  ;;  %s5980_s29 = scalar_lea.vmem %s67_s12, 32 }
  0x50   :  { %p5977_p7 = scmp.ne.s32.totalorder %s67_s12, %s5976_s28  ;;  %p5981_p8 = scmp.lt.s32.totalorder %s67_s12, %s67_s12 }
  0x51   :  { %p5982_p9 = scmp.lt.s32.totalorder %s5980_s29, %s5976_s28 }
  0x53   :  { %p5983_p10 = por %p5982_p9, %p5981_p8 }
  0x55   :  { %p5984_p11 = pnand %p5983_p10, %p5977_p7 }
  0x57   :  { %5987 = shalt.err (!%p5984_p11)
}
  0x58   :  { %69 = dma.hbm_to_vmem [thread:$0]  %s6238_s4, 16, %s67_s12, [#allocation9]  }
  0x59   :  { %6010 = dma.done.wait [#allocation3], 2048  }
  0x5a   :  { %6011 = vsyncadd [#allocation3], 4294965248 }
  0x5b   :  { %6012 = dma.done.wait [#allocation6], 65600  }
  0x5c   :  { %6013 = vsyncadd [#allocation6], 4294901696 }
  0x5d   :  { %6014 = dma.done.wait [#allocation9], 4112  }
  0x5e   :  { %6015 = vsyncadd [#allocation9], 4294963184  ;;  %v5078_v0 = vld [vmem:[#allocation5 + $0x4] ss:$16 sps:$4 sm:$0xff]   ;;  %v5080_v1 = vld [vmem:[#allocation5 + $0xc] ss:$16 sps:$4 sm:$0xff]   ;;  %v125_v40 = vlaneseq }
  0x5f   :  { %3388 = vmatprep.subr.bf16.mxu0 %v5078_v0  ;;  %v5082_v2 = vld [vmem:[#allocation5] ss:$16 sps:$4 sm:$0xff]   ;;  %v5083_v3 = vld [vmem:[#allocation5 + $0x8] ss:$16 sps:$4 sm:$0xff]   ;;  %3716 = vmatprep.subr.bf16.mxu1 %v5080_v1  ;;  %v5084_v4 = vld [vmem:[#allocation5 + $0x24] ss:$16 sps:$4 sm:$0xff]  }
  0x60   :  { %3389 = vmatpush1.bf16.msra.mxu0 %v5082_v2  ;;  %3717 = vmatpush1.bf16.msra.mxu1 %v5083_v3  ;;  %v5086_v5 = vld [vmem:[#allocation5 + $0x2c] ss:$16 sps:$4 sm:$0xff]   ;;  %v5088_v6 = vld [vmem:[#allocation5 + $0x20] ss:$16 sps:$4 sm:$0xff]   ;;  %v5089_v7 = vld [vmem:[#allocation5 + $0x28] ss:$16 sps:$4 sm:$0xff]  }
  0x61   :  { %3390 = vmatprep.subr.bf16.mxu0 %v5084_v4  ;;  %3718 = vmatprep.subr.bf16.mxu1 %v5086_v5  ;;  %v5090_v8 = vld [vmem:[#allocation5 + $0x44] ss:$16 sps:$4 sm:$0xff]   ;;  %v5092_v9 = vld [vmem:[#allocation5 + $0x4c] ss:$16 sps:$4 sm:$0xff]   ;;  %v5094_v10 = vld [vmem:[#allocation5 + $0x40] ss:$16 sps:$4 sm:$0xff]  }
  0x62   :  { %v5095_v11 = vld [vmem:[#allocation5 + $0x48] ss:$16 sps:$4 sm:$0xff]   ;;  %v5096_v12 = vld [vmem:[#allocation5 + $0x64] ss:$16 sps:$4 sm:$0xff]   ;;  %v5098_v13 = vld [vmem:[#allocation5 + $0x6c] ss:$16 sps:$4 sm:$0xff]  }
  0x63   :  { %v5100_v14 = vld [vmem:[#allocation5 + $0x60] ss:$16 sps:$4 sm:$0xff]   ;;  %v5101_v15 = vld [vmem:[#allocation5 + $0x68] ss:$16 sps:$4 sm:$0xff]   ;;  %v5102_v16 = vld [vmem:[#allocation5 + $0x84] ss:$16 sps:$4 sm:$0xff]  }
  0x64   :  { %3391 = vmatpush1.bf16.msra.mxu0 %v5088_v6  ;;  %3719 = vmatpush1.bf16.msra.mxu1 %v5089_v7  ;;  %v5104_v17 = vld [vmem:[#allocation5 + $0x8c] ss:$16 sps:$4 sm:$0xff]   ;;  %v5106_v18 = vld [vmem:[#allocation5 + $0x80] ss:$16 sps:$4 sm:$0xff]   ;;  %v5107_v19 = vld [vmem:[#allocation5 + $0x88] ss:$16 sps:$4 sm:$0xff]  }
  0x65   :  { %3392 = vmatprep.subr.bf16.mxu0 %v5090_v8  ;;  %3720 = vmatprep.subr.bf16.mxu1 %v5092_v9  ;;  %v5108_v20 = vld [vmem:[#allocation5 + $0xa4] ss:$16 sps:$4 sm:$0xff]   ;;  %v5110_v21 = vld [vmem:[#allocation5 + $0xac] ss:$16 sps:$4 sm:$0xff]   ;;  %v5112_v22 = vld [vmem:[#allocation5 + $0xa0] ss:$16 sps:$4 sm:$0xff]  }
  0x66   :  { %v5113_v23 = vld [vmem:[#allocation5 + $0xa8] ss:$16 sps:$4 sm:$0xff]   ;;  %v5114_v24 = vld [vmem:[#allocation5 + $0xc4] ss:$16 sps:$4 sm:$0xff]   ;;  %v5116_v25 = vld [vmem:[#allocation5 + $0xcc] ss:$16 sps:$4 sm:$0xff]  }
  0x67   :  { %v5118_v26 = vld [vmem:[#allocation5 + $0xc0] ss:$16 sps:$4 sm:$0xff]   ;;  %v5119_v27 = vld [vmem:[#allocation5 + $0xc8] ss:$16 sps:$4 sm:$0xff]   ;;  %v5120_v28 = vld [vmem:[#allocation5 + $0xe4] ss:$16 sps:$4 sm:$0xff]  }
  0x68   :  { %3393 = vmatpush1.bf16.msra.mxu0 %v5094_v10  ;;  %3721 = vmatpush1.bf16.msra.mxu1 %v5095_v11  ;;  %v5122_v29 = vld [vmem:[#allocation5 + $0xec] ss:$16 sps:$4 sm:$0xff]   ;;  %v5124_v30 = vld [vmem:[#allocation5 + $0xe0] ss:$16 sps:$4 sm:$0xff]   ;;  %v5125_v31 = vld [vmem:[#allocation5 + $0xe8] ss:$16 sps:$4 sm:$0xff]  }
  0x69   :  { %3394 = vmatprep.subr.bf16.mxu0 %v5096_v12  ;;  %3722 = vmatprep.subr.bf16.mxu1 %v5098_v13  ;;  %v5126_v32 = vld [vmem:[#allocation5 + $0x104] ss:$16 sps:$4 sm:$0xff]   ;;  %v5128_v33 = vld [vmem:[#allocation5 + $0x10c] ss:$16 sps:$4 sm:$0xff]   ;;  %v5130_v34 = vld [vmem:[#allocation5 + $0x100] ss:$16 sps:$4 sm:$0xff]  }
  0x6a   :  { %v5131_v35 = vld [vmem:[#allocation5 + $0x108] ss:$16 sps:$4 sm:$0xff]   ;;  %v5132_v36 = vld [vmem:[#allocation5 + $0x124] ss:$16 sps:$4 sm:$0xff]   ;;  %v5134_v37 = vld [vmem:[#allocation5 + $0x12c] ss:$16 sps:$4 sm:$0xff]  }
  0x6b   :  { %v6029_v38 = vmov 1983009808   ;;  %v5136_v41 = vld [vmem:[#allocation5 + $0x120] ss:$16 sps:$4 sm:$0xff]   ;;  %v5137_v42 = vld [vmem:[#allocation5 + $0x128] ss:$16 sps:$4 sm:$0xff]  }
  0x6c   :  { %3395 = vmatpush1.bf16.msra.mxu0 %v5100_v14  ;;  %3723 = vmatpush1.bf16.msra.mxu1 %v5101_v15  ;;  %v123_v39 = vunpack.c.l.s4 %v6029_v38  ;;  %v5138_v43 = vld [vmem:[#allocation5 + $0x144] ss:$16 sps:$4 sm:$0xff]   ;;  %v5140_v44 = vld [vmem:[#allocation5 + $0x14c] ss:$16 sps:$4 sm:$0xff]   ;;  %v6123_v46 = vshrl.u32 %v125_v40, 7 }
  0x6d   :  { %3396 = vmatprep.subr.bf16.mxu0 %v5102_v16  ;;  %3724 = vmatprep.subr.bf16.mxu1 %v5104_v17  ;;  %v5142_v47 = vld [vmem:[#allocation5 + $0x140] ss:$16 sps:$4 sm:$0xff]   ;;  %v5143_v48 = vld [vmem:[#allocation5 + $0x148] ss:$16 sps:$4 sm:$0xff]   ;;  %v5144_v49 = vld [vmem:[#allocation5 + $0x164] ss:$16 sps:$4 sm:$0xff]  }
  0x6e   :  { %v124_v45 = vunpack.c.0.s8 %v123_v39  ;;  %v5146_v50 = vld [vmem:[#allocation5 + $0x16c] ss:$16 sps:$4 sm:$0xff]   ;;  %v5148_v51 = vld [vmem:[#allocation5 + $0x160] ss:$16 sps:$4 sm:$0xff]   ;;  %v5149_v52 = vld [vmem:[#allocation5 + $0x168] ss:$16 sps:$4 sm:$0xff]  }
  0x6f   :  { %v86_v53 = vld [vmem:[#allocation2] sm:$0xff]  ;;  %v5152_v61 = vld [vmem:[#allocation5 + $0x18c] ss:$16 sps:$4 sm:$0xff]   ;;  %v5155_v1 = vld [vmem:[#allocation5 + $0x188] ss:$16 sps:$4 sm:$0xff]  }
  0x70   :  { %3397 = vmatpush1.bf16.msra.mxu0 %v5106_v18  ;;  %3725 = vmatpush1.bf16.msra.mxu1 %v5107_v19  ;;  %v6126_v54 = vsub.s32 %v124_v45, %v6123_v46  ;;  %v90_v55 = vld [vmem:[#allocation2 + $0x20] sm:$0xff]  ;;  %v5158_v4 = vld [vmem:[#allocation5 + $0x1ac] ss:$16 sps:$4 sm:$0xff]   ;;  %v5161_v7 = vld [vmem:[#allocation5 + $0x1a8] ss:$16 sps:$4 sm:$0xff]  }
  0x71   :  { %3398 = vmatprep.subr.bf16.mxu0 %v5108_v20  ;;  %3726 = vmatprep.subr.bf16.mxu1 %v5110_v21  ;;  %v94_v56 = vld [vmem:[#allocation2 + $0x40] sm:$0xff]  ;;  %v118_v59 = vcombine.low %v86_v53, %v90_v55  ;;  %v5164_v9 = vld [vmem:[#allocation5 + $0x1cc] ss:$16 sps:$4 sm:$0xff]   ;;  %v119_v10 = vcombine.high %v86_v53, %v90_v55  ;;  %v5167_v13 = vld [vmem:[#allocation5 + $0x1c8] ss:$16 sps:$4 sm:$0xff]  }
  0x72   :  { %v98_v57 = vld [vmem:[#allocation2 + $0x60] sm:$0xff]  ;;  %v5170_v15 = vld [vmem:[#allocation5 + $0x1ec] ss:$16 sps:$4 sm:$0xff]   ;;  %v5173_v19 = vld [vmem:[#allocation5 + $0x1e8] ss:$16 sps:$4 sm:$0xff]  }
  0x73   :  { %v5150_v58 = vld [vmem:[#allocation5 + $0x184] ss:$16 sps:$4 sm:$0xff]   ;;  %v120_v60 = vcombine.low %v94_v56, %v98_v57  ;;  %v128_v62 = vrot.slane %v118_v59, %v6126_v54  ;;  %v5154_v0 = vld [vmem:[#allocation5 + $0x180] ss:$16 sps:$4 sm:$0xff]   ;;  %v121_v11 = vcombine.high %v94_v56, %v98_v57  ;;  %v6131_v16 = vrot.slane %v119_v10, %v6126_v54  ;;  %v5195_v39 = vld [vmem:[#allocation5 + $0x268] ss:$16 sps:$4 sm:$0xff]  }
  0x74   :  { %3399 = vmatpush1.bf16.msra.mxu0 %v5112_v22  ;;  %3727 = vmatpush1.bf16.msra.mxu1 %v5113_v23  ;;  %v5156_v2 = vld [vmem:[#allocation5 + $0x1a4] ss:$16 sps:$4 sm:$0xff]   ;;  %v5160_v6 = vld [vmem:[#allocation5 + $0x1a0] ss:$16 sps:$4 sm:$0xff]   ;;  %v5179_v22 = vld [vmem:[#allocation5 + $0x20c] ss:$16 sps:$4 sm:$0xff]  }
  0x75   :  { %3400 = vmatprep.subr.bf16.mxu0 %v5114_v24  ;;  %3728 = vmatprep.subr.bf16.mxu1 %v5116_v25  ;;  %v142_v63 = vrot.slane %v120_v60, %v6126_v54  ;;  %v5162_v8 = vld [vmem:[#allocation5 + $0x1c4] ss:$16 sps:$4 sm:$0xff]   ;;  %v5166_v12 = vld [vmem:[#allocation5 + $0x1c0] ss:$16 sps:$4 sm:$0xff]   ;;  %v6134_v17 = vrot.slane %v121_v11, %v6126_v54  ;;  %v5177_v25 = vld [vmem:[#allocation5 + $0x208] ss:$16 sps:$4 sm:$0xff]  }
  0x76   :  { %v5168_v14 = vld [vmem:[#allocation5 + $0x1e4] ss:$16 sps:$4 sm:$0xff]   ;;  %v5172_v18 = vld [vmem:[#allocation5 + $0x1e0] ss:$16 sps:$4 sm:$0xff]   ;;  %v5209_v45 = vld [vmem:[#allocation5 + $0x2ac] ss:$16 sps:$4 sm:$0xff]  }
  0x77   :  { %v151_v3 = vcombine.high %v128_v62, %v142_v63  ;;  %v150_v20 = vcombine.low %v128_v62, %v142_v63  ;;  %v5176_v21 = vld [vmem:[#allocation5 + $0x204] ss:$16 sps:$4 sm:$0xff]   ;;  %v153_v23 = vcombine.high %v6131_v16, %v6134_v17  ;;  %v5174_v24 = vld [vmem:[#allocation5 + $0x200] ss:$16 sps:$4 sm:$0xff]   ;;  %v5221_v55 = vld [vmem:[#allocation5 + $0x2ec] ss:$16 sps:$4 sm:$0xff]  }
  0x78   :  { %3401 = vmatpush1.bf16.msra.mxu0 %v5118_v26  ;;  %3729 = vmatpush1.bf16.msra.mxu1 %v5119_v27  ;;  %v5182_v27 = vld [vmem:[#allocation5 + $0x224] ss:$16 sps:$4 sm:$0xff]   ;;  %v5192_v38 = vld [vmem:[#allocation5 + $0x260] ss:$16 sps:$4 sm:$0xff]   ;;  %v5219_v57 = vld [vmem:[#allocation5 + $0x2e8] ss:$16 sps:$4 sm:$0xff]  }
  0x79   :  { %3402 = vmatprep.subr.bf16.mxu0 %v5120_v28  ;;  %3730 = vmatprep.subr.bf16.mxu1 %v5122_v29  ;;  %v279_v5 = vpack.c.bf16 %v151_v3, %v151_v3  ;;  %v278_v26 = vpack.c.bf16 %v150_v20, %v150_v20  ;;  %v5185_v28 = vld [vmem:[#allocation5 + $0x22c] ss:$16 sps:$4 sm:$0xff]   ;;  %v281_v29 = vpack.c.bf16 %v153_v23, %v153_v23  ;;  %v5200_v40 = vld [vmem:[#allocation5 + $0x284] ss:$16 sps:$4 sm:$0xff]   ;;  %v5216_v56 = vld [vmem:[#allocation5 + $0x2e0] ss:$16 sps:$4 sm:$0xff]  }
  0x7a   :  { %v5218_v53 = vld [vmem:[#allocation5 + $0x2e4] ss:$16 sps:$4 sm:$0xff]   ;;  %v5227_v59 = vld [vmem:[#allocation5 + $0x30c] ss:$16 sps:$4 sm:$0xff]   ;;  %v5222_v60 = vld [vmem:[#allocation5 + $0x300] ss:$16 sps:$4 sm:$0xff]  }
  0x7b   :  { %3420 = vmatprep.mubr.bf16.mxu0 %v279_v5  ;;  %3748 = vmatprep.mubr.bf16.mxu1 %v279_v5  ;;  %v5230_v62 = vld [vmem:[#allocation5 + $0x324] ss:$16 sps:$4 sm:$0xff]   ;;  %v5233_v63 = vld [vmem:[#allocation5 + $0x32c] ss:$16 sps:$4 sm:$0xff]   ;;  %v5237_v5 = vld [vmem:[#allocation5 + $0x348] ss:$16 sps:$4 sm:$0xff]  }
  0x7c   :  { %3403 = vmatpush1.bf16.msra.mxu0 %v5124_v30  ;;  %3731 = vmatpush1.bf16.msra.mxu1 %v5125_v31  ;;  %v5180_v30 = vld [vmem:[#allocation5 + $0x220] ss:$16 sps:$4 sm:$0xff]   ;;  %v5183_v31 = vld [vmem:[#allocation5 + $0x228] ss:$16 sps:$4 sm:$0xff]   ;;  %v5239_v3 = vld [vmem:[#allocation5 + $0x34c] ss:$16 sps:$4 sm:$0xff]  }
  0x7d   :  { %3404 = vmatprep.subr.bf16.mxu0 %v5126_v32  ;;  %3732 = vmatprep.subr.bf16.mxu1 %v5128_v33  ;;  %v5188_v32 = vld [vmem:[#allocation5 + $0x244] ss:$16 sps:$4 sm:$0xff]   ;;  %v5191_v33 = vld [vmem:[#allocation5 + $0x24c] ss:$16 sps:$4 sm:$0xff]   ;;  %v5261_v23 = vld [vmem:[#allocation5 + $0x3c8] ss:$16 sps:$4 sm:$0xff]  }
  0x7e   :  { %v5248_v10 = vld [vmem:[#allocation5 + $0x384] ss:$16 sps:$4 sm:$0xff]   ;;  %v5251_v11 = vld [vmem:[#allocation5 + $0x38c] ss:$16 sps:$4 sm:$0xff]  }
  0x7f   :  { %v5260_v20 = vld [vmem:[#allocation5 + $0x3c4] ss:$16 sps:$4 sm:$0xff]  }
  0x80   :  { %3405 = vmatpush1.bf16.msra.mxu0 %v5130_v34  ;;  %3733 = vmatpush1.bf16.msra.mxu1 %v5131_v35  ;;  %v5186_v34 = vld [vmem:[#allocation5 + $0x240] ss:$16 sps:$4 sm:$0xff]   ;;  %v5189_v35 = vld [vmem:[#allocation5 + $0x248] ss:$16 sps:$4 sm:$0xff]  }
  0x81   :  { %3406 = vmatprep.subr.bf16.mxu0 %v5132_v36  ;;  %3734 = vmatprep.subr.bf16.mxu1 %v5134_v37  ;;  %v5194_v36 = vld [vmem:[#allocation5 + $0x264] ss:$16 sps:$4 sm:$0xff]   ;;  %v5197_v37 = vld [vmem:[#allocation5 + $0x26c] ss:$16 sps:$4 sm:$0xff]  }
  0x84   :  { %3407 = vmatpush1.bf16.msra.mxu0 %v5136_v41  ;;  %3735 = vmatpush1.bf16.msra.mxu1 %v5137_v42  ;;  %v5203_v41 = vld [vmem:[#allocation5 + $0x28c] ss:$16 sps:$4 sm:$0xff]   ;;  %v5198_v42 = vld [vmem:[#allocation5 + $0x280] ss:$16 sps:$4 sm:$0xff]  }
  0x85   :  { %3408 = vmatprep.subr.bf16.mxu0 %v5138_v43  ;;  %3736 = vmatprep.subr.bf16.mxu1 %v5140_v44  ;;  %v5201_v43 = vld [vmem:[#allocation5 + $0x288] ss:$16 sps:$4 sm:$0xff]   ;;  %v5206_v44 = vld [vmem:[#allocation5 + $0x2a4] ss:$16 sps:$4 sm:$0xff]  }
  0x88   :  { %3409 = vmatpush1.bf16.msra.mxu0 %v5142_v47  ;;  %3737 = vmatpush1.bf16.msra.mxu1 %v5143_v48  ;;  %v5204_v47 = vld [vmem:[#allocation5 + $0x2a0] ss:$16 sps:$4 sm:$0xff]   ;;  %v5207_v48 = vld [vmem:[#allocation5 + $0x2a8] ss:$16 sps:$4 sm:$0xff]  }
  0x89   :  { %3410 = vmatprep.subr.bf16.mxu0 %v5144_v49  ;;  %3738 = vmatprep.subr.bf16.mxu1 %v5146_v50  ;;  %v5212_v49 = vld [vmem:[#allocation5 + $0x2c4] ss:$16 sps:$4 sm:$0xff]   ;;  %v5215_v50 = vld [vmem:[#allocation5 + $0x2cc] ss:$16 sps:$4 sm:$0xff]  }
  0x8c   :  { %3411 = vmatpush1.bf16.msra.mxu0 %v5148_v51  ;;  %3739 = vmatpush1.bf16.msra.mxu1 %v5149_v52  ;;  %v5210_v51 = vld [vmem:[#allocation5 + $0x2c0] ss:$16 sps:$4 sm:$0xff]   ;;  %v5213_v52 = vld [vmem:[#allocation5 + $0x2c8] ss:$16 sps:$4 sm:$0xff]  }
  0x8d   :  { %3412 = vmatprep.subr.bf16.mxu0 %v5150_v58  ;;  %3740 = vmatprep.subr.bf16.mxu1 %v5152_v61  ;;  %v5224_v58 = vld [vmem:[#allocation5 + $0x304] ss:$16 sps:$4 sm:$0xff]   ;;  %v5225_v61 = vld [vmem:[#allocation5 + $0x308] ss:$16 sps:$4 sm:$0xff]  }
  0x90   :  { %3413 = vmatpush1.bf16.msra.mxu0 %v5154_v0  ;;  %3741 = vmatpush1.bf16.msra.mxu1 %v5155_v1  ;;  %v5228_v0 = vld [vmem:[#allocation5 + $0x320] ss:$16 sps:$4 sm:$0xff]   ;;  %v5231_v1 = vld [vmem:[#allocation5 + $0x328] ss:$16 sps:$4 sm:$0xff]  }
  0x91   :  { %3414 = vmatprep.subr.bf16.mxu0 %v5156_v2  ;;  %3742 = vmatprep.subr.bf16.mxu1 %v5158_v4  ;;  %v5236_v2 = vld [vmem:[#allocation5 + $0x344] ss:$16 sps:$4 sm:$0xff]   ;;  %v5234_v4 = vld [vmem:[#allocation5 + $0x340] ss:$16 sps:$4 sm:$0xff]  }
  0x94   :  { %3415 = vmatpush1.bf16.msra.mxu0 %v5160_v6  ;;  %3743 = vmatpush1.bf16.msra.mxu1 %v5161_v7  ;;  %v5242_v6 = vld [vmem:[#allocation5 + $0x364] ss:$16 sps:$4 sm:$0xff]   ;;  %v5245_v7 = vld [vmem:[#allocation5 + $0x36c] ss:$16 sps:$4 sm:$0xff]  }
  0x95   :  { %3416 = vmatprep.subr.bf16.mxu0 %v5162_v8  ;;  %3744 = vmatprep.subr.bf16.mxu1 %v5164_v9  ;;  %v5240_v8 = vld [vmem:[#allocation5 + $0x360] ss:$16 sps:$4 sm:$0xff]   ;;  %v5243_v9 = vld [vmem:[#allocation5 + $0x368] ss:$16 sps:$4 sm:$0xff]  }
  0x98   :  { %3417 = vmatpush1.bf16.msra.mxu0 %v5166_v12  ;;  %3745 = vmatpush1.bf16.msra.mxu1 %v5167_v13  ;;  %v5246_v12 = vld [vmem:[#allocation5 + $0x380] ss:$16 sps:$4 sm:$0xff]   ;;  %v5249_v13 = vld [vmem:[#allocation5 + $0x388] ss:$16 sps:$4 sm:$0xff]  }
  0x99   :  { %3418 = vmatprep.subr.bf16.mxu0 %v5168_v14  ;;  %3746 = vmatprep.subr.bf16.mxu1 %v5170_v15  ;;  %v5254_v14 = vld [vmem:[#allocation5 + $0x3a4] ss:$16 sps:$4 sm:$0xff]   ;;  %v5257_v15 = vld [vmem:[#allocation5 + $0x3ac] ss:$16 sps:$4 sm:$0xff]  }
  0x9c   :  { %3419 = vmatpush1.bf16.msra.mxu0 %v5172_v18  ;;  %3747 = vmatpush1.bf16.msra.mxu1 %v5173_v19  ;;  %v5252_v18 = vld [vmem:[#allocation5 + $0x3a0] ss:$16 sps:$4 sm:$0xff]   ;;  %v5255_v19 = vld [vmem:[#allocation5 + $0x3a8] ss:$16 sps:$4 sm:$0xff]  }
  0x9d   :  { %3429 = vmatprep.subr.bf16.mxu0 %v5176_v21  ;;  %3757 = vmatprep.subr.bf16.mxu1 %v5179_v22  ;;  %v5263_v21 = vld [vmem:[#allocation5 + $0x3cc] ss:$16 sps:$4 sm:$0xff]   ;;  %v5258_v22 = vld [vmem:[#allocation5 + $0x3c0] ss:$16 sps:$4 sm:$0xff]  }
  0x9f   :  { %3421 = vmatmul.mubr.bf16.vlgmr.msra.gmra.mrb[0].mxu0 %v278_v26  ;;  %3749 = vmatmul.mubr.bf16.vlgmr.msra.gmra.mrb[0].mxu1 %v278_v26  ;;  %v5264_v26 = vld [vmem:[#allocation5 + $0x3e0] ss:$16 sps:$4 sm:$0xff]  }
  0xa0   :  { %3430 = vmatpush1.bf16.msra.mxu0 %v5174_v24  ;;  %3758 = vmatpush1.bf16.msra.mxu1 %v5177_v25  ;;  %v5266_v24 = vld [vmem:[#allocation5 + $0x3e4] ss:$16 sps:$4 sm:$0xff]   ;;  %v5269_v25 = vld [vmem:[#allocation5 + $0x3ec] ss:$16 sps:$4 sm:$0xff]  }
  0xa1   :  { %3431 = vmatprep.subr.bf16.mxu0 %v5182_v27  ;;  %3759 = vmatprep.subr.bf16.mxu1 %v5185_v28  ;;  %v5267_v27 = vld [vmem:[#allocation5 + $0x3e8] ss:$16 sps:$4 sm:$0xff]   ;;  %v152_v28 = vcombine.low %v6131_v16, %v6134_v17 }
  0xa2   :  { %3461 = vmatprep.mubr.bf16.mxu0 %v281_v29  ;;  %3789 = vmatprep.mubr.bf16.mxu1 %v281_v29  ;;  %v5272_v29 = vld [vmem:[#allocation5 + $0x404] ss:$16 sps:$4 sm:$0xff]   ;;  %v6144_v16 = vld [vmem:[#allocation2 + $0x48] sm:$0xff] }
  0xa3   :  { %v6146_v17 = vld [vmem:[#allocation2 + $0x68] sm:$0xff] }
  0xa4   :  { %3432 = vmatpush1.bf16.msra.mxu0 %v5180_v30  ;;  %3760 = vmatpush1.bf16.msra.mxu1 %v5183_v31  ;;  %v5275_v30 = vld [vmem:[#allocation5 + $0x40c] ss:$16 sps:$4 sm:$0xff]   ;;  %v5270_v31 = vld [vmem:[#allocation5 + $0x400] ss:$16 sps:$4 sm:$0xff]  }
  0xa5   :  { %3433 = vmatprep.subr.bf16.mxu0 %v5188_v32  ;;  %3761 = vmatprep.subr.bf16.mxu1 %v5191_v33  ;;  %v5273_v32 = vld [vmem:[#allocation5 + $0x408] ss:$16 sps:$4 sm:$0xff]   ;;  %v280_v33 = vpack.c.bf16 %v152_v28, %v152_v28  ;;  %v5342_v28 = vld [vmem:[#allocation5 + $0x580] ss:$16 sps:$4 sm:$0xff]  }
  0xa8   :  { %3434 = vmatpush1.bf16.msra.mxu0 %v5186_v34  ;;  %3762 = vmatpush1.bf16.msra.mxu1 %v5189_v35  ;;  %v5278_v34 = vld [vmem:[#allocation5 + $0x424] ss:$16 sps:$4 sm:$0xff]   ;;  %v5281_v35 = vld [vmem:[#allocation5 + $0x42c] ss:$16 sps:$4 sm:$0xff]  }
  0xa9   :  { %3435 = vmatprep.subr.bf16.mxu0 %v5194_v36  ;;  %3763 = vmatprep.subr.bf16.mxu1 %v5197_v37  ;;  %v6140_v36 = vld [vmem:[#allocation2 + $0x8] sm:$0xff] }
  0xaa   :  { %v6142_v37 = vld [vmem:[#allocation2 + $0x28] sm:$0xff] }
  0xac   :  { %3436 = vmatpush1.bf16.msra.mxu0 %v5192_v38  ;;  %3764 = vmatpush1.bf16.msra.mxu1 %v5195_v39  ;;  %v154_v38 = vcombine.low %v6140_v36, %v6142_v37  ;;  %v5276_v39 = vld [vmem:[#allocation5 + $0x420] ss:$16 sps:$4 sm:$0xff]  }
  0xad   :  { %3437 = vmatprep.subr.bf16.mxu0 %v5200_v40  ;;  %3765 = vmatprep.subr.bf16.mxu1 %v5203_v41  ;;  %v5279_v40 = vld [vmem:[#allocation5 + $0x428] ss:$16 sps:$4 sm:$0xff]   ;;  %v156_v41 = vcombine.low %v6144_v16, %v6146_v17 }
  0xb0   :  { %3438 = vmatpush1.bf16.msra.mxu0 %v5198_v42  ;;  %3766 = vmatpush1.bf16.msra.mxu1 %v5201_v43  ;;  %v5284_v42 = vld [vmem:[#allocation5 + $0x444] ss:$16 sps:$4 sm:$0xff]   ;;  %v6153_v43 = vrot.slane %v154_v38, %v6126_v54  ;;  %v155_v38 = vcombine.high %v6140_v36, %v6142_v37 }
  0xb1   :  { %3439 = vmatprep.subr.bf16.mxu0 %v5206_v44  ;;  %3767 = vmatprep.subr.bf16.mxu1 %v5209_v45  ;;  %v5287_v44 = vld [vmem:[#allocation5 + $0x44c] ss:$16 sps:$4 sm:$0xff]   ;;  %v6156_v45 = vrot.slane %v156_v41, %v6126_v54  ;;  %v5357_v41 = vld [vmem:[#allocation5 + $0x5c8] ss:$16 sps:$4 sm:$0xff]   ;;  %v5368_v37 = vld [vmem:[#allocation5 + $0x604] ss:$16 sps:$4 sm:$0xff]  }
  0xb3   :  { %v186_v36 = vcombine.low %v6153_v43, %v6156_v45 }
  0xb4   :  { %3440 = vmatpush1.bf16.msra.mxu0 %v5204_v47  ;;  %3768 = vmatpush1.bf16.msra.mxu1 %v5207_v48  ;;  %v5282_v47 = vld [vmem:[#allocation5 + $0x440] ss:$16 sps:$4 sm:$0xff]   ;;  %v5285_v48 = vld [vmem:[#allocation5 + $0x448] ss:$16 sps:$4 sm:$0xff]  }
  0xb5   :  { %3441 = vmatprep.subr.bf16.mxu0 %v5212_v49  ;;  %3769 = vmatprep.subr.bf16.mxu1 %v5215_v50  ;;  %v187_v49 = vcombine.high %v6153_v43, %v6156_v45  ;;  %v5290_v50 = vld [vmem:[#allocation5 + $0x464] ss:$16 sps:$4 sm:$0xff]   ;;  %v5372_v43 = vld [vmem:[#allocation5 + $0x620] ss:$16 sps:$4 sm:$0xff]   ;;  %v5375_v45 = vld [vmem:[#allocation5 + $0x628] ss:$16 sps:$4 sm:$0xff]  }
  0xb8   :  { %3442 = vmatpush1.bf16.msra.mxu0 %v5210_v51  ;;  %3770 = vmatpush1.bf16.msra.mxu1 %v5213_v52  ;;  %v5293_v51 = vld [vmem:[#allocation5 + $0x46c] ss:$16 sps:$4 sm:$0xff]   ;;  %v283_v52 = vpack.c.bf16 %v187_v49, %v187_v49  ;;  %v5360_v49 = vld [vmem:[#allocation5 + $0x5e0] ss:$16 sps:$4 sm:$0xff]  }
  0xb9   :  { %3443 = vmatprep.subr.bf16.mxu0 %v5218_v53  ;;  %3771 = vmatprep.subr.bf16.mxu1 %v5221_v55  ;;  %v5288_v53 = vld [vmem:[#allocation5 + $0x460] ss:$16 sps:$4 sm:$0xff]   ;;  %v5291_v55 = vld [vmem:[#allocation5 + $0x468] ss:$16 sps:$4 sm:$0xff]  }
  0xbc   :  { %3444 = vmatpush1.bf16.msra.mxu0 %v5216_v56  ;;  %3772 = vmatpush1.bf16.msra.mxu1 %v5219_v57  ;;  %v5296_v56 = vld [vmem:[#allocation5 + $0x484] ss:$16 sps:$4 sm:$0xff]   ;;  %v5299_v57 = vld [vmem:[#allocation5 + $0x48c] ss:$16 sps:$4 sm:$0xff]  }
  0xbd   :  { %3445 = vmatprep.subr.bf16.mxu0 %v5224_v58  ;;  %3773 = vmatprep.subr.bf16.mxu1 %v5227_v59  ;;  %v5294_v58 = vld [vmem:[#allocation5 + $0x480] ss:$16 sps:$4 sm:$0xff]   ;;  %v5297_v59 = vld [vmem:[#allocation5 + $0x488] ss:$16 sps:$4 sm:$0xff]  }
  0xc0   :  { %3446 = vmatpush1.bf16.msra.mxu0 %v5222_v60  ;;  %3774 = vmatpush1.bf16.msra.mxu1 %v5225_v61  ;;  %v5302_v60 = vld [vmem:[#allocation5 + $0x4a4] ss:$16 sps:$4 sm:$0xff]   ;;  %v5305_v61 = vld [vmem:[#allocation5 + $0x4ac] ss:$16 sps:$4 sm:$0xff]  }
  0xc1   :  { %3447 = vmatprep.subr.bf16.mxu0 %v5230_v62  ;;  %3775 = vmatprep.subr.bf16.mxu1 %v5233_v63  ;;  %v5300_v62 = vld [vmem:[#allocation5 + $0x4a0] ss:$16 sps:$4 sm:$0xff]   ;;  %v5303_v63 = vld [vmem:[#allocation5 + $0x4a8] ss:$16 sps:$4 sm:$0xff]  }
  0xc4   :  { %3448 = vmatpush1.bf16.msra.mxu0 %v5228_v0  ;;  %3776 = vmatpush1.bf16.msra.mxu1 %v5231_v1  ;;  %v5308_v0 = vld [vmem:[#allocation5 + $0x4c4] ss:$16 sps:$4 sm:$0xff]   ;;  %v5311_v1 = vld [vmem:[#allocation5 + $0x4cc] ss:$16 sps:$4 sm:$0xff]  }
  0xc5   :  { %3449 = vmatprep.subr.bf16.mxu0 %v5236_v2  ;;  %3777 = vmatprep.subr.bf16.mxu1 %v5239_v3  ;;  %v5306_v2 = vld [vmem:[#allocation5 + $0x4c0] ss:$16 sps:$4 sm:$0xff]   ;;  %v5309_v3 = vld [vmem:[#allocation5 + $0x4c8] ss:$16 sps:$4 sm:$0xff]  }
  0xc8   :  { %3450 = vmatpush1.bf16.msra.mxu0 %v5234_v4  ;;  %3778 = vmatpush1.bf16.msra.mxu1 %v5237_v5  ;;  %v5314_v4 = vld [vmem:[#allocation5 + $0x4e4] ss:$16 sps:$4 sm:$0xff]   ;;  %v5317_v5 = vld [vmem:[#allocation5 + $0x4ec] ss:$16 sps:$4 sm:$0xff]  }
  0xc9   :  { %3451 = vmatprep.subr.bf16.mxu0 %v5242_v6  ;;  %3779 = vmatprep.subr.bf16.mxu1 %v5245_v7  ;;  %v5312_v6 = vld [vmem:[#allocation5 + $0x4e0] ss:$16 sps:$4 sm:$0xff]   ;;  %v5315_v7 = vld [vmem:[#allocation5 + $0x4e8] ss:$16 sps:$4 sm:$0xff]  }
  0xcc   :  { %3452 = vmatpush1.bf16.msra.mxu0 %v5240_v8  ;;  %3780 = vmatpush1.bf16.msra.mxu1 %v5243_v9  ;;  %v5320_v8 = vld [vmem:[#allocation5 + $0x504] ss:$16 sps:$4 sm:$0xff]   ;;  %v5323_v9 = vld [vmem:[#allocation5 + $0x50c] ss:$16 sps:$4 sm:$0xff]  }
  0xcd   :  { %3453 = vmatprep.subr.bf16.mxu0 %v5248_v10  ;;  %3781 = vmatprep.subr.bf16.mxu1 %v5251_v11  ;;  %v5318_v10 = vld [vmem:[#allocation5 + $0x500] ss:$16 sps:$4 sm:$0xff]   ;;  %v5321_v11 = vld [vmem:[#allocation5 + $0x508] ss:$16 sps:$4 sm:$0xff]  }
  0xd0   :  { %3454 = vmatpush1.bf16.msra.mxu0 %v5246_v12  ;;  %3782 = vmatpush1.bf16.msra.mxu1 %v5249_v13  ;;  %v5326_v12 = vld [vmem:[#allocation5 + $0x524] ss:$16 sps:$4 sm:$0xff]   ;;  %v5329_v13 = vld [vmem:[#allocation5 + $0x52c] ss:$16 sps:$4 sm:$0xff]  }
  0xd1   :  { %3455 = vmatprep.subr.bf16.mxu0 %v5254_v14  ;;  %3783 = vmatprep.subr.bf16.mxu1 %v5257_v15  ;;  %v5324_v14 = vld [vmem:[#allocation5 + $0x520] ss:$16 sps:$4 sm:$0xff]   ;;  %v5327_v15 = vld [vmem:[#allocation5 + $0x528] ss:$16 sps:$4 sm:$0xff]  }
  0xd4   :  { %3456 = vmatpush1.bf16.msra.mxu0 %v5252_v18  ;;  %3784 = vmatpush1.bf16.msra.mxu1 %v5255_v19  ;;  %v5332_v18 = vld [vmem:[#allocation5 + $0x544] ss:$16 sps:$4 sm:$0xff]   ;;  %v5335_v19 = vld [vmem:[#allocation5 + $0x54c] ss:$16 sps:$4 sm:$0xff]  }
  0xd5   :  { %3457 = vmatprep.subr.bf16.mxu0 %v5260_v20  ;;  %3785 = vmatprep.subr.bf16.mxu1 %v5263_v21  ;;  %v5330_v20 = vld [vmem:[#allocation5 + $0x540] ss:$16 sps:$4 sm:$0xff]   ;;  %v5333_v21 = vld [vmem:[#allocation5 + $0x548] ss:$16 sps:$4 sm:$0xff]  }
  0xd8   :  { %3458 = vmatpush1.bf16.msra.mxu0 %v5258_v22  ;;  %3786 = vmatpush1.bf16.msra.mxu1 %v5261_v23  ;;  %v5338_v22 = vld [vmem:[#allocation5 + $0x564] ss:$16 sps:$4 sm:$0xff]   ;;  %v5341_v23 = vld [vmem:[#allocation5 + $0x56c] ss:$16 sps:$4 sm:$0xff]  }
  0xd9   :  { %3459 = vmatprep.subr.bf16.mxu0 %v5266_v24  ;;  %3787 = vmatprep.subr.bf16.mxu1 %v5269_v25  ;;  %v5336_v24 = vld [vmem:[#allocation5 + $0x560] ss:$16 sps:$4 sm:$0xff]   ;;  %v5339_v25 = vld [vmem:[#allocation5 + $0x568] ss:$16 sps:$4 sm:$0xff]  }
  0xdc   :  { %3460 = vmatpush1.bf16.msra.mxu0 %v5264_v26  ;;  %3788 = vmatpush1.bf16.msra.mxu1 %v5267_v27  ;;  %v5344_v26 = vld [vmem:[#allocation5 + $0x584] ss:$16 sps:$4 sm:$0xff]   ;;  %v5347_v27 = vld [vmem:[#allocation5 + $0x58c] ss:$16 sps:$4 sm:$0xff]  }
  0xdd   :  { %3470 = vmatprep.subr.bf16.mxu0 %v5272_v29  ;;  %3798 = vmatprep.subr.bf16.mxu1 %v5275_v30  ;;  %v5345_v29 = vld [vmem:[#allocation5 + $0x588] ss:$16 sps:$4 sm:$0xff]   ;;  %v5350_v30 = vld [vmem:[#allocation5 + $0x5a4] ss:$16 sps:$4 sm:$0xff]  }
  0xdf   :  { %3462 = vmatmul.mubr.bf16.vlgmr.msra.gmra.mrb[0].mxu0 %v280_v33  ;;  %3790 = vmatmul.mubr.bf16.vlgmr.msra.gmra.mrb[0].mxu1 %v280_v33  ;;  %v5351_v33 = vld [vmem:[#allocation5 + $0x5a8] ss:$16 sps:$4 sm:$0xff]  }
  0xe0   :  { %3471 = vmatpush1.bf16.msra.mxu0 %v5270_v31  ;;  %3799 = vmatpush1.bf16.msra.mxu1 %v5273_v32  ;;  %v5353_v31 = vld [vmem:[#allocation5 + $0x5ac] ss:$16 sps:$4 sm:$0xff]   ;;  %v5348_v32 = vld [vmem:[#allocation5 + $0x5a0] ss:$16 sps:$4 sm:$0xff]  }
  0xe1   :  { %3472 = vmatprep.subr.bf16.mxu0 %v5278_v34  ;;  %3800 = vmatprep.subr.bf16.mxu1 %v5281_v35  ;;  %v5356_v34 = vld [vmem:[#allocation5 + $0x5c4] ss:$16 sps:$4 sm:$0xff]   ;;  %v5359_v35 = vld [vmem:[#allocation5 + $0x5cc] ss:$16 sps:$4 sm:$0xff]  }
  0xe2   :  { %3502 = vmatprep.mubr.bf16.mxu0 %v283_v52  ;;  %3830 = vmatprep.mubr.bf16.mxu1 %v283_v52  ;;  %v5369_v52 = vld [vmem:[#allocation5 + $0x608] ss:$16 sps:$4 sm:$0xff]  }
  0xe4   :  { %3473 = vmatpush1.bf16.msra.mxu0 %v5276_v39  ;;  %3801 = vmatpush1.bf16.msra.mxu1 %v5279_v40  ;;  %v157_v39 = vcombine.high %v6144_v16, %v6146_v17  ;;  %v5354_v40 = vld [vmem:[#allocation5 + $0x5c0] ss:$16 sps:$4 sm:$0xff]   ;;  %v5371_v16 = vld [vmem:[#allocation5 + $0x60c] ss:$16 sps:$4 sm:$0xff]  }
  0xe5   :  { %3474 = vmatprep.subr.bf16.mxu0 %v5284_v42  ;;  %3802 = vmatprep.subr.bf16.mxu1 %v5287_v44  ;;  %v5362_v42 = vld [vmem:[#allocation5 + $0x5e4] ss:$16 sps:$4 sm:$0xff]   ;;  %v5365_v44 = vld [vmem:[#allocation5 + $0x5ec] ss:$16 sps:$4 sm:$0xff]  }
  0xe8   :  { %3475 = vmatpush1.bf16.msra.mxu0 %v5282_v47  ;;  %3803 = vmatpush1.bf16.msra.mxu1 %v5285_v48  ;;  %v6165_v47 = vrot.slane %v155_v38, %v6126_v54  ;;  %v6168_v48 = vrot.slane %v157_v39, %v6126_v54  ;;  %v5440_v38 = vld [vmem:[#allocation5 + $0x784] ss:$16 sps:$4 sm:$0xff]   ;;  %v5443_v39 = vld [vmem:[#allocation5 + $0x78c] ss:$16 sps:$4 sm:$0xff]  }
  0xe9   :  { %3476 = vmatprep.subr.bf16.mxu0 %v5290_v50  ;;  %3804 = vmatprep.subr.bf16.mxu1 %v5293_v51  ;;  %v5363_v50 = vld [vmem:[#allocation5 + $0x5e8] ss:$16 sps:$4 sm:$0xff]   ;;  %v5366_v51 = vld [vmem:[#allocation5 + $0x600] ss:$16 sps:$4 sm:$0xff]  }
  0xea   :  { %v189_v17 = vcombine.high %v6165_v47, %v6168_v48 }
  0xec   :  { %3477 = vmatpush1.bf16.msra.mxu0 %v5288_v53  ;;  %3805 = vmatpush1.bf16.msra.mxu1 %v5291_v55  ;;  %v282_v53 = vpack.c.bf16 %v186_v36, %v186_v36  ;;  %v5374_v55 = vld [vmem:[#allocation5 + $0x624] ss:$16 sps:$4 sm:$0xff]  }
  0xed   :  { %3478 = vmatprep.subr.bf16.mxu0 %v5296_v56  ;;  %3806 = vmatprep.subr.bf16.mxu1 %v5299_v57  ;;  %v5377_v56 = vld [vmem:[#allocation5 + $0x62c] ss:$16 sps:$4 sm:$0xff]   ;;  %v285_v57 = vpack.c.bf16 %v189_v17, %v189_v17  ;;  %v88_v36 = vld [vmem:[#allocation2 + $0x10] sm:$0xff] }
  0xee   :  { %v100_v17 = vld [vmem:[#allocation2 + $0x70] sm:$0xff] }
  0xf0   :  { %3479 = vmatpush1.bf16.msra.mxu0 %v5294_v58  ;;  %3807 = vmatpush1.bf16.msra.mxu1 %v5297_v59  ;;  %v5380_v58 = vld [vmem:[#allocation5 + $0x644] ss:$16 sps:$4 sm:$0xff]   ;;  %v5383_v59 = vld [vmem:[#allocation5 + $0x64c] ss:$16 sps:$4 sm:$0xff]  }
  0xf1   :  { %3480 = vmatprep.subr.bf16.mxu0 %v5302_v60  ;;  %3808 = vmatprep.subr.bf16.mxu1 %v5305_v61  ;;  %v5378_v60 = vld [vmem:[#allocation5 + $0x640] ss:$16 sps:$4 sm:$0xff]   ;;  %v5381_v61 = vld [vmem:[#allocation5 + $0x648] ss:$16 sps:$4 sm:$0xff]  }
  0xf4   :  { %3481 = vmatpush1.bf16.msra.mxu0 %v5300_v62  ;;  %3809 = vmatpush1.bf16.msra.mxu1 %v5303_v63  ;;  %v5386_v62 = vld [vmem:[#allocation5 + $0x664] ss:$16 sps:$4 sm:$0xff]   ;;  %v5389_v63 = vld [vmem:[#allocation5 + $0x66c] ss:$16 sps:$4 sm:$0xff]  }
  0xf5   :  { %3482 = vmatprep.subr.bf16.mxu0 %v5308_v0  ;;  %3810 = vmatprep.subr.bf16.mxu1 %v5311_v1  ;;  %v5384_v0 = vld [vmem:[#allocation5 + $0x660] ss:$16 sps:$4 sm:$0xff]   ;;  %v5387_v1 = vld [vmem:[#allocation5 + $0x668] ss:$16 sps:$4 sm:$0xff]  }
  0xf8   :  { %3483 = vmatpush1.bf16.msra.mxu0 %v5306_v2  ;;  %3811 = vmatpush1.bf16.msra.mxu1 %v5309_v3  ;;  %v5392_v2 = vld [vmem:[#allocation5 + $0x684] ss:$16 sps:$4 sm:$0xff]   ;;  %v5395_v3 = vld [vmem:[#allocation5 + $0x68c] ss:$16 sps:$4 sm:$0xff]  }
  0xf9   :  { %3484 = vmatprep.subr.bf16.mxu0 %v5314_v4  ;;  %3812 = vmatprep.subr.bf16.mxu1 %v5317_v5  ;;  %v5390_v4 = vld [vmem:[#allocation5 + $0x680] ss:$16 sps:$4 sm:$0xff]   ;;  %v5393_v5 = vld [vmem:[#allocation5 + $0x688] ss:$16 sps:$4 sm:$0xff]  }
  0xfc   :  { %3485 = vmatpush1.bf16.msra.mxu0 %v5312_v6  ;;  %3813 = vmatpush1.bf16.msra.mxu1 %v5315_v7  ;;  %v5398_v6 = vld [vmem:[#allocation5 + $0x6a4] ss:$16 sps:$4 sm:$0xff]   ;;  %v5401_v7 = vld [vmem:[#allocation5 + $0x6ac] ss:$16 sps:$4 sm:$0xff]  }
  0xfd   :  { %3486 = vmatprep.subr.bf16.mxu0 %v5320_v8  ;;  %3814 = vmatprep.subr.bf16.mxu1 %v5323_v9  ;;  %v5396_v8 = vld [vmem:[#allocation5 + $0x6a0] ss:$16 sps:$4 sm:$0xff]   ;;  %v5399_v9 = vld [vmem:[#allocation5 + $0x6a8] ss:$16 sps:$4 sm:$0xff]  }
 0x100   :  { %3487 = vmatpush1.bf16.msra.mxu0 %v5318_v10  ;;  %3815 = vmatpush1.bf16.msra.mxu1 %v5321_v11  ;;  %v5404_v10 = vld [vmem:[#allocation5 + $0x6c4] ss:$16 sps:$4 sm:$0xff]   ;;  %v5407_v11 = vld [vmem:[#allocation5 + $0x6cc] ss:$16 sps:$4 sm:$0xff]  }
 0x101   :  { %3488 = vmatprep.subr.bf16.mxu0 %v5326_v12  ;;  %3816 = vmatprep.subr.bf16.mxu1 %v5329_v13  ;;  %v5402_v12 = vld [vmem:[#allocation5 + $0x6c0] ss:$16 sps:$4 sm:$0xff]   ;;  %v5405_v13 = vld [vmem:[#allocation5 + $0x6c8] ss:$16 sps:$4 sm:$0xff]  }
 0x104   :  { %3489 = vmatpush1.bf16.msra.mxu0 %v5324_v14  ;;  %3817 = vmatpush1.bf16.msra.mxu1 %v5327_v15  ;;  %v5410_v14 = vld [vmem:[#allocation5 + $0x6e4] ss:$16 sps:$4 sm:$0xff]   ;;  %v5413_v15 = vld [vmem:[#allocation5 + $0x6ec] ss:$16 sps:$4 sm:$0xff]  }
 0x105   :  { %3490 = vmatprep.subr.bf16.mxu0 %v5332_v18  ;;  %3818 = vmatprep.subr.bf16.mxu1 %v5335_v19  ;;  %v5408_v18 = vld [vmem:[#allocation5 + $0x6e0] ss:$16 sps:$4 sm:$0xff]   ;;  %v5411_v19 = vld [vmem:[#allocation5 + $0x6e8] ss:$16 sps:$4 sm:$0xff]  }
 0x108   :  { %3491 = vmatpush1.bf16.msra.mxu0 %v5330_v20  ;;  %3819 = vmatpush1.bf16.msra.mxu1 %v5333_v21  ;;  %v5416_v20 = vld [vmem:[#allocation5 + $0x704] ss:$16 sps:$4 sm:$0xff]   ;;  %v5419_v21 = vld [vmem:[#allocation5 + $0x70c] ss:$16 sps:$4 sm:$0xff]  }
 0x109   :  { %3492 = vmatprep.subr.bf16.mxu0 %v5338_v22  ;;  %3820 = vmatprep.subr.bf16.mxu1 %v5341_v23  ;;  %v5414_v22 = vld [vmem:[#allocation5 + $0x700] ss:$16 sps:$4 sm:$0xff]   ;;  %v5417_v23 = vld [vmem:[#allocation5 + $0x708] ss:$16 sps:$4 sm:$0xff]  }
 0x10c   :  { %3493 = vmatpush1.bf16.msra.mxu0 %v5336_v24  ;;  %3821 = vmatpush1.bf16.msra.mxu1 %v5339_v25  ;;  %v5422_v24 = vld [vmem:[#allocation5 + $0x724] ss:$16 sps:$4 sm:$0xff]   ;;  %v5425_v25 = vld [vmem:[#allocation5 + $0x72c] ss:$16 sps:$4 sm:$0xff]  }
 0x10d   :  { %3494 = vmatprep.subr.bf16.mxu0 %v5344_v26  ;;  %3822 = vmatprep.subr.bf16.mxu1 %v5347_v27  ;;  %v5420_v26 = vld [vmem:[#allocation5 + $0x720] ss:$16 sps:$4 sm:$0xff]   ;;  %v5423_v27 = vld [vmem:[#allocation5 + $0x728] ss:$16 sps:$4 sm:$0xff]  }
 0x110   :  { %3495 = vmatpush1.bf16.msra.mxu0 %v5342_v28  ;;  %3823 = vmatpush1.bf16.msra.mxu1 %v5345_v29  ;;  %v5428_v28 = vld [vmem:[#allocation5 + $0x744] ss:$16 sps:$4 sm:$0xff]   ;;  %v5431_v29 = vld [vmem:[#allocation5 + $0x74c] ss:$16 sps:$4 sm:$0xff]  }
 0x111   :  { %3496 = vmatprep.subr.bf16.mxu0 %v5350_v30  ;;  %3824 = vmatprep.subr.bf16.mxu1 %v5353_v31  ;;  %v5426_v30 = vld [vmem:[#allocation5 + $0x740] ss:$16 sps:$4 sm:$0xff]   ;;  %v5429_v31 = vld [vmem:[#allocation5 + $0x748] ss:$16 sps:$4 sm:$0xff]  }
 0x114   :  { %3497 = vmatpush1.bf16.msra.mxu0 %v5348_v32  ;;  %3825 = vmatpush1.bf16.msra.mxu1 %v5351_v33  ;;  %v5434_v32 = vld [vmem:[#allocation5 + $0x764] ss:$16 sps:$4 sm:$0xff]   ;;  %v5437_v33 = vld [vmem:[#allocation5 + $0x76c] ss:$16 sps:$4 sm:$0xff]  }
 0x115   :  { %3498 = vmatprep.subr.bf16.mxu0 %v5356_v34  ;;  %3826 = vmatprep.subr.bf16.mxu1 %v5359_v35  ;;  %v5432_v34 = vld [vmem:[#allocation5 + $0x760] ss:$16 sps:$4 sm:$0xff]   ;;  %v5435_v35 = vld [vmem:[#allocation5 + $0x768] ss:$16 sps:$4 sm:$0xff]  }
 0x118   :  { %3499 = vmatpush1.bf16.msra.mxu0 %v5354_v40  ;;  %3827 = vmatpush1.bf16.msra.mxu1 %v5357_v41  ;;  %v5438_v40 = vld [vmem:[#allocation5 + $0x780] ss:$16 sps:$4 sm:$0xff]   ;;  %v5441_v41 = vld [vmem:[#allocation5 + $0x788] ss:$16 sps:$4 sm:$0xff]  }
 0x119   :  { %3500 = vmatprep.subr.bf16.mxu0 %v5362_v42  ;;  %3828 = vmatprep.subr.bf16.mxu1 %v5365_v44  ;;  %v5446_v42 = vld [vmem:[#allocation5 + $0x7a4] ss:$16 sps:$4 sm:$0xff]   ;;  %v5449_v44 = vld [vmem:[#allocation5 + $0x7ac] ss:$16 sps:$4 sm:$0xff]  }
 0x11c   :  { %3501 = vmatpush1.bf16.msra.mxu0 %v5360_v49  ;;  %3829 = vmatpush1.bf16.msra.mxu1 %v5363_v50  ;;  %v5444_v49 = vld [vmem:[#allocation5 + $0x7a0] ss:$16 sps:$4 sm:$0xff]   ;;  %v5447_v50 = vld [vmem:[#allocation5 + $0x7a8] ss:$16 sps:$4 sm:$0xff]  }
 0x11d   :  { %3511 = vmatprep.subr.bf16.mxu0 %v5368_v37  ;;  %3839 = vmatprep.subr.bf16.mxu1 %v5371_v16  ;;  %v92_v37 = vld [vmem:[#allocation2 + $0x30] sm:$0xff] }
 0x11e   :  { %v96_v16 = vld [vmem:[#allocation2 + $0x50] sm:$0xff] }
 0x11f   :  { %3503 = vmatmul.mubr.bf16.vlgmr.msra.gmra.mrb[0].mxu0 %v282_v53  ;;  %3831 = vmatmul.mubr.bf16.vlgmr.msra.gmra.mrb[0].mxu1 %v282_v53  ;;  %v190_v53 = vcombine.low %v88_v36, %v92_v37 }
 0x120   :  { %3512 = vmatpush1.bf16.msra.mxu0 %v5366_v51  ;;  %3840 = vmatpush1.bf16.msra.mxu1 %v5369_v52  ;;  %v5452_v51 = vld [vmem:[#allocation5 + $0x7c4] ss:$16 sps:$4 sm:$0xff]   ;;  %v5455_v52 = vld [vmem:[#allocation5 + $0x7cc] ss:$16 sps:$4 sm:$0xff]  }
 0x121   :  { %3513 = vmatprep.subr.bf16.mxu0 %v5374_v55  ;;  %3841 = vmatprep.subr.bf16.mxu1 %v5377_v56  ;;  %v192_v55 = vcombine.low %v96_v16, %v100_v17  ;;  %v5450_v56 = vld [vmem:[#allocation5 + $0x7c0] ss:$16 sps:$4 sm:$0xff]  }
 0x122   :  { %3543 = vmatprep.mubr.bf16.mxu0 %v285_v57  ;;  %3871 = vmatprep.mubr.bf16.mxu1 %v285_v57  ;;  %v5453_v57 = vld [vmem:[#allocation5 + $0x7c8] ss:$16 sps:$4 sm:$0xff]  }
 0x124   :  { %3514 = vmatpush1.bf16.msra.mxu0 %v5372_v43  ;;  %3842 = vmatpush1.bf16.msra.mxu1 %v5375_v45  ;;  %v5458_v43 = vld [vmem:[#allocation5 + $0x7e4] ss:$16 sps:$4 sm:$0xff]   ;;  %v5461_v45 = vld [vmem:[#allocation5 + $0x7ec] ss:$16 sps:$4 sm:$0xff]  }
 0x125   :  { %3515 = vmatprep.subr.bf16.mxu0 %v5380_v58  ;;  %3843 = vmatprep.subr.bf16.mxu1 %v5383_v59  ;;  %v6175_v58 = vrot.slane %v190_v53, %v6126_v54  ;;  %v6178_v59 = vrot.slane %v192_v55, %v6126_v54  ;;  %v5522_v53 = vld [vmem:[#allocation5 + $0x940] ss:$16 sps:$4 sm:$0xff]   ;;  %v5525_v55 = vld [vmem:[#allocation5 + $0x948] ss:$16 sps:$4 sm:$0xff]  }
 0x128   :  { %3516 = vmatpush1.bf16.msra.mxu0 %v5378_v60  ;;  %3844 = vmatpush1.bf16.msra.mxu1 %v5381_v61  ;;  %v5456_v60 = vld [vmem:[#allocation5 + $0x7e0] ss:$16 sps:$4 sm:$0xff]   ;;  %v5459_v61 = vld [vmem:[#allocation5 + $0x7e8] ss:$16 sps:$4 sm:$0xff]  }
 0x129   :  { %3517 = vmatprep.subr.bf16.mxu0 %v5386_v62  ;;  %3845 = vmatprep.subr.bf16.mxu1 %v5389_v63  ;;  %v188_v62 = vcombine.low %v6165_v47, %v6168_v48  ;;  %v191_v63 = vcombine.high %v88_v36, %v92_v37  ;;  %v5470_v47 = vld [vmem:[#allocation5 + $0x824] ss:$16 sps:$4 sm:$0xff]   ;;  %v5521_v37 = vld [vmem:[#allocation5 + $0x92c] ss:$16 sps:$4 sm:$0xff]  }
 0x12a   :  { %v5518_v36 = vld [vmem:[#allocation5 + $0x924] ss:$16 sps:$4 sm:$0xff]  }
 0x12c   :  { %3518 = vmatpush1.bf16.msra.mxu0 %v5384_v0  ;;  %3846 = vmatpush1.bf16.msra.mxu1 %v5387_v1  ;;  %v193_v0 = vcombine.high %v96_v16, %v100_v17  ;;  %v5464_v1 = vld [vmem:[#allocation5 + $0x804] ss:$16 sps:$4 sm:$0xff]   ;;  %v5516_v16 = vld [vmem:[#allocation5 + $0x920] ss:$16 sps:$4 sm:$0xff]   ;;  %v5519_v17 = vld [vmem:[#allocation5 + $0x928] ss:$16 sps:$4 sm:$0xff]  }
 0x12d   :  { %3519 = vmatprep.subr.bf16.mxu0 %v5392_v2  ;;  %3847 = vmatprep.subr.bf16.mxu1 %v5395_v3  ;;  %v5467_v2 = vld [vmem:[#allocation5 + $0x80c] ss:$16 sps:$4 sm:$0xff]   ;;  %v207_v3 = vrot.slane %v191_v63, %v6126_v54  ;;  %v5537_v63 = vld [vmem:[#allocation5 + $0x988] ss:$16 sps:$4 sm:$0xff]  }
 0x130   :  { %3520 = vmatpush1.bf16.msra.mxu0 %v5390_v4  ;;  %3848 = vmatpush1.bf16.msra.mxu1 %v5393_v5  ;;  %v221_v4 = vrot.slane %v193_v0, %v6126_v54  ;;  %v223_v5 = vcombine.high %v6175_v58, %v6178_v59  ;;  %v5542_v0 = vld [vmem:[#allocation5 + $0x9a4] ss:$16 sps:$4 sm:$0xff]  }
 0x131   :  { %3521 = vmatprep.subr.bf16.mxu0 %v5398_v6  ;;  %3849 = vmatprep.subr.bf16.mxu1 %v5401_v7  ;;  %v5462_v6 = vld [vmem:[#allocation5 + $0x800] ss:$16 sps:$4 sm:$0xff]   ;;  %v5465_v7 = vld [vmem:[#allocation5 + $0x808] ss:$16 sps:$4 sm:$0xff]  }
 0x132   :  { %v6188_v48 = vcombine.low %v207_v3, %v221_v4 }
 0x134   :  { %3522 = vmatpush1.bf16.msra.mxu0 %v5396_v8  ;;  %3850 = vmatpush1.bf16.msra.mxu1 %v5399_v9  ;;  %v284_v8 = vpack.c.bf16 %v188_v62, %v188_v62  ;;  %v6186_v9 = vcombine.high %v207_v3, %v221_v4  ;;  %v5534_v62 = vld [vmem:[#allocation5 + $0x980] ss:$16 sps:$4 sm:$0xff]   ;;  %v5543_v3 = vld [vmem:[#allocation5 + $0x9a8] ss:$16 sps:$4 sm:$0xff]   ;;  %v5548_v4 = vld [vmem:[#allocation5 + $0x9c4] ss:$16 sps:$4 sm:$0xff]  }
 0x135   :  { %3523 = vmatprep.subr.bf16.mxu0 %v5404_v10  ;;  %3851 = vmatprep.subr.bf16.mxu1 %v5407_v11  ;;  %v5473_v10 = vld [vmem:[#allocation5 + $0x82c] ss:$16 sps:$4 sm:$0xff]   ;;  %v287_v11 = vpack.c.bf16 %v223_v5, %v223_v5 }
 0x136   :  { %v5551_v5 = vld [vmem:[#allocation5 + $0x9cc] ss:$16 sps:$4 sm:$0xff]  }
 0x138   :  { %3524 = vmatpush1.bf16.msra.mxu0 %v5402_v12  ;;  %3852 = vmatpush1.bf16.msra.mxu1 %v5405_v13  ;;  %v5468_v12 = vld [vmem:[#allocation5 + $0x820] ss:$16 sps:$4 sm:$0xff]   ;;  %v5471_v13 = vld [vmem:[#allocation5 + $0x828] ss:$16 sps:$4 sm:$0xff]  }
 0x139   :  { %3525 = vmatprep.subr.bf16.mxu0 %v5410_v14  ;;  %3853 = vmatprep.subr.bf16.mxu1 %v5413_v15  ;;  %v5476_v14 = vld [vmem:[#allocation5 + $0x844] ss:$16 sps:$4 sm:$0xff]   ;;  %v5479_v15 = vld [vmem:[#allocation5 + $0x84c] ss:$16 sps:$4 sm:$0xff]  }
 0x13c   :  { %3526 = vmatpush1.bf16.msra.mxu0 %v5408_v18  ;;  %3854 = vmatpush1.bf16.msra.mxu1 %v5411_v19  ;;  %v5474_v18 = vld [vmem:[#allocation5 + $0x840] ss:$16 sps:$4 sm:$0xff]   ;;  %v5477_v19 = vld [vmem:[#allocation5 + $0x848] ss:$16 sps:$4 sm:$0xff]  }
 0x13d   :  { %3527 = vmatprep.subr.bf16.mxu0 %v5416_v20  ;;  %3855 = vmatprep.subr.bf16.mxu1 %v5419_v21  ;;  %v5482_v20 = vld [vmem:[#allocation5 + $0x864] ss:$16 sps:$4 sm:$0xff]   ;;  %v5485_v21 = vld [vmem:[#allocation5 + $0x86c] ss:$16 sps:$4 sm:$0xff]  }
 0x140   :  { %3528 = vmatpush1.bf16.msra.mxu0 %v5414_v22  ;;  %3856 = vmatpush1.bf16.msra.mxu1 %v5417_v23  ;;  %v5480_v22 = vld [vmem:[#allocation5 + $0x860] ss:$16 sps:$4 sm:$0xff]   ;;  %v5483_v23 = vld [vmem:[#allocation5 + $0x868] ss:$16 sps:$4 sm:$0xff]  }
 0x141   :  { %3529 = vmatprep.subr.bf16.mxu0 %v5422_v24  ;;  %3857 = vmatprep.subr.bf16.mxu1 %v5425_v25  ;;  %v5488_v24 = vld [vmem:[#allocation5 + $0x884] ss:$16 sps:$4 sm:$0xff]   ;;  %v5491_v25 = vld [vmem:[#allocation5 + $0x88c] ss:$16 sps:$4 sm:$0xff]  }
 0x144   :  { %3530 = vmatpush1.bf16.msra.mxu0 %v5420_v26  ;;  %3858 = vmatpush1.bf16.msra.mxu1 %v5423_v27  ;;  %v5486_v26 = vld [vmem:[#allocation5 + $0x880] ss:$16 sps:$4 sm:$0xff]   ;;  %v5489_v27 = vld [vmem:[#allocation5 + $0x888] ss:$16 sps:$4 sm:$0xff]  }
 0x145   :  { %3531 = vmatprep.subr.bf16.mxu0 %v5428_v28  ;;  %3859 = vmatprep.subr.bf16.mxu1 %v5431_v29  ;;  %v5494_v28 = vld [vmem:[#allocation5 + $0x8a4] ss:$16 sps:$4 sm:$0xff]   ;;  %v5497_v29 = vld [vmem:[#allocation5 + $0x8ac] ss:$16 sps:$4 sm:$0xff]  }
 0x148   :  { %3532 = vmatpush1.bf16.msra.mxu0 %v5426_v30  ;;  %3860 = vmatpush1.bf16.msra.mxu1 %v5429_v31  ;;  %v5492_v30 = vld [vmem:[#allocation5 + $0x8a0] ss:$16 sps:$4 sm:$0xff]   ;;  %v5495_v31 = vld [vmem:[#allocation5 + $0x8a8] ss:$16 sps:$4 sm:$0xff]  }
 0x149   :  { %3533 = vmatprep.subr.bf16.mxu0 %v5434_v32  ;;  %3861 = vmatprep.subr.bf16.mxu1 %v5437_v33  ;;  %v5500_v32 = vld [vmem:[#allocation5 + $0x8c4] ss:$16 sps:$4 sm:$0xff]   ;;  %v5503_v33 = vld [vmem:[#allocation5 + $0x8cc] ss:$16 sps:$4 sm:$0xff]  }
 0x14c   :  { %3534 = vmatpush1.bf16.msra.mxu0 %v5432_v34  ;;  %3862 = vmatpush1.bf16.msra.mxu1 %v5435_v35  ;;  %v5498_v34 = vld [vmem:[#allocation5 + $0x8c0] ss:$16 sps:$4 sm:$0xff]   ;;  %v5501_v35 = vld [vmem:[#allocation5 + $0x8c8] ss:$16 sps:$4 sm:$0xff]  }
 0x14d   :  { %3535 = vmatprep.subr.bf16.mxu0 %v5440_v38  ;;  %3863 = vmatprep.subr.bf16.mxu1 %v5443_v39  ;;  %v5506_v38 = vld [vmem:[#allocation5 + $0x8e4] ss:$16 sps:$4 sm:$0xff]   ;;  %v5509_v39 = vld [vmem:[#allocation5 + $0x8ec] ss:$16 sps:$4 sm:$0xff]  }
 0x150   :  { %3536 = vmatpush1.bf16.msra.mxu0 %v5438_v40  ;;  %3864 = vmatpush1.bf16.msra.mxu1 %v5441_v41  ;;  %v5504_v40 = vld [vmem:[#allocation5 + $0x8e0] ss:$16 sps:$4 sm:$0xff]   ;;  %v5507_v41 = vld [vmem:[#allocation5 + $0x8e8] ss:$16 sps:$4 sm:$0xff]  }
 0x151   :  { %3537 = vmatprep.subr.bf16.mxu0 %v5446_v42  ;;  %3865 = vmatprep.subr.bf16.mxu1 %v5449_v44  ;;  %v5512_v42 = vld [vmem:[#allocation5 + $0x904] ss:$16 sps:$4 sm:$0xff]   ;;  %v5515_v44 = vld [vmem:[#allocation5 + $0x90c] ss:$16 sps:$4 sm:$0xff]  }
 0x154   :  { %3538 = vmatpush1.bf16.msra.mxu0 %v5444_v49  ;;  %3866 = vmatpush1.bf16.msra.mxu1 %v5447_v50  ;;  %v5510_v49 = vld [vmem:[#allocation5 + $0x900] ss:$16 sps:$4 sm:$0xff]   ;;  %v5513_v50 = vld [vmem:[#allocation5 + $0x908] ss:$16 sps:$4 sm:$0xff]  }
 0x155   :  { %3539 = vmatprep.subr.bf16.mxu0 %v5452_v51  ;;  %3867 = vmatprep.subr.bf16.mxu1 %v5455_v52  ;;  %v5524_v51 = vld [vmem:[#allocation5 + $0x944] ss:$16 sps:$4 sm:$0xff]   ;;  %v5527_v52 = vld [vmem:[#allocation5 + $0x94c] ss:$16 sps:$4 sm:$0xff]  }
 0x158   :  { %3540 = vmatpush1.bf16.msra.mxu0 %v5450_v56  ;;  %3868 = vmatpush1.bf16.msra.mxu1 %v5453_v57  ;;  %v5530_v56 = vld [vmem:[#allocation5 + $0x964] ss:$16 sps:$4 sm:$0xff]   ;;  %v5533_v57 = vld [vmem:[#allocation5 + $0x96c] ss:$16 sps:$4 sm:$0xff]  }
 0x159   :  { %3541 = vmatprep.subr.bf16.mxu0 %v5458_v43  ;;  %3869 = vmatprep.subr.bf16.mxu1 %v5461_v45  ;;  %v5528_v43 = vld [vmem:[#allocation5 + $0x960] ss:$16 sps:$4 sm:$0xff]   ;;  %v5531_v45 = vld [vmem:[#allocation5 + $0x968] ss:$16 sps:$4 sm:$0xff]  }
 0x15c   :  { %3542 = vmatpush1.bf16.msra.mxu0 %v5456_v60  ;;  %3870 = vmatpush1.bf16.msra.mxu1 %v5459_v61  ;;  %v5536_v60 = vld [vmem:[#allocation5 + $0x984] ss:$16 sps:$4 sm:$0xff]   ;;  %v5539_v61 = vld [vmem:[#allocation5 + $0x98c] ss:$16 sps:$4 sm:$0xff]  }
 0x15d   :  { %3552 = vmatprep.subr.bf16.mxu0 %v5464_v1  ;;  %3880 = vmatprep.subr.bf16.mxu1 %v5467_v2  ;;  %v5545_v1 = vld [vmem:[#allocation5 + $0x9ac] ss:$16 sps:$4 sm:$0xff]   ;;  %v5540_v2 = vld [vmem:[#allocation5 + $0x9a0] ss:$16 sps:$4 sm:$0xff]  }
 0x15f   :  { %3544 = vmatmul.mubr.bf16.vlgmr.msra.gmra.mrb[0].mxu0 %v284_v8  ;;  %3872 = vmatmul.mubr.bf16.vlgmr.msra.gmra.mrb[0].mxu1 %v284_v8  ;;  %v5554_v8 = vld [vmem:[#allocation5 + $0x9e4] ss:$16 sps:$4 sm:$0xff]  }
 0x160   :  { %3553 = vmatpush1.bf16.msra.mxu0 %v5462_v6  ;;  %3881 = vmatpush1.bf16.msra.mxu1 %v5465_v7  ;;  %v5546_v6 = vld [vmem:[#allocation5 + $0x9c0] ss:$16 sps:$4 sm:$0xff]   ;;  %v5549_v7 = vld [vmem:[#allocation5 + $0x9c8] ss:$16 sps:$4 sm:$0xff]  }
 0x161   :  { %3554 = vmatprep.subr.bf16.mxu0 %v5470_v47  ;;  %3882 = vmatprep.subr.bf16.mxu1 %v5473_v10  ;;  %v5557_v47 = vld [vmem:[#allocation5 + $0x9ec] ss:$16 sps:$4 sm:$0xff]   ;;  %v222_v10 = vcombine.low %v6175_v58, %v6178_v59  ;;  %v289_v58 = vpack.c.bf16 %v6186_v9, %v6186_v9  ;;  %v5564_v59 = vld [vmem:[#allocation5 + $0xa20] ss:$16 sps:$4 sm:$0xff]  }
 0x162   :  { %3584 = vmatprep.mubr.bf16.mxu0 %v287_v11  ;;  %3912 = vmatprep.mubr.bf16.mxu1 %v287_v11  ;;  %v5552_v11 = vld [vmem:[#allocation5 + $0x9e0] ss:$16 sps:$4 sm:$0xff]   ;;  %v5581_v9 = vld [vmem:[#allocation5 + $0xa6c] ss:$16 sps:$4 sm:$0xff]  }
 0x164   :  { %3555 = vmatpush1.bf16.msra.mxu0 %v5468_v12  ;;  %3883 = vmatpush1.bf16.msra.mxu1 %v5471_v13  ;;  %v5555_v12 = vld [vmem:[#allocation5 + $0x9e8] ss:$16 sps:$4 sm:$0xff]   ;;  %v5560_v13 = vld [vmem:[#allocation5 + $0xa04] ss:$16 sps:$4 sm:$0xff]  }
 0x165   :  { %3556 = vmatprep.subr.bf16.mxu0 %v5476_v14  ;;  %3884 = vmatprep.subr.bf16.mxu1 %v5479_v15  ;;  %v5563_v14 = vld [vmem:[#allocation5 + $0xa0c] ss:$16 sps:$4 sm:$0xff]   ;;  %v286_v15 = vpack.c.bf16 %v222_v10, %v222_v10 }
 0x166   :  { %v97_v10 = vld [vmem:[#allocation2 + $0x58] sm:$0xff] }
 0x168   :  { %3557 = vmatpush1.bf16.msra.mxu0 %v5474_v18  ;;  %3885 = vmatpush1.bf16.msra.mxu1 %v5477_v19  ;;  %v5558_v18 = vld [vmem:[#allocation5 + $0xa00] ss:$16 sps:$4 sm:$0xff]   ;;  %v5561_v19 = vld [vmem:[#allocation5 + $0xa08] ss:$16 sps:$4 sm:$0xff]  }
 0x169   :  { %3558 = vmatprep.subr.bf16.mxu0 %v5482_v20  ;;  %3886 = vmatprep.subr.bf16.mxu1 %v5485_v21  ;;  %v5566_v20 = vld [vmem:[#allocation5 + $0xa24] ss:$16 sps:$4 sm:$0xff]   ;;  %v5569_v21 = vld [vmem:[#allocation5 + $0xa2c] ss:$16 sps:$4 sm:$0xff]  }
 0x16c   :  { %3559 = vmatpush1.bf16.msra.mxu0 %v5480_v22  ;;  %3887 = vmatpush1.bf16.msra.mxu1 %v5483_v23  ;;  %v5567_v22 = vld [vmem:[#allocation5 + $0xa28] ss:$16 sps:$4 sm:$0xff]   ;;  %v5572_v23 = vld [vmem:[#allocation5 + $0xa44] ss:$16 sps:$4 sm:$0xff]  }
 0x16d   :  { %3560 = vmatprep.subr.bf16.mxu0 %v5488_v24  ;;  %3888 = vmatprep.subr.bf16.mxu1 %v5491_v25  ;;  %v5575_v24 = vld [vmem:[#allocation5 + $0xa4c] ss:$16 sps:$4 sm:$0xff]   ;;  %v5570_v25 = vld [vmem:[#allocation5 + $0xa40] ss:$16 sps:$4 sm:$0xff]  }
 0x170   :  { %3561 = vmatpush1.bf16.msra.mxu0 %v5486_v26  ;;  %3889 = vmatpush1.bf16.msra.mxu1 %v5489_v27  ;;  %v5573_v26 = vld [vmem:[#allocation5 + $0xa48] ss:$16 sps:$4 sm:$0xff]   ;;  %v5578_v27 = vld [vmem:[#allocation5 + $0xa64] ss:$16 sps:$4 sm:$0xff]  }
 0x171   :  { %3562 = vmatprep.subr.bf16.mxu0 %v5494_v28  ;;  %3890 = vmatprep.subr.bf16.mxu1 %v5497_v29  ;;  %v5576_v28 = vld [vmem:[#allocation5 + $0xa60] ss:$16 sps:$4 sm:$0xff]   ;;  %v5579_v29 = vld [vmem:[#allocation5 + $0xa68] ss:$16 sps:$4 sm:$0xff]  }
 0x174   :  { %3563 = vmatpush1.bf16.msra.mxu0 %v5492_v30  ;;  %3891 = vmatpush1.bf16.msra.mxu1 %v5495_v31  ;;  %v5584_v30 = vld [vmem:[#allocation5 + $0xa84] ss:$16 sps:$4 sm:$0xff]   ;;  %v5587_v31 = vld [vmem:[#allocation5 + $0xa8c] ss:$16 sps:$4 sm:$0xff]  }
 0x175   :  { %3564 = vmatprep.subr.bf16.mxu0 %v5500_v32  ;;  %3892 = vmatprep.subr.bf16.mxu1 %v5503_v33  ;;  %v5582_v32 = vld [vmem:[#allocation5 + $0xa80] ss:$16 sps:$4 sm:$0xff]   ;;  %v5585_v33 = vld [vmem:[#allocation5 + $0xa88] ss:$16 sps:$4 sm:$0xff]  }
 0x178   :  { %3565 = vmatpush1.bf16.msra.mxu0 %v5498_v34  ;;  %3893 = vmatpush1.bf16.msra.mxu1 %v5501_v35  ;;  %v5590_v34 = vld [vmem:[#allocation5 + $0xaa4] ss:$16 sps:$4 sm:$0xff]   ;;  %v5593_v35 = vld [vmem:[#allocation5 + $0xaac] ss:$16 sps:$4 sm:$0xff]  }
 0x179   :  { %3566 = vmatprep.subr.bf16.mxu0 %v5506_v38  ;;  %3894 = vmatprep.subr.bf16.mxu1 %v5509_v39  ;;  %v5588_v38 = vld [vmem:[#allocation5 + $0xaa0] ss:$16 sps:$4 sm:$0xff]   ;;  %v5591_v39 = vld [vmem:[#allocation5 + $0xaa8] ss:$16 sps:$4 sm:$0xff]  }
 0x17c   :  { %3567 = vmatpush1.bf16.msra.mxu0 %v5504_v40  ;;  %3895 = vmatpush1.bf16.msra.mxu1 %v5507_v41  ;;  %v5596_v40 = vld [vmem:[#allocation5 + $0xac4] ss:$16 sps:$4 sm:$0xff]   ;;  %v5599_v41 = vld [vmem:[#allocation5 + $0xacc] ss:$16 sps:$4 sm:$0xff]  }
 0x17d   :  { %3568 = vmatprep.subr.bf16.mxu0 %v5512_v42  ;;  %3896 = vmatprep.subr.bf16.mxu1 %v5515_v44  ;;  %v5594_v42 = vld [vmem:[#allocation5 + $0xac0] ss:$16 sps:$4 sm:$0xff]   ;;  %v5597_v44 = vld [vmem:[#allocation5 + $0xac8] ss:$16 sps:$4 sm:$0xff]  }
 0x180   :  { %3569 = vmatpush1.bf16.msra.mxu0 %v5510_v49  ;;  %3897 = vmatpush1.bf16.msra.mxu1 %v5513_v50  ;;  %v5602_v49 = vld [vmem:[#allocation5 + $0xae4] ss:$16 sps:$4 sm:$0xff]   ;;  %v5605_v50 = vld [vmem:[#allocation5 + $0xaec] ss:$16 sps:$4 sm:$0xff]  }
 0x181   :  { %3570 = vmatprep.subr.bf16.mxu0 %v5518_v36  ;;  %3898 = vmatprep.subr.bf16.mxu1 %v5521_v37  ;;  %v5600_v36 = vld [vmem:[#allocation5 + $0xae0] ss:$16 sps:$4 sm:$0xff]   ;;  %v5603_v37 = vld [vmem:[#allocation5 + $0xae8] ss:$16 sps:$4 sm:$0xff]  }
 0x184   :  { %3571 = vmatpush1.bf16.msra.mxu0 %v5516_v16  ;;  %3899 = vmatpush1.bf16.msra.mxu1 %v5519_v17  ;;  %v5608_v16 = vld [vmem:[#allocation5 + $0xb04] ss:$16 sps:$4 sm:$0xff]   ;;  %v5611_v17 = vld [vmem:[#allocation5 + $0xb0c] ss:$16 sps:$4 sm:$0xff]  }
 0x185   :  { %3572 = vmatprep.subr.bf16.mxu0 %v5524_v51  ;;  %3900 = vmatprep.subr.bf16.mxu1 %v5527_v52  ;;  %v5606_v51 = vld [vmem:[#allocation5 + $0xb00] ss:$16 sps:$4 sm:$0xff]   ;;  %v5609_v52 = vld [vmem:[#allocation5 + $0xb08] ss:$16 sps:$4 sm:$0xff]  }
 0x188   :  { %3573 = vmatpush1.bf16.msra.mxu0 %v5522_v53  ;;  %3901 = vmatpush1.bf16.msra.mxu1 %v5525_v55  ;;  %v5614_v53 = vld [vmem:[#allocation5 + $0xb24] ss:$16 sps:$4 sm:$0xff]   ;;  %v5617_v55 = vld [vmem:[#allocation5 + $0xb2c] ss:$16 sps:$4 sm:$0xff]  }
 0x189   :  { %3574 = vmatprep.subr.bf16.mxu0 %v5530_v56  ;;  %3902 = vmatprep.subr.bf16.mxu1 %v5533_v57  ;;  %v5612_v56 = vld [vmem:[#allocation5 + $0xb20] ss:$16 sps:$4 sm:$0xff]   ;;  %v5615_v57 = vld [vmem:[#allocation5 + $0xb28] ss:$16 sps:$4 sm:$0xff]  }
 0x18c   :  { %3575 = vmatpush1.bf16.msra.mxu0 %v5528_v43  ;;  %3903 = vmatpush1.bf16.msra.mxu1 %v5531_v45  ;;  %v5620_v43 = vld [vmem:[#allocation5 + $0xb44] ss:$16 sps:$4 sm:$0xff]   ;;  %v5623_v45 = vld [vmem:[#allocation5 + $0xb4c] ss:$16 sps:$4 sm:$0xff]  }
 0x18d   :  { %3576 = vmatprep.subr.bf16.mxu0 %v5536_v60  ;;  %3904 = vmatprep.subr.bf16.mxu1 %v5539_v61  ;;  %v5618_v60 = vld [vmem:[#allocation5 + $0xb40] ss:$16 sps:$4 sm:$0xff]   ;;  %v5621_v61 = vld [vmem:[#allocation5 + $0xb48] ss:$16 sps:$4 sm:$0xff]  }
 0x190   :  { %3577 = vmatpush1.bf16.msra.mxu0 %v5534_v62  ;;  %3905 = vmatpush1.bf16.msra.mxu1 %v5537_v63  ;;  %v5626_v62 = vld [vmem:[#allocation5 + $0xb64] ss:$16 sps:$4 sm:$0xff]   ;;  %v5629_v63 = vld [vmem:[#allocation5 + $0xb6c] ss:$16 sps:$4 sm:$0xff]  }
 0x191   :  { %3578 = vmatprep.subr.bf16.mxu0 %v5542_v0  ;;  %3906 = vmatprep.subr.bf16.mxu1 %v5545_v1  ;;  %v5624_v0 = vld [vmem:[#allocation5 + $0xb60] ss:$16 sps:$4 sm:$0xff]   ;;  %v5627_v1 = vld [vmem:[#allocation5 + $0xb68] ss:$16 sps:$4 sm:$0xff]  }
 0x194   :  { %3579 = vmatpush1.bf16.msra.mxu0 %v5540_v2  ;;  %3907 = vmatpush1.bf16.msra.mxu1 %v5543_v3  ;;  %v5632_v2 = vld [vmem:[#allocation5 + $0xb84] ss:$16 sps:$4 sm:$0xff]   ;;  %v5635_v3 = vld [vmem:[#allocation5 + $0xb8c] ss:$16 sps:$4 sm:$0xff]  }
 0x195   :  { %3580 = vmatprep.subr.bf16.mxu0 %v5548_v4  ;;  %3908 = vmatprep.subr.bf16.mxu1 %v5551_v5  ;;  %v5630_v4 = vld [vmem:[#allocation5 + $0xb80] ss:$16 sps:$4 sm:$0xff]   ;;  %v5633_v5 = vld [vmem:[#allocation5 + $0xb88] ss:$16 sps:$4 sm:$0xff]  }
 0x198   :  { %3581 = vmatpush1.bf16.msra.mxu0 %v5546_v6  ;;  %3909 = vmatpush1.bf16.msra.mxu1 %v5549_v7  ;;  %v5638_v6 = vld [vmem:[#allocation5 + $0xba4] ss:$16 sps:$4 sm:$0xff]   ;;  %v5641_v7 = vld [vmem:[#allocation5 + $0xbac] ss:$16 sps:$4 sm:$0xff]  }
 0x199   :  { %3582 = vmatprep.subr.bf16.mxu0 %v5554_v8  ;;  %3910 = vmatprep.subr.bf16.mxu1 %v5557_v47  ;;  %v89_v8 = vld [vmem:[#allocation2 + $0x18] sm:$0xff] }
 0x19a   :  { %v93_v47 = vld [vmem:[#allocation2 + $0x38] sm:$0xff] }
 0x19c   :  { %3583 = vmatpush1.bf16.msra.mxu0 %v5552_v11  ;;  %3911 = vmatpush1.bf16.msra.mxu1 %v5555_v12  ;;  %v101_v11 = vld [vmem:[#allocation2 + $0x78] sm:$0xff]  ;;  %v5636_v12 = vld [vmem:[#allocation5 + $0xba0] ss:$16 sps:$4 sm:$0xff]  }
 0x19d   :  { %3593 = vmatprep.subr.bf16.mxu0 %v5560_v13  ;;  %3921 = vmatprep.subr.bf16.mxu1 %v5563_v14  ;;  %v5639_v13 = vld [vmem:[#allocation5 + $0xba8] ss:$16 sps:$4 sm:$0xff]   ;;  %v5644_v14 = vld [vmem:[#allocation5 + $0xbc4] ss:$16 sps:$4 sm:$0xff]  }
 0x19f   :  { %3585 = vmatmul.mubr.bf16.vlgmr.msra.gmra.mrb[0].mxu0 %v286_v15  ;;  %3913 = vmatmul.mubr.bf16.vlgmr.msra.gmra.mrb[0].mxu1 %v286_v15  ;;  %v5647_v15 = vld [vmem:[#allocation5 + $0xbcc] ss:$16 sps:$4 sm:$0xff]  }
 0x1a0   :  { %3594 = vmatpush1.bf16.msra.mxu0 %v5558_v18  ;;  %3922 = vmatpush1.bf16.msra.mxu1 %v5561_v19  ;;  %v226_v18 = vcombine.low %v89_v8, %v93_v47  ;;  %v228_v19 = vcombine.low %v97_v10, %v101_v11 }
 0x1a1   :  { %3595 = vmatprep.subr.bf16.mxu0 %v5566_v20  ;;  %3923 = vmatprep.subr.bf16.mxu1 %v5569_v21  ;;  %v5642_v20 = vld [vmem:[#allocation5 + $0xbc0] ss:$16 sps:$4 sm:$0xff]   ;;  %v5645_v21 = vld [vmem:[#allocation5 + $0xbc8] ss:$16 sps:$4 sm:$0xff]  }
 0x1a2   :  { %3625 = vmatprep.mubr.bf16.mxu0 %v289_v58  ;;  %3953 = vmatprep.mubr.bf16.mxu1 %v289_v58  ;;  %v5650_v58 = vld [vmem:[#allocation5 + $0xbe4] ss:$16 sps:$4 sm:$0xff]  }
 0x1a4   :  { %3596 = vmatpush1.bf16.msra.mxu0 %v5564_v59  ;;  %3924 = vmatpush1.bf16.msra.mxu1 %v5567_v22  ;;  %v5653_v59 = vld [vmem:[#allocation5 + $0xbec] ss:$16 sps:$4 sm:$0xff]   ;;  %v6195_v22 = vrot.slane %v226_v18, %v6126_v54  ;;  %v5722_v18 = vld [vmem:[#allocation5 + $0xd64] ss:$16 sps:$4 sm:$0xff]  }
 0x1a5   :  { %3597 = vmatprep.subr.bf16.mxu0 %v5572_v23  ;;  %3925 = vmatprep.subr.bf16.mxu1 %v5575_v24  ;;  %v6198_v23 = vrot.slane %v228_v19, %v6126_v54  ;;  %v227_v24 = vcombine.high %v89_v8, %v93_v47  ;;  %v5710_v8 = vld [vmem:[#allocation5 + $0xd24] ss:$16 sps:$4 sm:$0xff]   ;;  %v5713_v47 = vld [vmem:[#allocation5 + $0xd2c] ss:$16 sps:$4 sm:$0xff]  }
 0x1a6   :  { %v5725_v19 = vld [vmem:[#allocation5 + $0xd6c] ss:$16 sps:$4 sm:$0xff]  }
 0x1a8   :  { %3598 = vmatpush1.bf16.msra.mxu0 %v5570_v25  ;;  %3926 = vmatpush1.bf16.msra.mxu1 %v5573_v26  ;;  %v229_v25 = vcombine.high %v97_v10, %v101_v11  ;;  %v5648_v26 = vld [vmem:[#allocation5 + $0xbe0] ss:$16 sps:$4 sm:$0xff]   ;;  %v5711_v11 = vld [vmem:[#allocation5 + $0xd28] ss:$16 sps:$4 sm:$0xff]  }
 0x1a9   :  { %3599 = vmatprep.subr.bf16.mxu0 %v5578_v27  ;;  %3927 = vmatprep.subr.bf16.mxu1 %v5581_v9  ;;  %v5651_v27 = vld [vmem:[#allocation5 + $0xbe8] ss:$16 sps:$4 sm:$0xff]   ;;  %v243_v9 = vrot.slane %v227_v24, %v6126_v54  ;;  %v5708_v10 = vld [vmem:[#allocation5 + $0xd20] ss:$16 sps:$4 sm:$0xff]  }
 0x1aa   :  { %v5726_v24 = vld [vmem:[#allocation5 + $0xd80] ss:$16 sps:$4 sm:$0xff]  }
 0x1ac   :  { %3600 = vmatpush1.bf16.msra.mxu0 %v5576_v28  ;;  %3928 = vmatpush1.bf16.msra.mxu1 %v5579_v29  ;;  %v257_v28 = vrot.slane %v229_v25, %v6126_v54  ;;  %v5656_v29 = vld [vmem:[#allocation5 + $0xc04] ss:$16 sps:$4 sm:$0xff]   ;;  %v5729_v25 = vld [vmem:[#allocation5 + $0xd88] ss:$16 sps:$4 sm:$0xff]  }
 0x1ad   :  { %3601 = vmatprep.subr.bf16.mxu0 %v5584_v30  ;;  %3929 = vmatprep.subr.bf16.mxu1 %v5587_v31  ;;  %v5659_v30 = vld [vmem:[#allocation5 + $0xc0c] ss:$16 sps:$4 sm:$0xff]   ;;  %v259_v31 = vcombine.high %v6195_v22, %v6198_v23  ;;  %v5662_v54 = vld [vmem:[#allocation5 + $0xc24] ss:$16 sps:$4 sm:$0xff]  }
 0x1b0   :  { %3602 = vmatpush1.bf16.msra.mxu0 %v5582_v32  ;;  %3930 = vmatpush1.bf16.msra.mxu1 %v5585_v33  ;;  %v6204_v32 = vcombine.high %v243_v9, %v257_v28  ;;  %v288_v33 = vpack.c.bf16 %v6188_v48, %v6188_v48  ;;  %v5668_v48 = vld [vmem:[#allocation5 + $0xc44] ss:$16 sps:$4 sm:$0xff]  }
 0x1b1   :  { %3603 = vmatprep.subr.bf16.mxu0 %v5590_v34  ;;  %3931 = vmatprep.subr.bf16.mxu1 %v5593_v35  ;;  %v6208_v34 = vcombine.low %v243_v9, %v257_v28  ;;  %v5654_v35 = vld [vmem:[#allocation5 + $0xc00] ss:$16 sps:$4 sm:$0xff]   ;;  %v5735_v28 = vld [vmem:[#allocation5 + $0xda8] ss:$16 sps:$4 sm:$0xff]  }
 0x1b2   :  { %v5732_v9 = vld [vmem:[#allocation5 + $0xda0] ss:$16 sps:$4 sm:$0xff]  }
 0x1b4   :  { %3604 = vmatpush1.bf16.msra.mxu0 %v5588_v38  ;;  %3932 = vmatpush1.bf16.msra.mxu1 %v5591_v39  ;;  %v5657_v38 = vld [vmem:[#allocation5 + $0xc08] ss:$16 sps:$4 sm:$0xff]   ;;  %v5665_v39 = vld [vmem:[#allocation5 + $0xc2c] ss:$16 sps:$4 sm:$0xff]  }
 0x1b5   :  { %3605 = vmatprep.subr.bf16.mxu0 %v5596_v40  ;;  %3933 = vmatprep.subr.bf16.mxu1 %v5599_v41  ;;  %v291_v40 = vpack.c.bf16 %v259_v31, %v259_v31  ;;  %v5660_v41 = vld [vmem:[#allocation5 + $0xc20] ss:$16 sps:$4 sm:$0xff]  }
 0x1b6   :  { %v5738_v31 = vld [vmem:[#allocation5 + $0xdc0] ss:$16 sps:$4 sm:$0xff]  }
 0x1b8   :  { %3606 = vmatpush1.bf16.msra.mxu0 %v5594_v42  ;;  %3934 = vmatpush1.bf16.msra.mxu1 %v5597_v44  ;;  %v5663_v42 = vld [vmem:[#allocation5 + $0xc28] ss:$16 sps:$4 sm:$0xff]   ;;  %v5671_v44 = vld [vmem:[#allocation5 + $0xc4c] ss:$16 sps:$4 sm:$0xff]  }
 0x1b9   :  { %3607 = vmatprep.subr.bf16.mxu0 %v5602_v49  ;;  %3935 = vmatprep.subr.bf16.mxu1 %v5605_v50  ;;  %v5666_v49 = vld [vmem:[#allocation5 + $0xc40] ss:$16 sps:$4 sm:$0xff]   ;;  %v5669_v50 = vld [vmem:[#allocation5 + $0xc48] ss:$16 sps:$4 sm:$0xff]  }
 0x1bc   :  { %3608 = vmatpush1.bf16.msra.mxu0 %v5600_v36  ;;  %3936 = vmatpush1.bf16.msra.mxu1 %v5603_v37  ;;  %v5674_v36 = vld [vmem:[#allocation5 + $0xc64] ss:$16 sps:$4 sm:$0xff]   ;;  %v5677_v37 = vld [vmem:[#allocation5 + $0xc6c] ss:$16 sps:$4 sm:$0xff]  }
 0x1bd   :  { %3609 = vmatprep.subr.bf16.mxu0 %v5608_v16  ;;  %3937 = vmatprep.subr.bf16.mxu1 %v5611_v17  ;;  %v5672_v16 = vld [vmem:[#allocation5 + $0xc60] ss:$16 sps:$4 sm:$0xff]   ;;  %v5675_v17 = vld [vmem:[#allocation5 + $0xc68] ss:$16 sps:$4 sm:$0xff]  }
 0x1c0   :  { %3610 = vmatpush1.bf16.msra.mxu0 %v5606_v51  ;;  %3938 = vmatpush1.bf16.msra.mxu1 %v5609_v52  ;;  %v5680_v51 = vld [vmem:[#allocation5 + $0xc84] ss:$16 sps:$4 sm:$0xff]   ;;  %v5683_v52 = vld [vmem:[#allocation5 + $0xc8c] ss:$16 sps:$4 sm:$0xff]  }
 0x1c1   :  { %3611 = vmatprep.subr.bf16.mxu0 %v5614_v53  ;;  %3939 = vmatprep.subr.bf16.mxu1 %v5617_v55  ;;  %v5678_v53 = vld [vmem:[#allocation5 + $0xc80] ss:$16 sps:$4 sm:$0xff]   ;;  %v5681_v55 = vld [vmem:[#allocation5 + $0xc88] ss:$16 sps:$4 sm:$0xff]  }
 0x1c4   :  { %3612 = vmatpush1.bf16.msra.mxu0 %v5612_v56  ;;  %3940 = vmatpush1.bf16.msra.mxu1 %v5615_v57  ;;  %v5686_v56 = vld [vmem:[#allocation5 + $0xca4] ss:$16 sps:$4 sm:$0xff]   ;;  %v5689_v57 = vld [vmem:[#allocation5 + $0xcac] ss:$16 sps:$4 sm:$0xff]  }
 0x1c5   :  { %3613 = vmatprep.subr.bf16.mxu0 %v5620_v43  ;;  %3941 = vmatprep.subr.bf16.mxu1 %v5623_v45  ;;  %v5684_v43 = vld [vmem:[#allocation5 + $0xca0] ss:$16 sps:$4 sm:$0xff]   ;;  %v5687_v45 = vld [vmem:[#allocation5 + $0xca8] ss:$16 sps:$4 sm:$0xff]  }
 0x1c8   :  { %3614 = vmatpush1.bf16.msra.mxu0 %v5618_v60  ;;  %3942 = vmatpush1.bf16.msra.mxu1 %v5621_v61  ;;  %v5692_v60 = vld [vmem:[#allocation5 + $0xcc4] ss:$16 sps:$4 sm:$0xff]   ;;  %v5695_v61 = vld [vmem:[#allocation5 + $0xccc] ss:$16 sps:$4 sm:$0xff]  }
 0x1c9   :  { %3615 = vmatprep.subr.bf16.mxu0 %v5626_v62  ;;  %3943 = vmatprep.subr.bf16.mxu1 %v5629_v63  ;;  %v5690_v62 = vld [vmem:[#allocation5 + $0xcc0] ss:$16 sps:$4 sm:$0xff]   ;;  %v5693_v63 = vld [vmem:[#allocation5 + $0xcc8] ss:$16 sps:$4 sm:$0xff]  }
 0x1cc   :  { %3616 = vmatpush1.bf16.msra.mxu0 %v5624_v0  ;;  %3944 = vmatpush1.bf16.msra.mxu1 %v5627_v1  ;;  %v5698_v0 = vld [vmem:[#allocation5 + $0xce4] ss:$16 sps:$4 sm:$0xff]   ;;  %v5701_v1 = vld [vmem:[#allocation5 + $0xcec] ss:$16 sps:$4 sm:$0xff]  }
 0x1cd   :  { %3617 = vmatprep.subr.bf16.mxu0 %v5632_v2  ;;  %3945 = vmatprep.subr.bf16.mxu1 %v5635_v3  ;;  %v5696_v2 = vld [vmem:[#allocation5 + $0xce0] ss:$16 sps:$4 sm:$0xff]   ;;  %v5699_v3 = vld [vmem:[#allocation5 + $0xce8] ss:$16 sps:$4 sm:$0xff]  }
 0x1d0   :  { %3618 = vmatpush1.bf16.msra.mxu0 %v5630_v4  ;;  %3946 = vmatpush1.bf16.msra.mxu1 %v5633_v5  ;;  %v5704_v4 = vld [vmem:[#allocation5 + $0xd04] ss:$16 sps:$4 sm:$0xff]   ;;  %v5707_v5 = vld [vmem:[#allocation5 + $0xd0c] ss:$16 sps:$4 sm:$0xff]  }
 0x1d1   :  { %3619 = vmatprep.subr.bf16.mxu0 %v5638_v6  ;;  %3947 = vmatprep.subr.bf16.mxu1 %v5641_v7  ;;  %v5702_v6 = vld [vmem:[#allocation5 + $0xd00] ss:$16 sps:$4 sm:$0xff]   ;;  %v5705_v7 = vld [vmem:[#allocation5 + $0xd08] ss:$16 sps:$4 sm:$0xff]  }
 0x1d4   :  { %3620 = vmatpush1.bf16.msra.mxu0 %v5636_v12  ;;  %3948 = vmatpush1.bf16.msra.mxu1 %v5639_v13  ;;  %v5716_v12 = vld [vmem:[#allocation5 + $0xd44] ss:$16 sps:$4 sm:$0xff]   ;;  %v5719_v13 = vld [vmem:[#allocation5 + $0xd4c] ss:$16 sps:$4 sm:$0xff]  }
 0x1d5   :  { %3621 = vmatprep.subr.bf16.mxu0 %v5644_v14  ;;  %3949 = vmatprep.subr.bf16.mxu1 %v5647_v15  ;;  %v5714_v14 = vld [vmem:[#allocation5 + $0xd40] ss:$16 sps:$4 sm:$0xff]   ;;  %v5717_v15 = vld [vmem:[#allocation5 + $0xd48] ss:$16 sps:$4 sm:$0xff]  }
 0x1d8   :  { %3622 = vmatpush1.bf16.msra.mxu0 %v5642_v20  ;;  %3950 = vmatpush1.bf16.msra.mxu1 %v5645_v21  ;;  %v5720_v20 = vld [vmem:[#allocation5 + $0xd60] ss:$16 sps:$4 sm:$0xff]   ;;  %v5723_v21 = vld [vmem:[#allocation5 + $0xd68] ss:$16 sps:$4 sm:$0xff]  }
 0x1d9   :  { %3623 = vmatprep.subr.bf16.mxu0 %v5650_v58  ;;  %3951 = vmatprep.subr.bf16.mxu1 %v5653_v59  ;;  %v5728_v58 = vld [vmem:[#allocation5 + $0xd84] ss:$16 sps:$4 sm:$0xff]   ;;  %v5731_v59 = vld [vmem:[#allocation5 + $0xd8c] ss:$16 sps:$4 sm:$0xff]  }
 0x1dc   :  { %3624 = vmatpush1.bf16.msra.mxu0 %v5648_v26  ;;  %3952 = vmatpush1.bf16.msra.mxu1 %v5651_v27  ;;  %v5734_v26 = vld [vmem:[#allocation5 + $0xda4] ss:$16 sps:$4 sm:$0xff]   ;;  %v5737_v27 = vld [vmem:[#allocation5 + $0xdac] ss:$16 sps:$4 sm:$0xff]  }
 0x1dd   :  { %3634 = vmatprep.subr.bf16.mxu0 %v5656_v29  ;;  %3962 = vmatprep.subr.bf16.mxu1 %v5659_v30  ;;  %v5740_v29 = vld [vmem:[#allocation5 + $0xdc4] ss:$16 sps:$4 sm:$0xff]   ;;  %v5743_v30 = vld [vmem:[#allocation5 + $0xdcc] ss:$16 sps:$4 sm:$0xff]  }
 0x1df   :  { %3626 = vmatmul.mubr.bf16.vlgmr.msra.gmra.mrb[0].mxu0 %v288_v33  ;;  %3954 = vmatmul.mubr.bf16.vlgmr.msra.gmra.mrb[0].mxu1 %v288_v33  ;;  %v5741_v33 = vld [vmem:[#allocation5 + $0xdc8] ss:$16 sps:$4 sm:$0xff]  }
 0x1e0   :  { %3635 = vmatpush1.bf16.msra.mxu0 %v5654_v35  ;;  %3963 = vmatpush1.bf16.msra.mxu1 %v5657_v38  ;;  %v5746_v35 = vld [vmem:[#allocation5 + $0xde4] ss:$16 sps:$4 sm:$0xff]   ;;  %v5749_v38 = vld [vmem:[#allocation5 + $0xdec] ss:$16 sps:$4 sm:$0xff]  }
 0x1e1   :  { %3636 = vmatprep.subr.bf16.mxu0 %v5662_v54  ;;  %3964 = vmatprep.subr.bf16.mxu1 %v5665_v39  ;;  %v258_v54 = vcombine.low %v6195_v22, %v6198_v23  ;;  %v5744_v39 = vld [vmem:[#allocation5 + $0xde0] ss:$16 sps:$4 sm:$0xff]   ;;  %v293_v22 = vpack.c.bf16 %v6204_v32, %v6204_v32  ;;  %v5773_v32 = vld [vmem:[#allocation5 + $0xe6c] ss:$16 sps:$4 sm:$0xff]  }
 0x1e2   :  { %3666 = vmatprep.mubr.bf16.mxu0 %v291_v40  ;;  %3994 = vmatprep.mubr.bf16.mxu1 %v291_v40  ;;  %v5747_v40 = vld [vmem:[#allocation5 + $0xde8] ss:$16 sps:$4 sm:$0xff]   ;;  %v5756_v23 = vld [vmem:[#allocation5 + $0xe20] ss:$16 sps:$4 sm:$0xff]  }
 0x1e4   :  { %3637 = vmatpush1.bf16.msra.mxu0 %v5660_v41  ;;  %3965 = vmatpush1.bf16.msra.mxu1 %v5663_v42  ;;  %v5752_v41 = vld [vmem:[#allocation5 + $0xe04] ss:$16 sps:$4 sm:$0xff]   ;;  %v5755_v42 = vld [vmem:[#allocation5 + $0xe0c] ss:$16 sps:$4 sm:$0xff]  }
 0x1e5   :  { %3638 = vmatprep.subr.bf16.mxu0 %v5668_v48  ;;  %3966 = vmatprep.subr.bf16.mxu1 %v5671_v44  ;;  %v290_v48 = vpack.c.bf16 %v258_v54, %v258_v54  ;;  %v5750_v44 = vld [vmem:[#allocation5 + $0xe00] ss:$16 sps:$4 sm:$0xff]   ;;  %v5839_v54 = vld [vmem:[#allocation5 + $0xfcc] ss:$16 sps:$4 sm:$0xff]  }
 0x1e8   :  { %3639 = vmatpush1.bf16.msra.mxu0 %v5666_v49  ;;  %3967 = vmatpush1.bf16.msra.mxu1 %v5669_v50  ;;  %v5753_v49 = vld [vmem:[#allocation5 + $0xe08] ss:$16 sps:$4 sm:$0xff]   ;;  %v5758_v50 = vld [vmem:[#allocation5 + $0xe24] ss:$16 sps:$4 sm:$0xff]  }
 0x1e9   :  { %3640 = vmatprep.subr.bf16.mxu0 %v5674_v36  ;;  %3968 = vmatprep.subr.bf16.mxu1 %v5677_v37  ;;  %v5761_v36 = vld [vmem:[#allocation5 + $0xe2c] ss:$16 sps:$4 sm:$0xff]   ;;  %v5759_v37 = vld [vmem:[#allocation5 + $0xe28] ss:$16 sps:$4 sm:$0xff]  }
 0x1ec   :  { %3641 = vmatpush1.bf16.msra.mxu0 %v5672_v16  ;;  %3969 = vmatpush1.bf16.msra.mxu1 %v5675_v17  ;;  %v5764_v16 = vld [vmem:[#allocation5 + $0xe44] ss:$16 sps:$4 sm:$0xff]   ;;  %v5767_v17 = vld [vmem:[#allocation5 + $0xe4c] ss:$16 sps:$4 sm:$0xff]  }
 0x1ed   :  { %3642 = vmatprep.subr.bf16.mxu0 %v5680_v51  ;;  %3970 = vmatprep.subr.bf16.mxu1 %v5683_v52  ;;  %v5762_v51 = vld [vmem:[#allocation5 + $0xe40] ss:$16 sps:$4 sm:$0xff]   ;;  %v5765_v52 = vld [vmem:[#allocation5 + $0xe48] ss:$16 sps:$4 sm:$0xff]  }
 0x1f0   :  { %3643 = vmatpush1.bf16.msra.mxu0 %v5678_v53  ;;  %3971 = vmatpush1.bf16.msra.mxu1 %v5681_v55  ;;  %v5770_v53 = vld [vmem:[#allocation5 + $0xe64] ss:$16 sps:$4 sm:$0xff]   ;;  %v5768_v55 = vld [vmem:[#allocation5 + $0xe60] ss:$16 sps:$4 sm:$0xff]  }
 0x1f1   :  { %3644 = vmatprep.subr.bf16.mxu0 %v5686_v56  ;;  %3972 = vmatprep.subr.bf16.mxu1 %v5689_v57  ;;  %v5771_v56 = vld [vmem:[#allocation5 + $0xe68] ss:$16 sps:$4 sm:$0xff]   ;;  %v5776_v57 = vld [vmem:[#allocation5 + $0xe84] ss:$16 sps:$4 sm:$0xff]  }
 0x1f4   :  { %3645 = vmatpush1.bf16.msra.mxu0 %v5684_v43  ;;  %3973 = vmatpush1.bf16.msra.mxu1 %v5687_v45  ;;  %v5779_v43 = vld [vmem:[#allocation5 + $0xe8c] ss:$16 sps:$4 sm:$0xff]   ;;  %v5774_v45 = vld [vmem:[#allocation5 + $0xe80] ss:$16 sps:$4 sm:$0xff]  }
 0x1f5   :  { %3646 = vmatprep.subr.bf16.mxu0 %v5692_v60  ;;  %3974 = vmatprep.subr.bf16.mxu1 %v5695_v61  ;;  %v5777_v60 = vld [vmem:[#allocation5 + $0xe88] ss:$16 sps:$4 sm:$0xff]   ;;  %v5782_v61 = vld [vmem:[#allocation5 + $0xea4] ss:$16 sps:$4 sm:$0xff]  }
 0x1f8   :  { %3647 = vmatpush1.bf16.msra.mxu0 %v5690_v62  ;;  %3975 = vmatpush1.bf16.msra.mxu1 %v5693_v63  ;;  %v5785_v62 = vld [vmem:[#allocation5 + $0xeac] ss:$16 sps:$4 sm:$0xff]   ;;  %v5780_v63 = vld [vmem:[#allocation5 + $0xea0] ss:$16 sps:$4 sm:$0xff]  }
 0x1f9   :  { %3648 = vmatprep.subr.bf16.mxu0 %v5698_v0  ;;  %3976 = vmatprep.subr.bf16.mxu1 %v5701_v1  ;;  %v5783_v0 = vld [vmem:[#allocation5 + $0xea8] ss:$16 sps:$4 sm:$0xff]   ;;  %v5788_v1 = vld [vmem:[#allocation5 + $0xec4] ss:$16 sps:$4 sm:$0xff]  }
 0x1fc   :  { %3649 = vmatpush1.bf16.msra.mxu0 %v5696_v2  ;;  %3977 = vmatpush1.bf16.msra.mxu1 %v5699_v3  ;;  %v5791_v2 = vld [vmem:[#allocation5 + $0xecc] ss:$16 sps:$4 sm:$0xff]   ;;  %v5786_v3 = vld [vmem:[#allocation5 + $0xec0] ss:$16 sps:$4 sm:$0xff]  }
 0x1fd   :  { %3650 = vmatprep.subr.bf16.mxu0 %v5704_v4  ;;  %3978 = vmatprep.subr.bf16.mxu1 %v5707_v5  ;;  %v5789_v4 = vld [vmem:[#allocation5 + $0xec8] ss:$16 sps:$4 sm:$0xff]   ;;  %v5794_v5 = vld [vmem:[#allocation5 + $0xee4] ss:$16 sps:$4 sm:$0xff]  }
 0x200   :  { %3651 = vmatpush1.bf16.msra.mxu0 %v5702_v6  ;;  %3979 = vmatpush1.bf16.msra.mxu1 %v5705_v7  ;;  %v5797_v6 = vld [vmem:[#allocation5 + $0xeec] ss:$16 sps:$4 sm:$0xff]   ;;  %v5792_v7 = vld [vmem:[#allocation5 + $0xee0] ss:$16 sps:$4 sm:$0xff]  }
 0x201   :  { %3652 = vmatprep.subr.bf16.mxu0 %v5710_v8  ;;  %3980 = vmatprep.subr.bf16.mxu1 %v5713_v47  ;;  %v5795_v8 = vld [vmem:[#allocation5 + $0xee8] ss:$16 sps:$4 sm:$0xff]   ;;  %v5800_v47 = vld [vmem:[#allocation5 + $0xf04] ss:$16 sps:$4 sm:$0xff]  }
 0x204   :  { %3653 = vmatpush1.bf16.msra.mxu0 %v5708_v10  ;;  %3981 = vmatpush1.bf16.msra.mxu1 %v5711_v11  ;;  %v5803_v10 = vld [vmem:[#allocation5 + $0xf0c] ss:$16 sps:$4 sm:$0xff]   ;;  %v5798_v11 = vld [vmem:[#allocation5 + $0xf00] ss:$16 sps:$4 sm:$0xff]  }
 0x205   :  { %3654 = vmatprep.subr.bf16.mxu0 %v5716_v12  ;;  %3982 = vmatprep.subr.bf16.mxu1 %v5719_v13  ;;  %v5801_v12 = vld [vmem:[#allocation5 + $0xf08] ss:$16 sps:$4 sm:$0xff]   ;;  %v5806_v13 = vld [vmem:[#allocation5 + $0xf24] ss:$16 sps:$4 sm:$0xff]  }
 0x208   :  { %3655 = vmatpush1.bf16.msra.mxu0 %v5714_v14  ;;  %3983 = vmatpush1.bf16.msra.mxu1 %v5717_v15  ;;  %v5809_v14 = vld [vmem:[#allocation5 + $0xf2c] ss:$16 sps:$4 sm:$0xff]   ;;  %v5804_v15 = vld [vmem:[#allocation5 + $0xf20] ss:$16 sps:$4 sm:$0xff]  }
 0x209   :  { %3656 = vmatprep.subr.bf16.mxu0 %v5722_v18  ;;  %3984 = vmatprep.subr.bf16.mxu1 %v5725_v19  ;;  %v5807_v18 = vld [vmem:[#allocation5 + $0xf28] ss:$16 sps:$4 sm:$0xff]   ;;  %v5812_v19 = vld [vmem:[#allocation5 + $0xf44] ss:$16 sps:$4 sm:$0xff]  }
 0x20c   :  { %3657 = vmatpush1.bf16.msra.mxu0 %v5720_v20  ;;  %3985 = vmatpush1.bf16.msra.mxu1 %v5723_v21  ;;  %v5815_v20 = vld [vmem:[#allocation5 + $0xf4c] ss:$16 sps:$4 sm:$0xff]   ;;  %v5810_v21 = vld [vmem:[#allocation5 + $0xf40] ss:$16 sps:$4 sm:$0xff]  }
 0x20d   :  { %3658 = vmatprep.subr.bf16.mxu0 %v5728_v58  ;;  %3986 = vmatprep.subr.bf16.mxu1 %v5731_v59  ;;  %v5813_v58 = vld [vmem:[#allocation5 + $0xf48] ss:$16 sps:$4 sm:$0xff]   ;;  %v5818_v59 = vld [vmem:[#allocation5 + $0xf64] ss:$16 sps:$4 sm:$0xff]  }
 0x210   :  { %3659 = vmatpush1.bf16.msra.mxu0 %v5726_v24  ;;  %3987 = vmatpush1.bf16.msra.mxu1 %v5729_v25  ;;  %v5821_v24 = vld [vmem:[#allocation5 + $0xf6c] ss:$16 sps:$4 sm:$0xff]   ;;  %v5816_v25 = vld [vmem:[#allocation5 + $0xf60] ss:$16 sps:$4 sm:$0xff]  }
 0x211   :  { %3660 = vmatprep.subr.bf16.mxu0 %v5734_v26  ;;  %3988 = vmatprep.subr.bf16.mxu1 %v5737_v27  ;;  %v5819_v26 = vld [vmem:[#allocation5 + $0xf68] ss:$16 sps:$4 sm:$0xff]   ;;  %v5824_v27 = vld [vmem:[#allocation5 + $0xf84] ss:$16 sps:$4 sm:$0xff]  }
 0x214   :  { %3661 = vmatpush1.bf16.msra.mxu0 %v5732_v9  ;;  %3989 = vmatpush1.bf16.msra.mxu1 %v5735_v28  ;;  %v5827_v9 = vld [vmem:[#allocation5 + $0xf8c] ss:$16 sps:$4 sm:$0xff]   ;;  %v5822_v28 = vld [vmem:[#allocation5 + $0xf80] ss:$16 sps:$4 sm:$0xff]  }
 0x215   :  { %3662 = vmatprep.subr.bf16.mxu0 %v5740_v29  ;;  %3990 = vmatprep.subr.bf16.mxu1 %v5743_v30  ;;  %v5825_v29 = vld [vmem:[#allocation5 + $0xf88] ss:$16 sps:$4 sm:$0xff]   ;;  %v5830_v30 = vld [vmem:[#allocation5 + $0xfa4] ss:$16 sps:$4 sm:$0xff]  }
 0x218   :  { %3663 = vmatpush1.bf16.msra.mxu0 %v5738_v31  ;;  %3991 = vmatpush1.bf16.msra.mxu1 %v5741_v33  ;;  %v5833_v31 = vld [vmem:[#allocation5 + $0xfac] ss:$16 sps:$4 sm:$0xff]   ;;  %v5828_v33 = vld [vmem:[#allocation5 + $0xfa0] ss:$16 sps:$4 sm:$0xff]  }
 0x219   :  { %3664 = vmatprep.subr.bf16.mxu0 %v5746_v35  ;;  %3992 = vmatprep.subr.bf16.mxu1 %v5749_v38  ;;  %v5831_v35 = vld [vmem:[#allocation5 + $0xfa8] ss:$16 sps:$4 sm:$0xff]   ;;  %v5836_v38 = vld [vmem:[#allocation5 + $0xfc4] ss:$16 sps:$4 sm:$0xff]  }
 0x21c   :  { %3665 = vmatpush1.bf16.msra.mxu0 %v5744_v39  ;;  %3993 = vmatpush1.bf16.msra.mxu1 %v5747_v40  ;;  %v5834_v39 = vld [vmem:[#allocation5 + $0xfc0] ss:$16 sps:$4 sm:$0xff]   ;;  %v5837_v40 = vld [vmem:[#allocation5 + $0xfc8] ss:$16 sps:$4 sm:$0xff]  }
 0x21d   :  { %3675 = vmatprep.subr.bf16.mxu0 %v5752_v41  ;;  %4003 = vmatprep.subr.bf16.mxu1 %v5755_v42  ;;  %v5842_v41 = vld [vmem:[#allocation5 + $0xfe4] ss:$16 sps:$4 sm:$0xff]   ;;  %v5845_v42 = vld [vmem:[#allocation5 + $0xfec] ss:$16 sps:$4 sm:$0xff]  }
 0x21f   :  { %3667 = vmatmul.mubr.bf16.vlgmr.msra.gmra.mrb[0].mxu0 %v290_v48  ;;  %3995 = vmatmul.mubr.bf16.vlgmr.msra.gmra.mrb[0].mxu1 %v290_v48  ;;  %v5840_v48 = vld [vmem:[#allocation5 + $0xfe0] ss:$16 sps:$4 sm:$0xff]  }
 0x220   :  { %3676 = vmatpush1.bf16.msra.mxu0 %v5750_v44  ;;  %4004 = vmatpush1.bf16.msra.mxu1 %v5753_v49  ;;  %v5843_v44 = vld [vmem:[#allocation5 + $0xfe8] ss:$16 sps:$4 sm:$0xff]  }
 0x221   :  { %3677 = vmatprep.subr.bf16.mxu0 %v5758_v50  ;;  %4005 = vmatprep.subr.bf16.mxu1 %v5761_v36  ;;  %v5846_v49 = vld [vmem:[#allocation8 + $0x40] sm:$0xff]   ;;  %v292_v36 = vpack.c.bf16 %v6208_v34, %v6208_v34  ;;  %v5856_v34 = vld [vmem:[#allocation8 + $0x10] sm:$0xff]  }
 0x222   :  { %3707 = vmatprep.mubr.bf16.mxu0 %v293_v22  ;;  %4035 = vmatprep.mubr.bf16.mxu1 %v293_v22  ;;  %v5847_v50 = vld [vmem:[#allocation8 + $0xc0] sm:$0xff]  }
 0x223   :  { %v5848_v22 = vld [vmem:[#allocation8] sm:$0xff]  }
 0x224   :  { %3678 = vmatpush1.bf16.msra.mxu0 %v5756_v23  ;;  %4006 = vmatpush1.bf16.msra.mxu1 %v5759_v37  ;;  %v5849_v23 = vld [vmem:[#allocation8 + $0x80] sm:$0xff]   ;;  %v5850_v37 = vld [vmem:[#allocation8 + $0x48] sm:$0xff]  }
 0x225   :  { %3679 = vmatprep.subr.bf16.mxu0 %v5764_v16  ;;  %4007 = vmatprep.subr.bf16.mxu1 %v5767_v17  ;;  %v5851_v16 = vld [vmem:[#allocation8 + $0xc8] sm:$0xff]  }
 0x226   :  { %v5852_v17 = vld [vmem:[#allocation8 + $0x8] sm:$0xff]  }
 0x228   :  { %3680 = vmatpush1.bf16.msra.mxu0 %v5762_v51  ;;  %4008 = vmatpush1.bf16.msra.mxu1 %v5765_v52  ;;  %v5853_v51 = vld [vmem:[#allocation8 + $0x88] sm:$0xff]   ;;  %v5854_v52 = vld [vmem:[#allocation8 + $0x50] sm:$0xff]  }
 0x229   :  { %3681 = vmatprep.subr.bf16.mxu0 %v5770_v53  ;;  %4009 = vmatprep.subr.bf16.mxu1 %v5773_v32  ;;  %v5855_v53 = vld [vmem:[#allocation8 + $0xd0] sm:$0xff]  }
 0x22a   :  { %v5857_v32 = vld [vmem:[#allocation8 + $0x90] sm:$0xff]  }
 0x22c   :  { %3682 = vmatpush1.bf16.msra.mxu0 %v5768_v55  ;;  %4010 = vmatpush1.bf16.msra.mxu1 %v5771_v56  ;;  %v5858_v55 = vld [vmem:[#allocation8 + $0x58] sm:$0xff]  }
 0x22d   :  { %3683 = vmatprep.subr.bf16.mxu0 %v5776_v57  ;;  %4011 = vmatprep.subr.bf16.mxu1 %v5779_v43  ;;  %v5859_v56 = vld [vmem:[#allocation8 + $0xd8] sm:$0xff]  }
 0x22e   :  { %v5860_v57 = vld [vmem:[#allocation8 + $0x18] sm:$0xff]  }
 0x22f   :  { %v5861_v43 = vld [vmem:[#allocation8 + $0x98] sm:$0xff]  }
 0x230   :  { %3684 = vmatpush1.bf16.msra.mxu0 %v5774_v45  ;;  %4012 = vmatpush1.bf16.msra.mxu1 %v5777_v60  ;;  %v5862_v45 = vld [vmem:[#allocation8 + $0x60] sm:$0xff]  }
 0x231   :  { %3685 = vmatprep.subr.bf16.mxu0 %v5782_v61  ;;  %4013 = vmatprep.subr.bf16.mxu1 %v5785_v62  ;;  %v5863_v60 = vld [vmem:[#allocation8 + $0xe0] sm:$0xff]  }
 0x232   :  { %v5864_v61 = vld [vmem:[#allocation8 + $0x20] sm:$0xff]  }
 0x233   :  { %v5865_v62 = vld [vmem:[#allocation8 + $0xa0] sm:$0xff]  }
 0x234   :  { %3686 = vmatpush1.bf16.msra.mxu0 %v5780_v63  ;;  %4014 = vmatpush1.bf16.msra.mxu1 %v5783_v0  ;;  %v5866_v63 = vld [vmem:[#allocation8 + $0x68] sm:$0xff]  }
 0x235   :  { %3687 = vmatprep.subr.bf16.mxu0 %v5788_v1  ;;  %4015 = vmatprep.subr.bf16.mxu1 %v5791_v2  ;;  %v5867_v0 = vld [vmem:[#allocation8 + $0xe8] sm:$0xff]  }
 0x236   :  { %v5868_v1 = vld [vmem:[#allocation8 + $0x28] sm:$0xff]  }
 0x237   :  { %v5869_v2 = vld [vmem:[#allocation8 + $0xa8] sm:$0xff]  }
 0x238   :  { %3688 = vmatpush1.bf16.msra.mxu0 %v5786_v3  ;;  %4016 = vmatpush1.bf16.msra.mxu1 %v5789_v4  ;;  %v5870_v3 = vld [vmem:[#allocation8 + $0x70] sm:$0xff]  }
 0x239   :  { %3689 = vmatprep.subr.bf16.mxu0 %v5794_v5  ;;  %4017 = vmatprep.subr.bf16.mxu1 %v5797_v6  ;;  %v5871_v4 = vld [vmem:[#allocation8 + $0xf0] sm:$0xff]  }
 0x23a   :  { %v5872_v5 = vld [vmem:[#allocation8 + $0x30] sm:$0xff]  }
 0x23b   :  { %v5873_v6 = vld [vmem:[#allocation8 + $0xb0] sm:$0xff]  }
 0x23c   :  { %3690 = vmatpush1.bf16.msra.mxu0 %v5792_v7  ;;  %4018 = vmatpush1.bf16.msra.mxu1 %v5795_v8  ;;  %v5874_v7 = vld [vmem:[#allocation8 + $0x78] sm:$0xff]  }
 0x23d   :  { %3691 = vmatprep.subr.bf16.mxu0 %v5800_v47  ;;  %4019 = vmatprep.subr.bf16.mxu1 %v5803_v10  ;;  %v5875_v8 = vld [vmem:[#allocation8 + $0xf8] sm:$0xff]  }
 0x23e   :  { %v5876_v47 = vld [vmem:[#allocation8 + $0x38] sm:$0xff]  }
 0x23f   :  { %v5877_v10 = vld [vmem:[#allocation8 + $0xb8] sm:$0xff]  }
 0x240   :  { %3692 = vmatpush1.bf16.msra.mxu0 %v5798_v11  ;;  %4020 = vmatpush1.bf16.msra.mxu1 %v5801_v12  ;;  %v810_v11 = vsub.s32 0, %v6123_v46  ;;  %v818_v12 = vsub.s32 2, %v6123_v46 }
 0x241   :  { %3693 = vmatprep.subr.bf16.mxu0 %v5806_v13  ;;  %4021 = vmatprep.subr.bf16.mxu1 %v5809_v14  ;;  %v806_v13 = vld [vmem:[#allocation7] sm:$0xf]  ;;  %v814_v14 = vsub.s32 1, %v6123_v46 }
 0x244   :  { %3694 = vmatpush1.bf16.msra.mxu0 %v5804_v15  ;;  %4022 = vmatpush1.bf16.msra.mxu1 %v5807_v18  ;;  %v822_v15 = vsub.s32 3, %v6123_v46  ;;  %v811_v18 = vrot.slane %v806_v13, %v810_v11 }
 0x245   :  { %3695 = vmatprep.subr.bf16.mxu0 %v5812_v19  ;;  %4023 = vmatprep.subr.bf16.mxu1 %v5815_v20  ;;  %v819_v19 = vrot.slane %v806_v13, %v818_v12  ;;  %v815_v20 = vrot.slane %v806_v13, %v814_v14 }
 0x248   :  { %3696 = vmatpush1.bf16.msra.mxu0 %v5810_v21  ;;  %4024 = vmatpush1.bf16.msra.mxu1 %v5813_v58  ;;  %v823_v21 = vrot.slane %v806_v13, %v822_v15 }
 0x249   :  { %3697 = vmatprep.subr.bf16.mxu0 %v5818_v59  ;;  %4025 = vmatprep.subr.bf16.mxu1 %v5821_v24 }
 0x24c   :  { %3698 = vmatpush1.bf16.msra.mxu0 %v5816_v25  ;;  %4026 = vmatpush1.bf16.msra.mxu1 %v5819_v26 }
 0x24d   :  { %3699 = vmatprep.subr.bf16.mxu0 %v5824_v27  ;;  %4027 = vmatprep.subr.bf16.mxu1 %v5827_v9 }
 0x250   :  { %3700 = vmatpush1.bf16.msra.mxu0 %v5822_v28  ;;  %4028 = vmatpush1.bf16.msra.mxu1 %v5825_v29 }
 0x251   :  { %3701 = vmatprep.subr.bf16.mxu0 %v5830_v30  ;;  %4029 = vmatprep.subr.bf16.mxu1 %v5833_v31 }
 0x254   :  { %3702 = vmatpush1.bf16.msra.mxu0 %v5828_v33  ;;  %4030 = vmatpush1.bf16.msra.mxu1 %v5831_v35 }
 0x255   :  { %3703 = vmatprep.subr.bf16.mxu0 %v5836_v38  ;;  %4031 = vmatprep.subr.bf16.mxu1 %v5839_v54 }
 0x258   :  { %3704 = vmatpush1.bf16.msra.mxu0 %v5834_v39  ;;  %4032 = vmatpush1.bf16.msra.mxu1 %v5837_v40 }
 0x259   :  { %3705 = vmatprep.subr.bf16.mxu0 %v5842_v41  ;;  %4033 = vmatprep.subr.bf16.mxu1 %v5845_v42 }
 0x25c   :  { %3706 = vmatpush1.bf16.msra.mxu0 %v5840_v48  ;;  %4034 = vmatpush1.bf16.msra.mxu1 %v5843_v44 }
 0x25d   :  { %4960 = vmatprep.subr.bf16.mxu0 %v5846_v49  ;;  %4982 = vmatprep.subr.bf16.mxu1 %v5847_v50  ;;  %v4927_v49 = vld [vmem:[#allocation10] ss:$0 sm:$0xff] }
 0x25f   :  { %3708 = vmatmul.mubr.bf16.vlgmr.msra.gmra.mrb[0].mxu0 %v292_v36  ;;  %4036 = vmatmul.mubr.bf16.vlgmr.msra.gmra.mrb[0].mxu1 %v292_v36 }
 0x260   :  { %4961 = vmatpush3.bf16.msra.mxu0 %v5848_v22  ;;  %4983 = vmatpush3.bf16.msra.mxu1 %v5849_v23 }
 0x261   :  { %4962 = vmatprep.subr.bf16.mxu0 %v5850_v37  ;;  %4984 = vmatprep.subr.bf16.mxu1 %v5851_v16 }
 0x264   :  { %4963 = vmatpush3.bf16.msra.mxu0 %v5852_v17  ;;  %4985 = vmatpush3.bf16.msra.mxu1 %v5853_v51 }
 0x265   :  { %4964 = vmatprep.subr.bf16.mxu0 %v5854_v52  ;;  %4986 = vmatprep.subr.bf16.mxu1 %v5855_v53 }
 0x268   :  { %4965 = vmatpush3.bf16.msra.mxu0 %v5856_v34  ;;  %4987 = vmatpush3.bf16.msra.mxu1 %v5857_v32 }
 0x269   :  { %4966 = vmatprep.subr.bf16.mxu0 %v5858_v55  ;;  %4988 = vmatprep.subr.bf16.mxu1 %v5859_v56 }
 0x26c   :  { %4967 = vmatpush3.bf16.msra.mxu0 %v5860_v57  ;;  %4989 = vmatpush3.bf16.msra.mxu1 %v5861_v43 }
 0x26d   :  { %4968 = vmatprep.subr.bf16.mxu0 %v5862_v45  ;;  %4990 = vmatprep.subr.bf16.mxu1 %v5863_v60 }
 0x270   :  { %4969 = vmatpush3.bf16.msra.mxu0 %v5864_v61  ;;  %4991 = vmatpush3.bf16.msra.mxu1 %v5865_v62 }
 0x271   :  { %4970 = vmatprep.subr.bf16.mxu0 %v5866_v63  ;;  %4992 = vmatprep.subr.bf16.mxu1 %v5867_v0 }
 0x274   :  { %4971 = vmatpush3.bf16.msra.mxu0 %v5868_v1  ;;  %4993 = vmatpush3.bf16.msra.mxu1 %v5869_v2 }
 0x275   :  { %4972 = vmatprep.subr.bf16.mxu0 %v5870_v3  ;;  %4994 = vmatprep.subr.bf16.mxu1 %v5871_v4 }
 0x278   :  { %4973 = vmatpush3.bf16.msra.mxu0 %v5872_v5  ;;  %4995 = vmatpush3.bf16.msra.mxu1 %v5873_v6 }
 0x279   :  { %4974 = vmatprep.subr.bf16.mxu0 %v5874_v7  ;;  %4996 = vmatprep.subr.bf16.mxu1 %v5875_v8 }
 0x27c   :  { %4975 = vmatpush3.bf16.msra.mxu0 %v5876_v47  ;;  %4997 = vmatpush3.bf16.msra.mxu1 %v5877_v10 }
 0x332   :  { %v3709_v58 = vpop.f32.mrb[0].mxu0  ;;  %v4037_v59 = vpop.f32.mrb[0].mxu1 }
 0x333   :  { %v5004_v24 = vadd.f32 %v3709_v58, %v811_v18  ;;  %v5006_v25 = vadd.f32 %v4037_v59, %v819_v19  ;;  %v3711_v26 = vpop.f32.mrb[1].mxu0  ;;  %v4039_v27 = vpop.f32.mrb[1].mxu1 }
 0x334   :  { %v5005_v9 = vadd.f32 %v3711_v26, %v815_v20  ;;  %v5007_v28 = vadd.f32 %v4039_v27, %v823_v21  ;;  %v3713_v29 = vpop.f32.mrb[2].mxu0  ;;  %v4041_v30 = vpop.f32.mrb[2].mxu1 }
 0x335   :  { %v4044_v31 = vmax.f32 %v5004_v24, 0.0  ;;  %v4046_v33 = vmax.f32 %v5006_v25, 0.0  ;;  %v3714_v35 = vpop.f32.mrb[3].mxu0  ;;  %v4042_v38 = vpop.f32.mrb[3].mxu1 }
 0x336   :  { %v4045_v54 = vmax.f32 %v5005_v9, 0.0  ;;  %v4047_v46 = vmax.f32 %v5007_v28, 0.0 }
 0x337   :  { %v4048_v41 = vpack.c.bf16 %v4044_v31, %v4044_v31  ;;  %v4050_v42 = vpack.c.bf16 %v4046_v33, %v4046_v33 }
 0x338   :  { %v4049_v39 = vpack.c.bf16 %v4045_v54, %v4045_v54  ;;  %v4051_v40 = vpack.c.bf16 %v4047_v46, %v4047_v46 }
 0x33a   :  { %4347 = vmatprep.mubr.bf16.mxu0 %v4049_v39  ;;  %4387 = vmatprep.mubr.bf16.mxu1 %v4051_v40 }
 0x33b   :  { %4348 = vmatmul.mubr.bf16.vlgmr.msra.gmra.mrb[4].mxu0 %v4048_v41  ;;  %4388 = vmatmul.mubr.bf16.vlgmr.msra.gmra.mrb[4].mxu1 %v4050_v42 }
 0x40e   :  { %v4976_v48 = vpop.f32.mrb[4].mxu0  ;;  %v4998_v44 = vpop.f32.mrb[4].mxu1 }
 0x40f   :  { %v4977_v50 = vpop.f32.mrb[5].mxu0  ;;  %v4999_v36 = vpop.f32.mrb[5].mxu1 }
 0x410   :  { %v4978_v22 = vadd.f32 %v4977_v50, %v4976_v48  ;;  %v5000_v23 = vadd.f32 %v4999_v36, %v4998_v44  ;;  %v4979_v37 = vpop.f32.mrb[6].mxu0  ;;  %v5001_v16 = vpop.f32.mrb[6].mxu1 }
 0x411   :  { %v4980_v17 = vpop.f32.mrb[7].mxu0  ;;  %v5002_v51 = vpop.f32.mrb[7].mxu1 }
 0x412   :  { %v4350_v52 = vadd.f32 %v4978_v22, %v4927_v49 }
 0x414   :  { %v4390_v53 = vadd.f32 %v5000_v23, %v4350_v52 }
 0x416   :  { %4395 = vst [vmem:[#allocation11] sm:$0xff] %v4390_v53 }
 0x417   :  { %4400 = vsyncadd [#allocation4], 96  ;;  %s6030_s4 = smov [#allocation11]  }
 0x418   :  { %s4401_s30 = sshll.u32 %s6030_s4, 4  ;;  %s4402_s30 = int_to_ptr.vmem [resolvable:$true] %s4401_s30 }
 0x419   :  { %s5988_s7 = scalar_lea.vmem %s4402_s30, 32  ;;  %s5992_s8 = scalar_lea.vmem %s4402_s30, 128 }
 0x41a   :  { %p5989_p12 = scmp.ne.s32.totalorder %s4402_s30, %s5988_s7  ;;  %p5993_p13 = scmp.lt.s32.totalorder %s4402_s30, %s4402_s30 }
 0x41b   :  { %p5994_p0 = scmp.lt.s32.totalorder %s5992_s8, %s5988_s7 }
 0x41d   :  { %p5995_p1 = por %p5994_p0, %p5993_p13 }
 0x41f   :  { %p5996_p2 = pnand %p5995_p1, %p5989_p12 }
 0x421   :  { %5999 = shalt.err (!%p5996_p2)
}
 0x422   :  { %s6000_s11 = scalar_lea.hbm %s6239_s5, 32 }
 0x423   :  { %p6001_p3 = scmp.ne.s32.totalorder %s6239_s5, %s6000_s11  ;;  %p6004_p4 = scmp.lt.u32.totalorder %s6000_s11, %s6239_s5 }
 0x425   :  { %p6006_p5 = pnand %p6004_p4, %p6001_p3 }
 0x427   :  { %6009 = shalt.err (!%p6006_p5)
}
 0x428   :  { %s6031_s16 = smov 2  }
 0x429   :  { %4407 = dma.vmem_to_hbm [thread:$0]  %s4402_s30, 32, %s6239_s5, [#allocation4], %s6026_s6, %s6026_s6, %s6031_s16  }
 0x42a   :  { %6016 = dma.done.wait [#allocation4], 128  }
 0x42b   :  { %6017 = vsyncadd [#allocation4], 4294967168 }
 0x42c   :  { %4411 = vsyncpa [#allocation3], 1 }
 0x42d   :  { %4412 = vsyncpa [#allocation6], 1 }
 0x42e   :  { %4413 = vsyncpa [#allocation9], 1 }
 0x42f   :  { %4414 = vsyncpa [#allocation4], 1 }

</bundles_post_ra>
